<compile_context>
chip_gen: v7x
topology: tpu7x:2x2x1
jax: 0.10.0
libtpu: 0.0.40
codegen_flags: <defaults>
</compile_context>

<pallas_src>
import functools

import numpy as np
import jax
import jax.numpy as jnp
from jax import lax
from jax.experimental import pallas as pl
from jax.experimental.pallas import tpu as pltpu


def _round_up(x, m):
    return (x + m - 1) // m * m


# ----------------------------- Pallas kernel ---------------------------------

def _bigru_kernel(maxlen_ref, len_ref, x_ref, wi_ref, wh_ref, bi_ref, bhn_ref,
                  out_ref, hfin_ref, h_scr, gi_scr, *, tc, tp):
    """Fused bidirectional GRU. One grid step == one direction x one time chunk.

    maxlen_ref : (1,) int32 SMEM        max sequence length (scalar prefetch)
    len_ref    : (Bp, 1) int32          per-batch lengths (pack_padded mask)
    x_ref      : (1, Tc, Bp, Hp) bf16   embedded inputs for this direction/chunk
                                        (direction 1 is time-flipped on the host)
    wi_ref     : (1, Hp, 3Hp) bf16      fused input weights (x @ Wi)
    wh_ref     : (1, Hp, 3Hp) bf16      fused hidden weights (h @ Wh)
    bi_ref     : (1, 1, 3Hp) f32        input bias; r/z parts already include b_hh
    bhn_ref    : (1, 1, Hp)  f32        hidden bias of the "new" gate
    out_ref    : (1, Tc, Bp, Hp) bf16   per-step outputs (0 where inactive)
    hfin_ref   : (1, Bp, Hp) f32        final hidden state (resident accumulator)
    h_scr      : (Bp, Hp) f32           hidden-state carry across time chunks
    gi_scr     : (Tc, Bp, 3Hp) f32      hoisted per-chunk input projection
    """
    d = pl.program_id(0)          # 0 = forward, 1 = backward (time-flipped stream)
    ti = pl.program_id(1)         # time-chunk index (always walks forward)

    @pl.when(ti == 0)
    def _():
        h_scr[...] = jnp.zeros_like(h_scr)

    bp, hp = h_scr.shape
    max_len = maxlen_ref[0]
    lens = len_ref[...]                               # (Bp, 1) int32

    # Per-batch active window: forward [0, len); flipped backward [tp-len, tp).
    lo_vec = d * (tp - lens)                          # (Bp, 1)
    hi_vec = lo_vec + lens                            # (Bp, 1)
    # Scalar union of the windows (any sequence active): used to skip dead chunks.
    w_lo = d * (tp - max_len)
    w_hi = w_lo + max_len

    t0 = ti * tc
    dead = jnp.logical_or(t0 + tc <= w_lo, t0 >= w_hi)

    @pl.when(dead)                                    # fully padded chunk: one block store
    def _():
        out_ref[...] = jnp.zeros_like(out_ref)

    @pl.when(jnp.logical_not(dead))
    def _():
        wi = wi_ref[0]                                # (Hp, 3Hp) bf16
        wh = wh_ref[0]                                # (Hp, 3Hp) bf16
        bi = bi_ref[0]                                # (1, 3Hp)  f32
        bhn = jnp.broadcast_to(bhn_ref[0], (bp, hp))  # hoisted broadcast (f32)

        # Hoisted input projection: one (tc*Bp, Hp) x (Hp, 3Hp) matmul per chunk.
        x2d = x_ref[0].reshape(tc * bp, hp)
        gi_scr[...] = (jnp.dot(x2d, wi, preferred_element_type=jnp.float32)
                       + bi).reshape(tc, bp, 3 * hp)

        def step(s, carry):
            h = h_scr[...]                                               # (Bp, Hp) f32
            gi = gi_scr[s]                                               # (Bp, 3Hp) f32
            gh = jnp.dot(h.astype(jnp.bfloat16), wh,
                         preferred_element_type=jnp.float32)             # (Bp, 3Hp)
            rz = jax.nn.sigmoid(gi[:, :2 * hp] + gh[:, :2 * hp])         # fused r, z
            r = rz[:, :hp]
            z = rz[:, hp:]
            n = jnp.tanh(gi[:, 2 * hp:] + r * (gh[:, 2 * hp:] + bhn))
            h_new = (1.0 - z) * n + z * h

            t = t0 + s
            active = jnp.logical_and(t >= lo_vec, t < hi_vec)            # (Bp, 1) bool
            h_scr[...] = jnp.where(active, h_new, h)                     # freeze past end
            out_ref[0, s] = jnp.where(active, h_new, 0.0).astype(out_ref.dtype)
            return carry

        lax.fori_loop(0, tc, step, 0, unroll=True)

    @pl.when(ti == pl.num_programs(1) - 1)            # write final hidden once per direction
    def _():
        hfin_ref[0] = h_scr[...]


def _bigru_call(maxlen, len_p, emb_stack, wi, wh, bi, bhn, *, tc):
    _, Tp, Bp, Hp = emb_stack.shape
    nb = Tp // tc

    kernel = functools.partial(_bigru_kernel, tc=tc, tp=Tp)

    # index maps get (dir, time_chunk, prefetch_ref)
    chunk_map = lambda d, ti, ml: (d, ti, 0, 0)
    per_dir3 = lambda d, ti, ml: (d, 0, 0)

    grid_spec = pltpu.PrefetchScalarGridSpec(
        num_scalar_prefetch=1,
        grid=(2, nb),
        in_specs=[
            pl.BlockSpec((Bp, 1), lambda d, ti, ml: (0, 0)),              # lengths
            pl.BlockSpec((1, tc, Bp, Hp), chunk_map),                     # embedded inputs
            # weights/biases change only at the direction boundary; default double
            # buffering lets direction-1 weights prefetch under direction-0's last chunk.
            pl.BlockSpec((1, Hp, 3 * Hp), per_dir3),                      # Wi fused
            pl.BlockSpec((1, Hp, 3 * Hp), per_dir3),                      # Wh fused
            pl.BlockSpec((1, 1, 3 * Hp), per_dir3),                       # bias (r/z pre-summed)
            pl.BlockSpec((1, 1, Hp), per_dir3),                           # b_hh of "new" gate
        ],
        out_specs=[
            pl.BlockSpec((1, tc, Bp, Hp), chunk_map),                     # per-step outputs (bf16)
            pl.BlockSpec((1, Bp, Hp), per_dir3),                          # final hidden (f32)
        ],
        scratch_shapes=[pltpu.VMEM((Bp, Hp), jnp.float32),                # h carry
                        pltpu.VMEM((tc, Bp, 3 * Hp), jnp.float32)],       # hoisted gi
    )

    est = (2 * 2 * Hp * 3 * Hp * 2            # wi + wh bf16, double-buffered
           + 2 * 2 * (3 * Hp + Hp) * 4        # biases, double-buffered
           + 2 * tc * Bp * Hp * 2             # x chunk bf16, double-buffered
           + 2 * tc * Bp * Hp * 2             # out chunk bf16, double-buffered
           + 2 * Bp * Hp * 4                  # final hidden
           + Bp * Hp * 4                      # h carry scratch
           + tc * Bp * 3 * Hp * 4             # gi scratch
           + Bp * 128 * 4)                    # lengths block (lane-padded)
    vmem_limit = int(min(48 * 2**20, max(16 * 2**20, 2 * est)))   # headroom on v7x's 64 MiB

    out_shapes = (jax.ShapeDtypeStruct((2, Tp, Bp, Hp), jnp.bfloat16),
                  jax.ShapeDtypeStruct((2, Bp, Hp), jnp.float32))

    return pl.pallas_call(
        kernel,
        out_shape=out_shapes,
        grid_spec=grid_spec,
        compiler_params=pltpu.CompilerParams(
            dimension_semantics=("parallel", "arbitrary"),   # dirs independent; time is a recurrence
            vmem_limit_bytes=vmem_limit),
    )(maxlen, len_p, emb_stack, wi, wh, bi, bhn)


# ------------------------- Weight prep & module wrapper ------------------------

def init_encoder_params(key, vocab_size, hidden_size):
    """PyTorch-layout params: w_ih/w_hh are (2, 3H, H) with gate order [r; z; n]."""
    H = hidden_size
    bound = 1.0 / np.sqrt(H)
    keys = jax.random.split(key, 5)
    u = lambda kk, shape: jax.random.uniform(kk, shape, jnp.float32, -bound, bound)
    return {
        "embedding": jax.random.normal(keys[0], (vocab_size, H), jnp.float32),
        "w_ih": u(keys[1], (2, 3 * H, H)),
        "w_hh": u(keys[2], (2, 3 * H, H)),
        "b_ih": u(keys[3], (2, 3 * H)),
        "b_hh": u(keys[4], (2, 3 * H)),
    }


def _prepare_gru_weights(params, Hp):
    """Fuse gates into (Hp, 3Hp) bf16 matrices (x @ W layout), pre-sum r/z biases."""
    w_ih, w_hh = params["w_ih"], params["w_hh"]          # (2, 3H, H)
    b_ih, b_hh = params["b_ih"], params["b_hh"]          # (2, 3H)
    H = w_ih.shape[2]

    wi = jnp.zeros((2, Hp, 3 * Hp), jnp.float32)
    wh = jnp.zeros((2, Hp, 3 * Hp), jnp.float32)
    bi = jnp.zeros((2, 1, 3 * Hp), jnp.float32)
    bhn = jnp.zeros((2, 1, Hp), jnp.float32)
    for g in range(3):                                   # 0:reset, 1:update, 2:new
        wig = jnp.transpose(w_ih[:, g * H:(g + 1) * H, :], (0, 2, 1))   # x @ W_i[g].T
        whg = jnp.transpose(w_hh[:, g * H:(g + 1) * H, :], (0, 2, 1))
        wi = wi.at[:, :H, g * Hp:g * Hp + H].set(wig)
        wh = wh.at[:, :H, g * Hp:g * Hp + H].set(whg)
        bg = b_ih[:, g * H:(g + 1) * H]
        if g < 2:                                        # r, z: fold b_hh into b_ih
            bg = bg + b_hh[:, g * H:(g + 1) * H]
        bi = bi.at[:, 0, g * Hp:g * Hp + H].set(bg)
    bhn = bhn.at[:, 0, :H].set(b_hh[:, 2 * H:3 * H])
    return wi.astype(jnp.bfloat16), wh.astype(jnp.bfloat16), bi, bhn


def encoder_rnn_forward(params, input_seq, input_lengths, *, time_chunk=64):
    """Mirrors EncoderRNN.forward (n_layers=1, bidirectional, hidden=None).

    input_seq     : (T, B) int32, seq-major (batch_first=False)
    input_lengths : (B,)   int32, sorted descending (pack_padded_sequence contract)
    returns (outputs, hidden) = ((max_len, B, H), (1, B, H))
    """
    T, B = input_seq.shape
    H = params["w_ih"].shape[2]
    Hp = _round_up(H, 128)                   # lane-dense hidden dim
    Bp = _round_up(B, 16)                    # sublane-dense batch (bf16 packing)

    # Time chunk: large enough to feed the MXU / amortize grid overhead, but keep the
    # per-chunk VMEM (gi scratch + double-buffered bf16 x/out blocks) under ~24 MiB.
    tc = min(time_chunk, _round_up(T, 8))
    while tc > 8 and tc * Bp * Hp * (3 * 4 + 2 * 2 + 2 * 2) > 24 * 2**20:
        tc = max(8, tc // 2)
    Tp = _round_up(T, tc)

    # TODO(synk): embedding gather, the backward flip / direction sum and the pad_packed
    # length trim stay in XLA glue (no clean in-kernel equivalent for the gather).
    emb = params["embedding"][input_seq]                                  # (T, B, H)
    emb = jnp.pad(emb, ((0, Tp - T), (0, Bp - B), (0, Hp - H))).astype(jnp.bfloat16)
    emb_stack = jnp.stack([emb, emb[::-1]], axis=0)                       # (2, Tp, Bp, Hp)

    lengths = jnp.asarray(input_lengths, jnp.int32)
    len_p = jnp.pad(lengths, (0, Bp - B)).reshape(Bp, 1)                  # padded rows inactive
    maxlen = jnp.max(lengths).reshape(1)                                  # device-side, no host sync

    wi, wh, bi, bhn = _prepare_gru_weights(params, Hp)

    out_all, hfin = _bigru_call(maxlen, len_p, emb_stack, wi, wh, bi, bhn, tc=tc)

    # pad_packed_sequence trims to max(lengths); needs a static bound for the slice.
    try:
        t_out = int(np.max(np.asarray(input_lengths)))
    except (jax.errors.ConcretizationTypeError, TypeError):
        t_out = T            # traced lengths: keep T rows (rows past max length are zero)

    out_f = out_all[0].astype(jnp.float32)
    out_b = out_all[1][::-1].astype(jnp.float32)       # un-flip the backward stream
    outputs = (out_f + out_b)[:t_out, :B, :H]          # sum of directions
    hidden = (hfin[0] + hfin[1])[None, :B, :H]         # (1, B, H)
    return outputs, hidden


# ----------------------------- Pure-JAX reference ------------------------------
# Mirrors PyTorch's packed bidirectional GRU; matmul operands quantized to bf16
# (f32 accumulation) exactly like the kernel, gating kept in f32.

def _gru_ref_dir(emb, lengths, w_ih, w_hh, b_ih, b_hh, reverse):
    T, B, H = emb.shape
    wiT = jnp.transpose(w_ih).astype(jnp.bfloat16)        # (H, 3H)
    whT = jnp.transpose(w_hh).astype(jnp.bfloat16)

    def cell(h, t):
        x = emb[t].astype(jnp.bfloat16)
        gi = jnp.dot(x, wiT, preferred_element_type=jnp.float32) + b_ih
        gh = jnp.dot(h.astype(jnp.bfloat16), whT, preferred_element_type=jnp.float32) + b_hh
        r = jax.nn.sigmoid(gi[:, :H] + gh[:, :H])
        z = jax.nn.sigmoid(gi[:, H:2 * H] + gh[:, H:2 * H])
        n = jnp.tanh(gi[:, 2 * H:] + r * gh[:, 2 * H:])
        h_new = (1.0 - z) * n + z * h
        mask = (t < lengths)[:, None]
        return jnp.where(mask, h_new, h), jnp.where(mask, h_new, 0.0)

    ts = jnp.arange(T)[::-1] if reverse else jnp.arange(T)
    h_fin, outs = lax.scan(cell, jnp.zeros((B, H), jnp.float32), ts)
    return (outs[::-1] if reverse else outs), h_fin


def encoder_rnn_ref(params, input_seq, input_lengths):
    emb = params["embedding"][input_seq].astype(jnp.float32)
    lengths = jnp.asarray(input_lengths, jnp.int32)
    out_f, h_f = _gru_ref_dir(emb, lengths, params["w_ih"][0], params["w_hh"][0],
                              params["b_ih"][0], params["b_hh"][0], False)
    out_b, h_b = _gru_ref_dir(emb, lengths, params["w_ih"][1], params["w_hh"][1],
                              params["b_ih"][1], params["b_hh"][1], True)
    t_out = int(np.max(np.asarray(input_lengths)))
    return (out_f + out_b)[:t_out], (h_f + h_b)[None]


# ----------------------------------- main --------------------------------------

if __name__ == "__main__":
    T, B, H, V = 8, 4, 32, 50

    key = jax.random.PRNGKey(0)
    k_params, k_seq = jax.random.split(key)
    params = init_encoder_params(k_params, V, H)

    input_seq = jax.random.randint(k_seq, (T, B), 0, V, dtype=jnp.int32)
    # pack_padded_sequence expects lengths sorted descending; longest == T
    input_lengths = jnp.array([8, 6, 5, 3], dtype=jnp.int32)

    outputs, hidden = encoder_rnn_forward(params, input_seq, input_lengths)
    outputs = jax.block_until_ready(outputs)
    hidden = jax.block_until_ready(hidden)

    ref_out, ref_hid = encoder_rnn_ref(params, input_seq, input_lengths)
    assert outputs.shape == (8, B, H) and hidden.shape == (1, B, H)
    # Per-step outputs are stored in bf16 (perf review) -> looser tolerance for them;
    # the final hidden state stays on the f32 path.
    np.testing.assert_allclose(np.asarray(outputs), np.asarray(ref_out),
                               rtol=1e-2, atol=1e-2)
    np.testing.assert_allclose(np.asarray(hidden), np.asarray(ref_hid),
                               rtol=1e-3, atol=1e-3)

    print("KERNEL_OK")
</pallas_src>

<mosaic_0001>
module attributes {stable_mosaic.version = 11 : i64} {
  func.func @_bigru_kernel(%arg0: i32, %arg1: i32, %arg2: memref<1xi32, #tpu.memory_space<smem>>, %arg3: memref<16x1xi32, #tpu.memory_space<vmem>>, %arg4: memref<1x8x16x128xbf16, #tpu.memory_space<vmem>>, %arg5: memref<1x128x384xbf16, #tpu.memory_space<vmem>>, %arg6: memref<1x128x384xbf16, #tpu.memory_space<vmem>>, %arg7: memref<1x1x384xf32, #tpu.memory_space<vmem>>, %arg8: memref<1x1x128xf32, #tpu.memory_space<vmem>>, %arg9: memref<1x8x16x128xbf16, #tpu.memory_space<vmem>>, %arg10: memref<1x16x128xf32, #tpu.memory_space<vmem>>, %arg11: memref<16x128xf32, #tpu.memory_space<vmem>>, %arg12: memref<8x16x384xf32, #tpu.memory_space<vmem>>) attributes {dimension_semantics = [#tpu.dimension_semantics<parallel>, #tpu.dimension_semantics<arbitrary>], iteration_bounds = array<i64: 2, 1>, scalar_prefetch = 1 : i64, scratch_operands = 2 : i64, tpu.core_type = #tpu.core_type<tc>, window_params = [{pipeline_mode = #tpu.pipeline_mode<synchronous>, transform_indices = @transform_0, window_bounds = array<i64: 16, 1>}, {transform_indices = @transform_1, window_bounds = array<i64: 1, 8, 16, 128>}, {transform_indices = @transform_2, window_bounds = array<i64: 1, 128, 384>}, {transform_indices = @transform_3, window_bounds = array<i64: 1, 128, 384>}, {transform_indices = @transform_4, window_bounds = array<i64: 1, 1, 384>}, {transform_indices = @transform_5, window_bounds = array<i64: 1, 1, 128>}, {transform_indices = @transform_6, window_bounds = array<i64: 1, 8, 16, 128>}, {transform_indices = @transform_7, window_bounds = array<i64: 1, 16, 128>}]} {
    %c0_i32 = arith.constant 0 : i32
    %0 = arith.cmpi eq, %arg1, %c0_i32 : i32
    %1 = arith.extui %0 : i1 to i32
    %c0_i32_0 = arith.constant 0 : i32
    %2 = arith.cmpi ne, %1, %c0_i32_0 : i32
    scf.if %2 {
      %cst = arith.constant 0.000000e+00 : f32
      %26 = vector.broadcast %cst : f32 to vector<16x128xf32>
      %c0_10 = arith.constant 0 : index
      %c0_11 = arith.constant 0 : index
      %27 = vector.load %arg11[%c0_10, %c0_11] : memref<16x128xf32, #tpu.memory_space<vmem>>, vector<16x128xf32>
      tpu.vector_store %arg11[%c0_10, %c0_11], %26 {strides = array<i32>} : memref<16x128xf32, #tpu.memory_space<vmem>>, vector<16x128xf32>,
    } else {
    }
    %c0 = arith.constant 0 : index
    %3 = memref.load %arg2[%c0] : memref<1xi32, #tpu.memory_space<smem>>
    %c0_1 = arith.constant 0 : index
    %c0_2 = arith.constant 0 : index
    %4 = vector.load %arg3[%c0_1, %c0_2] : memref<16x1xi32, #tpu.memory_space<vmem>>, vector<16x1xi32>
    %c8_i32 = arith.constant 8 : i32
    %5 = vector.broadcast %c8_i32 : i32 to vector<16x1xi32>
    %6 = arith.subi %5, %4 : vector<16x1xi32>
    %7 = vector.broadcast %arg0 : i32 to vector<16x1xi32>
    %8 = arith.muli %7, %6 : vector<16x1xi32>
    %9 = arith.addi %8, %4 : vector<16x1xi32>
    %c8_i32_3 = arith.constant 8 : i32
    %10 = arith.subi %c8_i32_3, %3 : i32
    %11 = arith.muli %arg0, %10 : i32
    %12 = arith.addi %11, %3 : i32
    %c8_i32_4 = arith.constant 8 : i32
    %13 = arith.muli %arg1, %c8_i32_4 : i32
    %c8_i32_5 = arith.constant 8 : i32
    %14 = arith.addi %13, %c8_i32_5 : i32
    %15 = arith.cmpi sle, %14, %11 : i32
    %16 = arith.cmpi sge, %13, %12 : i32
    %17 = arith.ori %15, %16 : i1
    %18 = arith.extui %17 : i1 to i32
    %c0_i32_6 = arith.constant 0 : i32
    %19 = arith.cmpi ne, %18, %c0_i32_6 : i32
    scf.if %19 {
      %cst = arith.constant 0.000000e+00 : bf16
      %26 = vector.broadcast %cst : bf16 to vector<1x8x16x128xbf16>
      %c0_10 = arith.constant 0 : index
      %c0_11 = arith.constant 0 : index
      %c0_12 = arith.constant 0 : index
      %c0_13 = arith.constant 0 : index
      %27 = vector.load %arg9[%c0_10, %c0_11, %c0_12, %c0_13] : memref<1x8x16x128xbf16, #tpu.memory_space<vmem>>, vector<1x8x16x128xbf16>
      tpu.vector_store %arg9[%c0_10, %c0_11, %c0_12, %c0_13], %26 {strides = array<i32>} : memref<1x8x16x128xbf16, #tpu.memory_space<vmem>>, vector<1x8x16x128xbf16>,
    } else {
    }
    %true = arith.constant true
    %20 = arith.xori %17, %true : i1
    %21 = arith.extui %20 : i1 to i32
    %c0_i32_7 = arith.constant 0 : i32
    %22 = arith.cmpi ne, %21, %c0_i32_7 : i32
    scf.if %22 {
      %c0_10 = arith.constant 0 : index
      %c0_11 = arith.constant 0 : index
      %c0_12 = arith.constant 0 : index
      %26 = vector.load %arg5[%c0_10, %c0_11, %c0_12] : memref<1x128x384xbf16, #tpu.memory_space<vmem>>, vector<1x128x384xbf16>
      %27 = vector.shape_cast %26 : vector<1x128x384xbf16> to vector<128x384xbf16>
      %c0_13 = arith.constant 0 : index
      %c0_14 = arith.constant 0 : index
      %c0_15 = arith.constant 0 : index
      %28 = vector.load %arg6[%c0_13, %c0_14, %c0_15] : memref<1x128x384xbf16, #tpu.memory_space<vmem>>, vector<1x128x384xbf16>
      %29 = vector.shape_cast %28 : vector<1x128x384xbf16> to vector<128x384xbf16>
      %c0_16 = arith.constant 0 : index
      %c0_17 = arith.constant 0 : index
      %c0_18 = arith.constant 0 : index
      %30 = vector.load %arg7[%c0_16, %c0_17, %c0_18] : memref<1x1x384xf32, #tpu.memory_space<vmem>>, vector<1x1x384xf32>
      %31 = vector.shape_cast %30 : vector<1x1x384xf32> to vector<1x384xf32>
      %c0_19 = arith.constant 0 : index
      %c0_20 = arith.constant 0 : index
      %c0_21 = arith.constant 0 : index
      %32 = vector.load %arg8[%c0_19, %c0_20, %c0_21] : memref<1x1x128xf32, #tpu.memory_space<vmem>>, vector<1x1x128xf32>
      %33 = vector.shape_cast %32 : vector<1x1x128xf32> to vector<1x128xf32>
      %34 = vector.shape_cast %33 : vector<1x128xf32> to vector<1x128xf32>
      %35 = vector.broadcast %34 : vector<1x128xf32> to vector<16x128xf32>
      %c0_22 = arith.constant 0 : index
      %c0_23 = arith.constant 0 : index
      %c0_24 = arith.constant 0 : index
      %c0_25 = arith.constant 0 : index
      %36 = vector.load %arg4[%c0_22, %c0_23, %c0_24, %c0_25] : memref<1x8x16x128xbf16, #tpu.memory_space<vmem>>, vector<1x8x16x128xbf16>
      %37 = vector.shape_cast %36 : vector<1x8x16x128xbf16> to vector<8x16x128xbf16>
      %38 = vector.shape_cast %37 : vector<8x16x128xbf16> to vector<128x128xbf16>
      %cst = arith.constant dense<0.000000e+00> : vector<128x384xf32>
      %39 = tpu.matmul %38, %27, %cst {dimension_numbers = #tpu.dot_dimension_numbers<[1], [0], [0], [1], [0, 0, 1, 1], [], []>} : vector<128x128xbf16>, vector<128x384xbf16>, vector<128x384xf32> -> vector<128x384xf32>
      %40 = vector.broadcast %31 : vector<1x384xf32> to vector<128x384xf32>
      %41 = arith.addf %39, %40 : vector<128x384xf32>
      %42 = vector.shape_cast %41 : vector<128x384xf32> to vector<8x16x384xf32>
      %c0_26 = arith.constant 0 : index
      %c0_27 = arith.constant 0 : index
      %c0_28 = arith.constant 0 : index
      %43 = vector.load %arg12[%c0_26, %c0_27, %c0_28] : memref<8x16x384xf32, #tpu.memory_space<vmem>>, vector<8x16x384xf32>
      tpu.vector_store %arg12[%c0_26, %c0_27, %c0_28], %42 {strides = array<i32>} : memref<8x16x384xf32, #tpu.memory_space<vmem>>, vector<8x16x384xf32>,
      %c0_i32_29 = arith.constant 0 : i32
      %c0_30 = arith.constant 0 : index
      %c0_31 = arith.constant 0 : index
      %44 = vector.load %arg11[%c0_30, %c0_31] : memref<16x128xf32, #tpu.memory_space<vmem>>, vector<16x128xf32>
      %45 = arith.index_cast %c0_i32_29 : i32 to index
      %c0_32 = arith.constant 0 : index
      %c0_33 = arith.constant 0 : index
      %46 = vector.load %arg12[%45, %c0_32, %c0_33] : memref<8x16x384xf32, #tpu.memory_space<vmem>>, vector<1x16x384xf32>
      %47 = vector.shape_cast %46 : vector<1x16x384xf32> to vector<16x384xf32>
      %48 = arith.truncf %44 : vector<16x128xf32> to vector<16x128xbf16>
      %cst_34 = arith.constant dense<0.000000e+00> : vector<16x384xf32>
      %49 = tpu.matmul %48, %29, %cst_34 {dimension_numbers = #tpu.dot_dimension_numbers<[1], [0], [0], [1], [0, 0, 1, 1], [], []>} : vector<16x128xbf16>, vector<128x384xbf16>, vector<16x384xf32> -> vector<16x384xf32>
      %50 = vector.extract_strided_slice %47 {offsets = [0, 0], sizes = [16, 256], strides = [1, 1]} : vector<16x384xf32> to vector<16x256xf32>
      %51 = vector.extract_strided_slice %49 {offsets = [0, 0], sizes = [16, 256], strides = [1, 1]} : vector<16x384xf32> to vector<16x256xf32>
      %52 = arith.addf %50, %51 : vector<16x256xf32>
      %53 = arith.negf %52 : vector<16x256xf32>
      %54 = math.exp %53 : vector<16x256xf32>
      %cst_35 = arith.constant 1.000000e+00 : f32
      %55 = vector.broadcast %cst_35 : f32 to vector<16x256xf32>
      %56 = arith.addf %55, %54 : vector<16x256xf32>
      %57 = arith.divf %55, %56 : vector<16x256xf32>
      %58 = vector.extract_strided_slice %57 {offsets = [0, 0], sizes = [16, 128], strides = [1, 1]} : vector<16x256xf32> to vector<16x128xf32>
      %59 = vector.extract_strided_slice %57 {offsets = [0, 128], sizes = [16, 128], strides = [1, 1]} : vector<16x256xf32> to vector<16x128xf32>
      %60 = vector.extract_strided_slice %47 {offsets = [0, 256], sizes = [16, 128], strides = [1, 1]} : vector<16x384xf32> to vector<16x128xf32>
      %61 = vector.extract_strided_slice %49 {offsets = [0, 256], sizes = [16, 128], strides = [1, 1]} : vector<16x384xf32> to vector<16x128xf32>
      %62 = arith.addf %61, %35 : vector<16x128xf32>
      %63 = arith.mulf %58, %62 : vector<16x128xf32>
      %64 = arith.addf %60, %63 : vector<16x128xf32>
      %65 = math.tanh %64 : vector<16x128xf32>
      %cst_36 = arith.constant 1.000000e+00 : f32
      %66 = vector.broadcast %cst_36 : f32 to vector<16x128xf32>
      %67 = arith.subf %66, %59 : vector<16x128xf32>
      %68 = arith.mulf %67, %65 : vector<16x128xf32>
      %69 = arith.mulf %59, %44 : vector<16x128xf32>
      %70 = arith.addf %68, %69 : vector<16x128xf32>
      %71 = arith.addi %13, %c0_i32_29 : i32
      %72 = vector.broadcast %71 : i32 to vector<16x1xi32>
      %73 = arith.cmpi sge, %72, %8 : vector<16x1xi32>
      %74 = vector.broadcast %71 : i32 to vector<16x1xi32>
      %75 = arith.cmpi slt, %74, %9 : vector<16x1xi32>
      %76 = arith.andi %73, %75 : vector<16x1xi1>
      %77 = vector.shape_cast %76 : vector<16x1xi1> to vector<16x1xi1>
      %78 = vector.broadcast %77 : vector<16x1xi1> to vector<16x128xi1>
      %79 = arith.select %78, %70, %44 : vector<16x128xi1>, vector<16x128xf32>
      %c0_37 = arith.constant 0 : index
      %c0_38 = arith.constant 0 : index
      %80 = vector.load %arg11[%c0_37, %c0_38] : memref<16x128xf32, #tpu.memory_space<vmem>>, vector<16x128xf32>
      tpu.vector_store %arg11[%c0_37, %c0_38], %79 {strides = array<i32>} : memref<16x128xf32, #tpu.memory_space<vmem>>, vector<16x128xf32>,
      %cst_39 = arith.constant 0.000000e+00 : f32
      %81 = vector.shape_cast %76 : vector<16x1xi1> to vector<16x1xi1>
      %82 = vector.broadcast %81 : vector<16x1xi1> to vector<16x128xi1>
      %83 = vector.broadcast %cst_39 : f32 to vector<16x128xf32>
      %84 = arith.select %82, %70, %83 : vector<16x128xi1>, vector<16x128xf32>
      %85 = arith.truncf %84 : vector<16x128xf32> to vector<16x128xbf16>
      %c0_40 = arith.constant 0 : index
      %86 = arith.index_cast %c0_i32_29 : i32 to index
      %c0_41 = arith.constant 0 : index
      %c0_42 = arith.constant 0 : index
      %87 = vector.load %arg9[%c0_40, %86, %c0_41, %c0_42] : memref<1x8x16x128xbf16, #tpu.memory_space<vmem>>, vector<1x1x16x128xbf16>
      %88 = vector.shape_cast %87 : vector<1x1x16x128xbf16> to vector<16x128xbf16>
      %89 = vector.shape_cast %85 : vector<16x128xbf16> to vector<1x1x16x128xbf16>
      tpu.vector_store %arg9[%c0_40, %86, %c0_41, %c0_42], %89 {strides = array<i32>} : memref<1x8x16x128xbf16, #tpu.memory_space<vmem>>, vector<1x1x16x128xbf16>,
      %c1_i32 = arith.constant 1 : i32
      %c0_43 = arith.constant 0 : index
      %c0_44 = arith.constant 0 : index
      %90 = vector.load %arg11[%c0_43, %c0_44] : memref<16x128xf32, #tpu.memory_space<vmem>>, vector<16x128xf32>
      %91 = arith.index_cast %c1_i32 : i32 to index
      %c0_45 = arith.constant 0 : index
      %c0_46 = arith.constant 0 : index
      %92 = vector.load %arg12[%91, %c0_45, %c0_46] : memref<8x16x384xf32, #tpu.memory_space<vmem>>, vector<1x16x384xf32>
      %93 = vector.shape_cast %92 : vector<1x16x384xf32> to vector<16x384xf32>
      %94 = arith.truncf %90 : vector<16x128xf32> to vector<16x128xbf16>
      %cst_47 = arith.constant dense<0.000000e+00> : vector<16x384xf32>
      %95 = tpu.matmul %94, %29, %cst_47 {dimension_numbers = #tpu.dot_dimension_numbers<[1], [0], [0], [1], [0, 0, 1, 1], [], []>} : vector<16x128xbf16>, vector<128x384xbf16>, vector<16x384xf32> -> vector<16x384xf32>
      %96 = vector.extract_strided_slice %93 {offsets = [0, 0], sizes = [16, 256], strides = [1, 1]} : vector<16x384xf32> to vector<16x256xf32>
      %97 = vector.extract_strided_slice %95 {offsets = [0, 0], sizes = [16, 256], strides = [1, 1]} : vector<16x384xf32> to vector<16x256xf32>
      %98 = arith.addf %96, %97 : vector<16x256xf32>
      %99 = arith.negf %98 : vector<16x256xf32>
      %100 = math.exp %99 : vector<16x256xf32>
      %cst_48 = arith.constant 1.000000e+00 : f32
      %101 = vector.broadcast %cst_48 : f32 to vector<16x256xf32>
      %102 = arith.addf %101, %100 : vector<16x256xf32>
      %103 = arith.divf %101, %102 : vector<16x256xf32>
      %104 = vector.extract_strided_slice %103 {offsets = [0, 0], sizes = [16, 128], strides = [1, 1]} : vector<16x256xf32> to vector<16x128xf32>
      %105 = vector.extract_strided_slice %103 {offsets = [0, 128], sizes = [16, 128], strides = [1, 1]} : vector<16x256xf32> to vector<16x128xf32>
      %106 = vector.extract_strided_slice %93 {offsets = [0, 256], sizes = [16, 128], strides = [1, 1]} : vector<16x384xf32> to vector<16x128xf32>
      %107 = vector.extract_strided_slice %95 {offsets = [0, 256], sizes = [16, 128], strides = [1, 1]} : vector<16x384xf32> to vector<16x128xf32>
      %108 = arith.addf %107, %35 : vector<16x128xf32>
      %109 = arith.mulf %104, %108 : vector<16x128xf32>
      %110 = arith.addf %106, %109 : vector<16x128xf32>
      %111 = math.tanh %110 : vector<16x128xf32>
      %cst_49 = arith.constant 1.000000e+00 : f32
      %112 = vector.broadcast %cst_49 : f32 to vector<16x128xf32>
      %113 = arith.subf %112, %105 : vector<16x128xf32>
      %114 = arith.mulf %113, %111 : vector<16x128xf32>
      %115 = arith.mulf %105, %90 : vector<16x128xf32>
      %116 = arith.addf %114, %115 : vector<16x128xf32>
      %117 = arith.addi %13, %c1_i32 : i32
      %118 = vector.broadcast %117 : i32 to vector<16x1xi32>
      %119 = arith.cmpi sge, %118, %8 : vector<16x1xi32>
      %120 = vector.broadcast %117 : i32 to vector<16x1xi32>
      %121 = arith.cmpi slt, %120, %9 : vector<16x1xi32>
      %122 = arith.andi %119, %121 : vector<16x1xi1>
      %123 = vector.shape_cast %122 : vector<16x1xi1> to vector<16x1xi1>
      %124 = vector.broadcast %123 : vector<16x1xi1> to vector<16x128xi1>
      %125 = arith.select %124, %116, %90 : vector<16x128xi1>, vector<16x128xf32>
      %c0_50 = arith.constant 0 : index
      %c0_51 = arith.constant 0 : index
      %126 = vector.load %arg11[%c0_50, %c0_51] : memref<16x128xf32, #tpu.memory_space<vmem>>, vector<16x128xf32>
      tpu.vector_store %arg11[%c0_50, %c0_51], %125 {strides = array<i32>} : memref<16x128xf32, #tpu.memory_space<vmem>>, vector<16x128xf32>,
      %cst_52 = arith.constant 0.000000e+00 : f32
      %127 = vector.shape_cast %122 : vector<16x1xi1> to vector<16x1xi1>
      %128 = vector.broadcast %127 : vector<16x1xi1> to vector<16x128xi1>
      %129 = vector.broadcast %cst_52 : f32 to vector<16x128xf32>
      %130 = arith.select %128, %116, %129 : vector<16x128xi1>, vector<16x128xf32>
      %131 = arith.truncf %130 : vector<16x128xf32> to vector<16x128xbf16>
      %c0_53 = arith.constant 0 : index
      %132 = arith.index_cast %c1_i32 : i32 to index
      %c0_54 = arith.constant 0 : index
      %c0_55 = arith.constant 0 : index
      %133 = vector.load %arg9[%c0_53, %132, %c0_54, %c0_55] : memref<1x8x16x128xbf16, #tpu.memory_space<vmem>>, vector<1x1x16x128xbf16>
      %134 = vector.shape_cast %133 : vector<1x1x16x128xbf16> to vector<16x128xbf16>
      %135 = vector.shape_cast %131 : vector<16x128xbf16> to vector<1x1x16x128xbf16>
      tpu.vector_store %arg9[%c0_53, %132, %c0_54, %c0_55], %135 {strides = array<i32>} : memref<1x8x16x128xbf16, #tpu.memory_space<vmem>>, vector<1x1x16x128xbf16>,
      %c2_i32 = arith.constant 2 : i32
      %c0_56 = arith.constant 0 : index
      %c0_57 = arith.constant 0 : index
      %136 = vector.load %arg11[%c0_56, %c0_57] : memref<16x128xf32, #tpu.memory_space<vmem>>, vector<16x128xf32>
      %137 = arith.index_cast %c2_i32 : i32 to index
      %c0_58 = arith.constant 0 : index
      %c0_59 = arith.constant 0 : index
      %138 = vector.load %arg12[%137, %c0_58, %c0_59] : memref<8x16x384xf32, #tpu.memory_space<vmem>>, vector<1x16x384xf32>
      %139 = vector.shape_cast %138 : vector<1x16x384xf32> to vector<16x384xf32>
      %140 = arith.truncf %136 : vector<16x128xf32> to vector<16x128xbf16>
      %cst_60 = arith.constant dense<0.000000e+00> : vector<16x384xf32>
      %141 = tpu.matmul %140, %29, %cst_60 {dimension_numbers = #tpu.dot_dimension_numbers<[1], [0], [0], [1], [0, 0, 1, 1], [], []>} : vector<16x128xbf16>, vector<128x384xbf16>, vector<16x384xf32> -> vector<16x384xf32>
      %142 = vector.extract_strided_slice %139 {offsets = [0, 0], sizes = [16, 256], strides = [1, 1]} : vector<16x384xf32> to vector<16x256xf32>
      %143 = vector.extract_strided_slice %141 {offsets = [0, 0], sizes = [16, 256], strides = [1, 1]} : vector<16x384xf32> to vector<16x256xf32>
      %144 = arith.addf %142, %143 : vector<16x256xf32>
      %145 = arith.negf %144 : vector<16x256xf32>
      %146 = math.exp %145 : vector<16x256xf32>
      %cst_61 = arith.constant 1.000000e+00 : f32
      %147 = vector.broadcast %cst_61 : f32 to vector<16x256xf32>
      %148 = arith.addf %147, %146 : vector<16x256xf32>
      %149 = arith.divf %147, %148 : vector<16x256xf32>
      %150 = vector.extract_strided_slice %149 {offsets = [0, 0], sizes = [16, 128], strides = [1, 1]} : vector<16x256xf32> to vector<16x128xf32>
      %151 = vector.extract_strided_slice %149 {offsets = [0, 128], sizes = [16, 128], strides = [1, 1]} : vector<16x256xf32> to vector<16x128xf32>
      %152 = vector.extract_strided_slice %139 {offsets = [0, 256], sizes = [16, 128], strides = [1, 1]} : vector<16x384xf32> to vector<16x128xf32>
      %153 = vector.extract_strided_slice %141 {offsets = [0, 256], sizes = [16, 128], strides = [1, 1]} : vector<16x384xf32> to vector<16x128xf32>
      %154 = arith.addf %153, %35 : vector<16x128xf32>
      %155 = arith.mulf %150, %154 : vector<16x128xf32>
      %156 = arith.addf %152, %155 : vector<16x128xf32>
      %157 = math.tanh %156 : vector<16x128xf32>
      %cst_62 = arith.constant 1.000000e+00 : f32
      %158 = vector.broadcast %cst_62 : f32 to vector<16x128xf32>
      %159 = arith.subf %158, %151 : vector<16x128xf32>
      %160 = arith.mulf %159, %157 : vector<16x128xf32>
      %161 = arith.mulf %151, %136 : vector<16x128xf32>
      %162 = arith.addf %160, %161 : vector<16x128xf32>
      %163 = arith.addi %13, %c2_i32 : i32
      %164 = vector.broadcast %163 : i32 to vector<16x1xi32>
      %165 = arith.cmpi sge, %164, %8 : vector<16x1xi32>
      %166 = vector.broadcast %163 : i32 to vector<16x1xi32>
      %167 = arith.cmpi slt, %166, %9 : vector<16x1xi32>
      %168 = arith.andi %165, %167 : vector<16x1xi1>
      %169 = vector.shape_cast %168 : vector<16x1xi1> to vector<16x1xi1>
      %170 = vector.broadcast %169 : vector<16x1xi1> to vector<16x128xi1>
      %171 = arith.select %170, %162, %136 : vector<16x128xi1>, vector<16x128xf32>
      %c0_63 = arith.constant 0 : index
      %c0_64 = arith.constant 0 : index
      %172 = vector.load %arg11[%c0_63, %c0_64] : memref<16x128xf32, #tpu.memory_space<vmem>>, vector<16x128xf32>
      tpu.vector_store %arg11[%c0_63, %c0_64], %171 {strides = array<i32>} : memref<16x128xf32, #tpu.memory_space<vmem>>, vector<16x128xf32>,
      %cst_65 = arith.constant 0.000000e+00 : f32
      %173 = vector.shape_cast %168 : vector<16x1xi1> to vector<16x1xi1>
      %174 = vector.broadcast %173 : vector<16x1xi1> to vector<16x128xi1>
      %175 = vector.broadcast %cst_65 : f32 to vector<16x128xf32>
      %176 = arith.select %174, %162, %175 : vector<16x128xi1>, vector<16x128xf32>
      %177 = arith.truncf %176 : vector<16x128xf32> to vector<16x128xbf16>
      %c0_66 = arith.constant 0 : index
      %178 = arith.index_cast %c2_i32 : i32 to index
      %c0_67 = arith.constant 0 : index
      %c0_68 = arith.constant 0 : index
      %179 = vector.load %arg9[%c0_66, %178, %c0_67, %c0_68] : memref<1x8x16x128xbf16, #tpu.memory_space<vmem>>, vector<1x1x16x128xbf16>
      %180 = vector.shape_cast %179 : vector<1x1x16x128xbf16> to vector<16x128xbf16>
      %181 = vector.shape_cast %177 : vector<16x128xbf16> to vector<1x1x16x128xbf16>
      tpu.vector_store %arg9[%c0_66, %178, %c0_67, %c0_68], %181 {strides = array<i32>} : memref<1x8x16x128xbf16, #tpu.memory_space<vmem>>, vector<1x1x16x128xbf16>,
      %c3_i32 = arith.constant 3 : i32
      %c0_69 = arith.constant 0 : index
      %c0_70 = arith.constant 0 : index
      %182 = vector.load %arg11[%c0_69, %c0_70] : memref<16x128xf32, #tpu.memory_space<vmem>>, vector<16x128xf32>
      %183 = arith.index_cast %c3_i32 : i32 to index
      %c0_71 = arith.constant 0 : index
      %c0_72 = arith.constant 0 : index
      %184 = vector.load %arg12[%183, %c0_71, %c0_72] : memref<8x16x384xf32, #tpu.memory_space<vmem>>, vector<1x16x384xf32>
      %185 = vector.shape_cast %184 : vector<1x16x384xf32> to vector<16x384xf32>
      %186 = arith.truncf %182 : vector<16x128xf32> to vector<16x128xbf16>
      %cst_73 = arith.constant dense<0.000000e+00> : vector<16x384xf32>
      %187 = tpu.matmul %186, %29, %cst_73 {dimension_numbers = #tpu.dot_dimension_numbers<[1], [0], [0], [1], [0, 0, 1, 1], [], []>} : vector<16x128xbf16>, vector<128x384xbf16>, vector<16x384xf32> -> vector<16x384xf32>
      %188 = vector.extract_strided_slice %185 {offsets = [0, 0], sizes = [16, 256], strides = [1, 1]} : vector<16x384xf32> to vector<16x256xf32>
      %189 = vector.extract_strided_slice %187 {offsets = [0, 0], sizes = [16, 256], strides = [1, 1]} : vector<16x384xf32> to vector<16x256xf32>
      %190 = arith.addf %188, %189 : vector<16x256xf32>
      %191 = arith.negf %190 : vector<16x256xf32>
      %192 = math.exp %191 : vector<16x256xf32>
      %cst_74 = arith.constant 1.000000e+00 : f32
      %193 = vector.broadcast %cst_74 : f32 to vector<16x256xf32>
      %194 = arith.addf %193, %192 : vector<16x256xf32>
      %195 = arith.divf %193, %194 : vector<16x256xf32>
      %196 = vector.extract_strided_slice %195 {offsets = [0, 0], sizes = [16, 128], strides = [1, 1]} : vector<16x256xf32> to vector<16x128xf32>
      %197 = vector.extract_strided_slice %195 {offsets = [0, 128], sizes = [16, 128], strides = [1, 1]} : vector<16x256xf32> to vector<16x128xf32>
      %198 = vector.extract_strided_slice %185 {offsets = [0, 256], sizes = [16, 128], strides = [1, 1]} : vector<16x384xf32> to vector<16x128xf32>
      %199 = vector.extract_strided_slice %187 {offsets = [0, 256], sizes = [16, 128], strides = [1, 1]} : vector<16x384xf32> to vector<16x128xf32>
      %200 = arith.addf %199, %35 : vector<16x128xf32>
      %201 = arith.mulf %196, %200 : vector<16x128xf32>
      %202 = arith.addf %198, %201 : vector<16x128xf32>
      %203 = math.tanh %202 : vector<16x128xf32>
      %cst_75 = arith.constant 1.000000e+00 : f32
      %204 = vector.broadcast %cst_75 : f32 to vector<16x128xf32>
      %205 = arith.subf %204, %197 : vector<16x128xf32>
      %206 = arith.mulf %205, %203 : vector<16x128xf32>
      %207 = arith.mulf %197, %182 : vector<16x128xf32>
      %208 = arith.addf %206, %207 : vector<16x128xf32>
      %209 = arith.addi %13, %c3_i32 : i32
      %210 = vector.broadcast %209 : i32 to vector<16x1xi32>
      %211 = arith.cmpi sge, %210, %8 : vector<16x1xi32>
      %212 = vector.broadcast %209 : i32 to vector<16x1xi32>
      %213 = arith.cmpi slt, %212, %9 : vector<16x1xi32>
      %214 = arith.andi %211, %213 : vector<16x1xi1>
      %215 = vector.shape_cast %214 : vector<16x1xi1> to vector<16x1xi1>
      %216 = vector.broadcast %215 : vector<16x1xi1> to vector<16x128xi1>
      %217 = arith.select %216, %208, %182 : vector<16x128xi1>, vector<16x128xf32>
      %c0_76 = arith.constant 0 : index
      %c0_77 = arith.constant 0 : index
      %218 = vector.load %arg11[%c0_76, %c0_77] : memref<16x128xf32, #tpu.memory_space<vmem>>, vector<16x128xf32>
      tpu.vector_store %arg11[%c0_76, %c0_77], %217 {strides = array<i32>} : memref<16x128xf32, #tpu.memory_space<vmem>>, vector<16x128xf32>,
      %cst_78 = arith.constant 0.000000e+00 : f32
      %219 = vector.shape_cast %214 : vector<16x1xi1> to vector<16x1xi1>
      %220 = vector.broadcast %219 : vector<16x1xi1> to vector<16x128xi1>
      %221 = vector.broadcast %cst_78 : f32 to vector<16x128xf32>
      %222 = arith.select %220, %208, %221 : vector<16x128xi1>, vector<16x128xf32>
      %223 = arith.truncf %222 : vector<16x128xf32> to vector<16x128xbf16>
      %c0_79 = arith.constant 0 : index
      %224 = arith.index_cast %c3_i32 : i32 to index
      %c0_80 = arith.constant 0 : index
      %c0_81 = arith.constant 0 : index
      %225 = vector.load %arg9[%c0_79, %224, %c0_80, %c0_81] : memref<1x8x16x128xbf16, #tpu.memory_space<vmem>>, vector<1x1x16x128xbf16>
      %226 = vector.shape_cast %225 : vector<1x1x16x128xbf16> to vector<16x128xbf16>
      %227 = vector.shape_cast %223 : vector<16x128xbf16> to vector<1x1x16x128xbf16>
      tpu.vector_store %arg9[%c0_79, %224, %c0_80, %c0_81], %227 {strides = array<i32>} : memref<1x8x16x128xbf16, #tpu.memory_space<vmem>>, vector<1x1x16x128xbf16>,
      %c4_i32 = arith.constant 4 : i32
      %c0_82 = arith.constant 0 : index
      %c0_83 = arith.constant 0 : index
      %228 = vector.load %arg11[%c0_82, %c0_83] : memref<16x128xf32, #tpu.memory_space<vmem>>, vector<16x128xf32>
      %229 = arith.index_cast %c4_i32 : i32 to index
      %c0_84 = arith.constant 0 : index
      %c0_85 = arith.constant 0 : index
      %230 = vector.load %arg12[%229, %c0_84, %c0_85] : memref<8x16x384xf32, #tpu.memory_space<vmem>>, vector<1x16x384xf32>
      %231 = vector.shape_cast %230 : vector<1x16x384xf32> to vector<16x384xf32>
      %232 = arith.truncf %228 : vector<16x128xf32> to vector<16x128xbf16>
      %cst_86 = arith.constant dense<0.000000e+00> : vector<16x384xf32>
      %233 = tpu.matmul %232, %29, %cst_86 {dimension_numbers = #tpu.dot_dimension_numbers<[1], [0], [0], [1], [0, 0, 1, 1], [], []>} : vector<16x128xbf16>, vector<128x384xbf16>, vector<16x384xf32> -> vector<16x384xf32>
      %234 = vector.extract_strided_slice %231 {offsets = [0, 0], sizes = [16, 256], strides = [1, 1]} : vector<16x384xf32> to vector<16x256xf32>
      %235 = vector.extract_strided_slice %233 {offsets = [0, 0], sizes = [16, 256], strides = [1, 1]} : vector<16x384xf32> to vector<16x256xf32>
      %236 = arith.addf %234, %235 : vector<16x256xf32>
      %237 = arith.negf %236 : vector<16x256xf32>
      %238 = math.exp %237 : vector<16x256xf32>
      %cst_87 = arith.constant 1.000000e+00 : f32
      %239 = vector.broadcast %cst_87 : f32 to vector<16x256xf32>
      %240 = arith.addf %239, %238 : vector<16x256xf32>
      %241 = arith.divf %239, %240 : vector<16x256xf32>
      %242 = vector.extract_strided_slice %241 {offsets = [0, 0], sizes = [16, 128], strides = [1, 1]} : vector<16x256xf32> to vector<16x128xf32>
      %243 = vector.extract_strided_slice %241 {offsets = [0, 128], sizes = [16, 128], strides = [1, 1]} : vector<16x256xf32> to vector<16x128xf32>
      %244 = vector.extract_strided_slice %231 {offsets = [0, 256], sizes = [16, 128], strides = [1, 1]} : vector<16x384xf32> to vector<16x128xf32>
      %245 = vector.extract_strided_slice %233 {offsets = [0, 256], sizes = [16, 128], strides = [1, 1]} : vector<16x384xf32> to vector<16x128xf32>
      %246 = arith.addf %245, %35 : vector<16x128xf32>
      %247 = arith.mulf %242, %246 : vector<16x128xf32>
      %248 = arith.addf %244, %247 : vector<16x128xf32>
      %249 = math.tanh %248 : vector<16x128xf32>
      %cst_88 = arith.constant 1.000000e+00 : f32
      %250 = vector.broadcast %cst_88 : f32 to vector<16x128xf32>
      %251 = arith.subf %250, %243 : vector<16x128xf32>
      %252 = arith.mulf %251, %249 : vector<16x128xf32>
      %253 = arith.mulf %243, %228 : vector<16x128xf32>
      %254 = arith.addf %252, %253 : vector<16x128xf32>
      %255 = arith.addi %13, %c4_i32 : i32
      %256 = vector.broadcast %255 : i32 to vector<16x1xi32>
      %257 = arith.cmpi sge, %256, %8 : vector<16x1xi32>
      %258 = vector.broadcast %255 : i32 to vector<16x1xi32>
      %259 = arith.cmpi slt, %258, %9 : vector<16x1xi32>
      %260 = arith.andi %257, %259 : vector<16x1xi1>
      %261 = vector.shape_cast %260 : vector<16x1xi1> to vector<16x1xi1>
      %262 = vector.broadcast %261 : vector<16x1xi1> to vector<16x128xi1>
      %263 = arith.select %262, %254, %228 : vector<16x128xi1>, vector<16x128xf32>
      %c0_89 = arith.constant 0 : index
      %c0_90 = arith.constant 0 : index
      %264 = vector.load %arg11[%c0_89, %c0_90] : memref<16x128xf32, #tpu.memory_space<vmem>>, vector<16x128xf32>
      tpu.vector_store %arg11[%c0_89, %c0_90], %263 {strides = array<i32>} : memref<16x128xf32, #tpu.memory_space<vmem>>, vector<16x128xf32>,
      %cst_91 = arith.constant 0.000000e+00 : f32
      %265 = vector.shape_cast %260 : vector<16x1xi1> to vector<16x1xi1>
      %266 = vector.broadcast %265 : vector<16x1xi1> to vector<16x128xi1>
      %267 = vector.broadcast %cst_91 : f32 to vector<16x128xf32>
      %268 = arith.select %266, %254, %267 : vector<16x128xi1>, vector<16x128xf32>
      %269 = arith.truncf %268 : vector<16x128xf32> to vector<16x128xbf16>
      %c0_92 = arith.constant 0 : index
      %270 = arith.index_cast %c4_i32 : i32 to index
      %c0_93 = arith.constant 0 : index
      %c0_94 = arith.constant 0 : index
      %271 = vector.load %arg9[%c0_92, %270, %c0_93, %c0_94] : memref<1x8x16x128xbf16, #tpu.memory_space<vmem>>, vector<1x1x16x128xbf16>
      %272 = vector.shape_cast %271 : vector<1x1x16x128xbf16> to vector<16x128xbf16>
      %273 = vector.shape_cast %269 : vector<16x128xbf16> to vector<1x1x16x128xbf16>
      tpu.vector_store %arg9[%c0_92, %270, %c0_93, %c0_94], %273 {strides = array<i32>} : memref<1x8x16x128xbf16, #tpu.memory_space<vmem>>, vector<1x1x16x128xbf16>,
      %c5_i32 = arith.constant 5 : i32
      %c0_95 = arith.constant 0 : index
      %c0_96 = arith.constant 0 : index
      %274 = vector.load %arg11[%c0_95, %c0_96] : memref<16x128xf32, #tpu.memory_space<vmem>>, vector<16x128xf32>
      %275 = arith.index_cast %c5_i32 : i32 to index
      %c0_97 = arith.constant 0 : index
      %c0_98 = arith.constant 0 : index
      %276 = vector.load %arg12[%275, %c0_97, %c0_98] : memref<8x16x384xf32, #tpu.memory_space<vmem>>, vector<1x16x384xf32>
      %277 = vector.shape_cast %276 : vector<1x16x384xf32> to vector<16x384xf32>
      %278 = arith.truncf %274 : vector<16x128xf32> to vector<16x128xbf16>
      %cst_99 = arith.constant dense<0.000000e+00> : vector<16x384xf32>
      %279 = tpu.matmul %278, %29, %cst_99 {dimension_numbers = #tpu.dot_dimension_numbers<[1], [0], [0], [1], [0, 0, 1, 1], [], []>} : vector<16x128xbf16>, vector<128x384xbf16>, vector<16x384xf32> -> vector<16x384xf32>
      %280 = vector.extract_strided_slice %277 {offsets = [0, 0], sizes = [16, 256], strides = [1, 1]} : vector<16x384xf32> to vector<16x256xf32>
      %281 = vector.extract_strided_slice %279 {offsets = [0, 0], sizes = [16, 256], strides = [1, 1]} : vector<16x384xf32> to vector<16x256xf32>
      %282 = arith.addf %280, %281 : vector<16x256xf32>
      %283 = arith.negf %282 : vector<16x256xf32>
      %284 = math.exp %283 : vector<16x256xf32>
      %cst_100 = arith.constant 1.000000e+00 : f32
      %285 = vector.broadcast %cst_100 : f32 to vector<16x256xf32>
      %286 = arith.addf %285, %284 : vector<16x256xf32>
      %287 = arith.divf %285, %286 : vector<16x256xf32>
      %288 = vector.extract_strided_slice %287 {offsets = [0, 0], sizes = [16, 128], strides = [1, 1]} : vector<16x256xf32> to vector<16x128xf32>
      %289 = vector.extract_strided_slice %287 {offsets = [0, 128], sizes = [16, 128], strides = [1, 1]} : vector<16x256xf32> to vector<16x128xf32>
      %290 = vector.extract_strided_slice %277 {offsets = [0, 256], sizes = [16, 128], strides = [1, 1]} : vector<16x384xf32> to vector<16x128xf32>
      %291 = vector.extract_strided_slice %279 {offsets = [0, 256], sizes = [16, 128], strides = [1, 1]} : vector<16x384xf32> to vector<16x128xf32>
      %292 = arith.addf %291, %35 : vector<16x128xf32>
      %293 = arith.mulf %288, %292 : vector<16x128xf32>
      %294 = arith.addf %290, %293 : vector<16x128xf32>
      %295 = math.tanh %294 : vector<16x128xf32>
      %cst_101 = arith.constant 1.000000e+00 : f32
      %296 = vector.broadcast %cst_101 : f32 to vector<16x128xf32>
      %297 = arith.subf %296, %289 : vector<16x128xf32>
      %298 = arith.mulf %297, %295 : vector<16x128xf32>
      %299 = arith.mulf %289, %274 : vector<16x128xf32>
      %300 = arith.addf %298, %299 : vector<16x128xf32>
      %301 = arith.addi %13, %c5_i32 : i32
      %302 = vector.broadcast %301 : i32 to vector<16x1xi32>
      %303 = arith.cmpi sge, %302, %8 : vector<16x1xi32>
      %304 = vector.broadcast %301 : i32 to vector<16x1xi32>
      %305 = arith.cmpi slt, %304, %9 : vector<16x1xi32>
      %306 = arith.andi %303, %305 : vector<16x1xi1>
      %307 = vector.shape_cast %306 : vector<16x1xi1> to vector<16x1xi1>
      %308 = vector.broadcast %307 : vector<16x1xi1> to vector<16x128xi1>
      %309 = arith.select %308, %300, %274 : vector<16x128xi1>, vector<16x128xf32>
      %c0_102 = arith.constant 0 : index
      %c0_103 = arith.constant 0 : index
      %310 = vector.load %arg11[%c0_102, %c0_103] : memref<16x128xf32, #tpu.memory_space<vmem>>, vector<16x128xf32>
      tpu.vector_store %arg11[%c0_102, %c0_103], %309 {strides = array<i32>} : memref<16x128xf32, #tpu.memory_space<vmem>>, vector<16x128xf32>,
      %cst_104 = arith.constant 0.000000e+00 : f32
      %311 = vector.shape_cast %306 : vector<16x1xi1> to vector<16x1xi1>
      %312 = vector.broadcast %311 : vector<16x1xi1> to vector<16x128xi1>
      %313 = vector.broadcast %cst_104 : f32 to vector<16x128xf32>
      %314 = arith.select %312, %300, %313 : vector<16x128xi1>, vector<16x128xf32>
      %315 = arith.truncf %314 : vector<16x128xf32> to vector<16x128xbf16>
      %c0_105 = arith.constant 0 : index
      %316 = arith.index_cast %c5_i32 : i32 to index
      %c0_106 = arith.constant 0 : index
      %c0_107 = arith.constant 0 : index
      %317 = vector.load %arg9[%c0_105, %316, %c0_106, %c0_107] : memref<1x8x16x128xbf16, #tpu.memory_space<vmem>>, vector<1x1x16x128xbf16>
      %318 = vector.shape_cast %317 : vector<1x1x16x128xbf16> to vector<16x128xbf16>
      %319 = vector.shape_cast %315 : vector<16x128xbf16> to vector<1x1x16x128xbf16>
      tpu.vector_store %arg9[%c0_105, %316, %c0_106, %c0_107], %319 {strides = array<i32>} : memref<1x8x16x128xbf16, #tpu.memory_space<vmem>>, vector<1x1x16x128xbf16>,
      %c6_i32 = arith.constant 6 : i32
      %c0_108 = arith.constant 0 : index
      %c0_109 = arith.constant 0 : index
      %320 = vector.load %arg11[%c0_108, %c0_109] : memref<16x128xf32, #tpu.memory_space<vmem>>, vector<16x128xf32>
      %321 = arith.index_cast %c6_i32 : i32 to index
      %c0_110 = arith.constant 0 : index
      %c0_111 = arith.constant 0 : index
      %322 = vector.load %arg12[%321, %c0_110, %c0_111] : memref<8x16x384xf32, #tpu.memory_space<vmem>>, vector<1x16x384xf32>
      %323 = vector.shape_cast %322 : vector<1x16x384xf32> to vector<16x384xf32>
      %324 = arith.truncf %320 : vector<16x128xf32> to vector<16x128xbf16>
      %cst_112 = arith.constant dense<0.000000e+00> : vector<16x384xf32>
      %325 = tpu.matmul %324, %29, %cst_112 {dimension_numbers = #tpu.dot_dimension_numbers<[1], [0], [0], [1], [0, 0, 1, 1], [], []>} : vector<16x128xbf16>, vector<128x384xbf16>, vector<16x384xf32> -> vector<16x384xf32>
      %326 = vector.extract_strided_slice %323 {offsets = [0, 0], sizes = [16, 256], strides = [1, 1]} : vector<16x384xf32> to vector<16x256xf32>
      %327 = vector.extract_strided_slice %325 {offsets = [0, 0], sizes = [16, 256], strides = [1, 1]} : vector<16x384xf32> to vector<16x256xf32>
      %328 = arith.addf %326, %327 : vector<16x256xf32>
      %329 = arith.negf %328 : vector<16x256xf32>
      %330 = math.exp %329 : vector<16x256xf32>
      %cst_113 = arith.constant 1.000000e+00 : f32
      %331 = vector.broadcast %cst_113 : f32 to vector<16x256xf32>
      %332 = arith.addf %331, %330 : vector<16x256xf32>
      %333 = arith.divf %331, %332 : vector<16x256xf32>
      %334 = vector.extract_strided_slice %333 {offsets = [0, 0], sizes = [16, 128], strides = [1, 1]} : vector<16x256xf32> to vector<16x128xf32>
      %335 = vector.extract_strided_slice %333 {offsets = [0, 128], sizes = [16, 128], strides = [1, 1]} : vector<16x256xf32> to vector<16x128xf32>
      %336 = vector.extract_strided_slice %323 {offsets = [0, 256], sizes = [16, 128], strides = [1, 1]} : vector<16x384xf32> to vector<16x128xf32>
      %337 = vector.extract_strided_slice %325 {offsets = [0, 256], sizes = [16, 128], strides = [1, 1]} : vector<16x384xf32> to vector<16x128xf32>
      %338 = arith.addf %337, %35 : vector<16x128xf32>
      %339 = arith.mulf %334, %338 : vector<16x128xf32>
      %340 = arith.addf %336, %339 : vector<16x128xf32>
      %341 = math.tanh %340 : vector<16x128xf32>
      %cst_114 = arith.constant 1.000000e+00 : f32
      %342 = vector.broadcast %cst_114 : f32 to vector<16x128xf32>
      %343 = arith.subf %342, %335 : vector<16x128xf32>
      %344 = arith.mulf %343, %341 : vector<16x128xf32>
      %345 = arith.mulf %335, %320 : vector<16x128xf32>
      %346 = arith.addf %344, %345 : vector<16x128xf32>
      %347 = arith.addi %13, %c6_i32 : i32
      %348 = vector.broadcast %347 : i32 to vector<16x1xi32>
      %349 = arith.cmpi sge, %348, %8 : vector<16x1xi32>
      %350 = vector.broadcast %347 : i32 to vector<16x1xi32>
      %351 = arith.cmpi slt, %350, %9 : vector<16x1xi32>
      %352 = arith.andi %349, %351 : vector<16x1xi1>
      %353 = vector.shape_cast %352 : vector<16x1xi1> to vector<16x1xi1>
      %354 = vector.broadcast %353 : vector<16x1xi1> to vector<16x128xi1>
      %355 = arith.select %354, %346, %320 : vector<16x128xi1>, vector<16x128xf32>
      %c0_115 = arith.constant 0 : index
      %c0_116 = arith.constant 0 : index
      %356 = vector.load %arg11[%c0_115, %c0_116] : memref<16x128xf32, #tpu.memory_space<vmem>>, vector<16x128xf32>
      tpu.vector_store %arg11[%c0_115, %c0_116], %355 {strides = array<i32>} : memref<16x128xf32, #tpu.memory_space<vmem>>, vector<16x128xf32>,
      %cst_117 = arith.constant 0.000000e+00 : f32
      %357 = vector.shape_cast %352 : vector<16x1xi1> to vector<16x1xi1>
      %358 = vector.broadcast %357 : vector<16x1xi1> to vector<16x128xi1>
      %359 = vector.broadcast %cst_117 : f32 to vector<16x128xf32>
      %360 = arith.select %358, %346, %359 : vector<16x128xi1>, vector<16x128xf32>
      %361 = arith.truncf %360 : vector<16x128xf32> to vector<16x128xbf16>
      %c0_118 = arith.constant 0 : index
      %362 = arith.index_cast %c6_i32 : i32 to index
      %c0_119 = arith.constant 0 : index
      %c0_120 = arith.constant 0 : index
      %363 = vector.load %arg9[%c0_118, %362, %c0_119, %c0_120] : memref<1x8x16x128xbf16, #tpu.memory_space<vmem>>, vector<1x1x16x128xbf16>
      %364 = vector.shape_cast %363 : vector<1x1x16x128xbf16> to vector<16x128xbf16>
      %365 = vector.shape_cast %361 : vector<16x128xbf16> to vector<1x1x16x128xbf16>
      tpu.vector_store %arg9[%c0_118, %362, %c0_119, %c0_120], %365 {strides = array<i32>} : memref<1x8x16x128xbf16, #tpu.memory_space<vmem>>, vector<1x1x16x128xbf16>,
      %c7_i32 = arith.constant 7 : i32
      %c0_121 = arith.constant 0 : index
      %c0_122 = arith.constant 0 : index
      %366 = vector.load %arg11[%c0_121, %c0_122] : memref<16x128xf32, #tpu.memory_space<vmem>>, vector<16x128xf32>
      %367 = arith.index_cast %c7_i32 : i32 to index
      %c0_123 = arith.constant 0 : index
      %c0_124 = arith.constant 0 : index
      %368 = vector.load %arg12[%367, %c0_123, %c0_124] : memref<8x16x384xf32, #tpu.memory_space<vmem>>, vector<1x16x384xf32>
      %369 = vector.shape_cast %368 : vector<1x16x384xf32> to vector<16x384xf32>
      %370 = arith.truncf %366 : vector<16x128xf32> to vector<16x128xbf16>
      %cst_125 = arith.constant dense<0.000000e+00> : vector<16x384xf32>
      %371 = tpu.matmul %370, %29, %cst_125 {dimension_numbers = #tpu.dot_dimension_numbers<[1], [0], [0], [1], [0, 0, 1, 1], [], []>} : vector<16x128xbf16>, vector<128x384xbf16>, vector<16x384xf32> -> vector<16x384xf32>
      %372 = vector.extract_strided_slice %369 {offsets = [0, 0], sizes = [16, 256], strides = [1, 1]} : vector<16x384xf32> to vector<16x256xf32>
      %373 = vector.extract_strided_slice %371 {offsets = [0, 0], sizes = [16, 256], strides = [1, 1]} : vector<16x384xf32> to vector<16x256xf32>
      %374 = arith.addf %372, %373 : vector<16x256xf32>
      %375 = arith.negf %374 : vector<16x256xf32>
      %376 = math.exp %375 : vector<16x256xf32>
      %cst_126 = arith.constant 1.000000e+00 : f32
      %377 = vector.broadcast %cst_126 : f32 to vector<16x256xf32>
      %378 = arith.addf %377, %376 : vector<16x256xf32>
      %379 = arith.divf %377, %378 : vector<16x256xf32>
      %380 = vector.extract_strided_slice %379 {offsets = [0, 0], sizes = [16, 128], strides = [1, 1]} : vector<16x256xf32> to vector<16x128xf32>
      %381 = vector.extract_strided_slice %379 {offsets = [0, 128], sizes = [16, 128], strides = [1, 1]} : vector<16x256xf32> to vector<16x128xf32>
      %382 = vector.extract_strided_slice %369 {offsets = [0, 256], sizes = [16, 128], strides = [1, 1]} : vector<16x384xf32> to vector<16x128xf32>
      %383 = vector.extract_strided_slice %371 {offsets = [0, 256], sizes = [16, 128], strides = [1, 1]} : vector<16x384xf32> to vector<16x128xf32>
      %384 = arith.addf %383, %35 : vector<16x128xf32>
      %385 = arith.mulf %380, %384 : vector<16x128xf32>
      %386 = arith.addf %382, %385 : vector<16x128xf32>
      %387 = math.tanh %386 : vector<16x128xf32>
      %cst_127 = arith.constant 1.000000e+00 : f32
      %388 = vector.broadcast %cst_127 : f32 to vector<16x128xf32>
      %389 = arith.subf %388, %381 : vector<16x128xf32>
      %390 = arith.mulf %389, %387 : vector<16x128xf32>
      %391 = arith.mulf %381, %366 : vector<16x128xf32>
      %392 = arith.addf %390, %391 : vector<16x128xf32>
      %393 = arith.addi %13, %c7_i32 : i32
      %394 = vector.broadcast %393 : i32 to vector<16x1xi32>
      %395 = arith.cmpi sge, %394, %8 : vector<16x1xi32>
      %396 = vector.broadcast %393 : i32 to vector<16x1xi32>
      %397 = arith.cmpi slt, %396, %9 : vector<16x1xi32>
      %398 = arith.andi %395, %397 : vector<16x1xi1>
      %399 = vector.shape_cast %398 : vector<16x1xi1> to vector<16x1xi1>
      %400 = vector.broadcast %399 : vector<16x1xi1> to vector<16x128xi1>
      %401 = arith.select %400, %392, %366 : vector<16x128xi1>, vector<16x128xf32>
      %c0_128 = arith.constant 0 : index
      %c0_129 = arith.constant 0 : index
      %402 = vector.load %arg11[%c0_128, %c0_129] : memref<16x128xf32, #tpu.memory_space<vmem>>, vector<16x128xf32>
      tpu.vector_store %arg11[%c0_128, %c0_129], %401 {strides = array<i32>} : memref<16x128xf32, #tpu.memory_space<vmem>>, vector<16x128xf32>,
      %cst_130 = arith.constant 0.000000e+00 : f32
      %403 = vector.shape_cast %398 : vector<16x1xi1> to vector<16x1xi1>
      %404 = vector.broadcast %403 : vector<16x1xi1> to vector<16x128xi1>
      %405 = vector.broadcast %cst_130 : f32 to vector<16x128xf32>
      %406 = arith.select %404, %392, %405 : vector<16x128xi1>, vector<16x128xf32>
      %407 = arith.truncf %406 : vector<16x128xf32> to vector<16x128xbf16>
      %c0_131 = arith.constant 0 : index
      %408 = arith.index_cast %c7_i32 : i32 to index
      %c0_132 = arith.constant 0 : index
      %c0_133 = arith.constant 0 : index
      %409 = vector.load %arg9[%c0_131, %408, %c0_132, %c0_133] : memref<1x8x16x128xbf16, #tpu.memory_space<vmem>>, vector<1x1x16x128xbf16>
      %410 = vector.shape_cast %409 : vector<1x1x16x128xbf16> to vector<16x128xbf16>
      %411 = vector.shape_cast %407 : vector<16x128xbf16> to vector<1x1x16x128xbf16>
      tpu.vector_store %arg9[%c0_131, %408, %c0_132, %c0_133], %411 {strides = array<i32>} : memref<1x8x16x128xbf16, #tpu.memory_space<vmem>>, vector<1x1x16x128xbf16>,
      %c8_i32_134 = arith.constant 8 : i32
    } else {
    }
    %c0_i32_8 = arith.constant 0 : i32
    %23 = arith.cmpi eq, %arg1, %c0_i32_8 : i32
    %24 = arith.extui %23 : i1 to i32
    %c0_i32_9 = arith.constant 0 : i32
    %25 = arith.cmpi ne, %24, %c0_i32_9 : i32
    scf.if %25 {
      %c0_10 = arith.constant 0 : index
      %c0_11 = arith.constant 0 : index
      %26 = vector.load %arg11[%c0_10, %c0_11] : memref<16x128xf32, #tpu.memory_space<vmem>>, vector<16x128xf32>
      %c0_12 = arith.constant 0 : index
      %c0_13 = arith.constant 0 : index
      %c0_14 = arith.constant 0 : index
      %27 = vector.load %arg10[%c0_12, %c0_13, %c0_14] : memref<1x16x128xf32, #tpu.memory_space<vmem>>, vector<1x16x128xf32>
      %28 = vector.shape_cast %27 : vector<1x16x128xf32> to vector<16x128xf32>
      %29 = vector.shape_cast %26 : vector<16x128xf32> to vector<1x16x128xf32>
      tpu.vector_store %arg10[%c0_12, %c0_13, %c0_14], %29 {strides = array<i32>} : memref<1x16x128xf32, #tpu.memory_space<vmem>>, vector<1x16x128xf32>,
    } else {
    }
    return
  }
  func.func @transform_0(%arg0: i32, %arg1: i32, %arg2: memref<1xi32, #tpu.memory_space<smem>>) -> (i32, i32) {
    %c0_i32 = arith.constant 0 : i32
    %c0_i32_0 = arith.constant 0 : i32
    %c0_i32_1 = arith.constant 0 : i32
    return %c0_i32, %c0_i32_0 : i32, i32
  }
  func.func @transform_1(%arg0: i32, %arg1: i32, %arg2: memref<1xi32, #tpu.memory_space<smem>>) -> (i32, i32, i32, i32) {
    %c0_i32 = arith.constant 0 : i32
    %c0_i32_0 = arith.constant 0 : i32
    %c0_i32_1 = arith.constant 0 : i32
    return %arg0, %arg1, %c0_i32, %c0_i32_0 : i32, i32, i32, i32
  }
  func.func @transform_2(%arg0: i32, %arg1: i32, %arg2: memref<1xi32, #tpu.memory_space<smem>>) -> (i32, i32, i32) {
    %c0_i32 = arith.constant 0 : i32
    %c0_i32_0 = arith.constant 0 : i32
    %c0_i32_1 = arith.constant 0 : i32
    return %arg0, %c0_i32, %c0_i32_0 : i32, i32, i32
  }
  func.func @transform_3(%arg0: i32, %arg1: i32, %arg2: memref<1xi32, #tpu.memory_space<smem>>) -> (i32, i32, i32) {
    %c0_i32 = arith.constant 0 : i32
    %c0_i32_0 = arith.constant 0 : i32
    %c0_i32_1 = arith.constant 0 : i32
    return %arg0, %c0_i32, %c0_i32_0 : i32, i32, i32
  }
  func.func @transform_4(%arg0: i32, %arg1: i32, %arg2: memref<1xi32, #tpu.memory_space<smem>>) -> (i32, i32, i32) {
    %c0_i32 = arith.constant 0 : i32
    %c0_i32_0 = arith.constant 0 : i32
    %c0_i32_1 = arith.constant 0 : i32
    return %arg0, %c0_i32, %c0_i32_0 : i32, i32, i32
  }
  func.func @transform_5(%arg0: i32, %arg1: i32, %arg2: memref<1xi32, #tpu.memory_space<smem>>) -> (i32, i32, i32) {
    %c0_i32 = arith.constant 0 : i32
    %c0_i32_0 = arith.constant 0 : i32
    %c0_i32_1 = arith.constant 0 : i32
    return %arg0, %c0_i32, %c0_i32_0 : i32, i32, i32
  }
  func.func @transform_6(%arg0: i32, %arg1: i32, %arg2: memref<1xi32, #tpu.memory_space<smem>>) -> (i32, i32, i32, i32) {
    %c0_i32 = arith.constant 0 : i32
    %c0_i32_0 = arith.constant 0 : i32
    %c0_i32_1 = arith.constant 0 : i32
    return %arg0, %arg1, %c0_i32, %c0_i32_0 : i32, i32, i32, i32
  }
  func.func @transform_7(%arg0: i32, %arg1: i32, %arg2: memref<1xi32, #tpu.memory_space<smem>>) -> (i32, i32, i32) {
    %c0_i32 = arith.constant 0 : i32
    %c0_i32_0 = arith.constant 0 : i32
    %c0_i32_1 = arith.constant 0 : i32
    return %arg0, %c0_i32, %c0_i32_0 : i32, i32, i32
  }
}

</mosaic_0001>

<bundles_post_ra>
// kernel: tpu_custom_call.1
= control target key start
LH: loop header
LB: loop body
LE: loop exit
PB: predicated region body
PF: predicated region fallthrough
CT: control target
= control target key end

     0   :  { %s5087_s0 = inlined_call_operand.<no memory space> [shape: s32[1], index: 0, kind: input, shape index: {}]   ;;  %s5088_s1 = inlined_call_operand.vmem [shape: s32[16,1], index: 1, kind: input, shape index: {}]   ;;  %s5089_s2 = inlined_call_operand.hbm [shape: bf16[2,8,16,128], index: 2, kind: input, shape index: {}]   ;;  %s5090_s3 = inlined_call_operand.hbm [shape: bf16[2,128,384], index: 3, kind: input, shape index: {}]   ;;  %s5091_s4 = inlined_call_operand.hbm [shape: bf16[2,128,384], index: 4, kind: input, shape index: {}]   ;;  %s5092_s5 = inlined_call_operand.vmem [shape: f32[2,1,384], index: 5, kind: input, shape index: {}]   ;;  %s5093_s6 = inlined_call_operand.vmem [shape: f32[2,1,128], index: 6, kind: input, shape index: {}]   ;;  %s5094_s7 = inlined_call_operand.hbm [shape: bf16[2,8,16,128], index: 7, kind: output, shape index: {0}]   ;;  %s5095_s8 = inlined_call_operand.hbm [shape: f32[2,16,128], index: 8, kind: output, shape index: {1}]  }
   0x1   :  { %5111 = sst [smem:[#allocation24_spill]] %s5089_s2 }
   0x2   :  { %5112 = sst [smem:[#allocation25_spill]] %s5090_s3 }
   0x3   :  { %14 = sst [smem:[#allocation5]] %s5087_s0 }
   0x4   :  { %15 = vsyncpa [#allocation7], 0 }
   0x5   :  { %17 = vsyncpa [#allocation7 + $0x1], 0 }
   0x6   :  { %18 = vsyncpa [#allocation10], 0 }
   0x7   :  { %20 = vsyncpa [#allocation10 + $0x1], 0 }
   0x8   :  { %21 = vsyncpa [#allocation8], 0 }
   0x9   :  { %23 = vsyncpa [#allocation8 + $0x1], 0 }
   0xa   :  { %24 = vsyncpa [#allocation14], 0 }
   0xb   :  { %26 = vsyncpa [#allocation14 + $0x1], 0  ;;  %s3976_s29 = smov 0   ;;  %s3978_s30 = smov 0  }
   0xc   :  { %s3980_s9 = smov 0   ;;  %s3982_s10 = smov 0  }
   0xd   :  { %s3984_s11 = smov 0   ;;  %s3986_s12 = smov 0  }
   0xe LB: > { %5113 = sst [smem:[#allocation19_spill]] %s3896_s9  ;;  %s4007_s0 = sadd.s32 4294967295, %s3908_s12   ;;  %s3908_s12 = sphi %s3986_s12, %s32_s12   ;;  %s3904_s11 = sphi %s3984_s11, %s5147_s11   ;;  %s3900_s10 = sphi %s3982_s10, %s5146_s10   ;;  %s3896_s9 = sphi %s3980_s9, %s5142_s9   ;;  %s3892_s30 = sphi %s3978_s30, %s5145_s30   ;;  %s3888_s29 = sphi %s3976_s29, %s5144_s29  }
   0xf   : > { %5114 = sst [smem:[#allocation20_spill]] %s3908_s12  ;;  %s2762_s13 = sadd.s32 4294967294, %s3908_s12  }
  0x10   : > { %s44_s14 = sadd.s32 1, %s3904_s11  ;;  %s74_s15 = sadd.s32 1, %s3896_s9 }
  0x11   : > { %p46_p0 = scmp.ge.s32.totalorder %s44_s14, 2  ;;  %p81_p1 = scmp.ne.s32.totalorder %s3896_s9, %s3892_s30 }
  0x12   : > { %p82_p2 = scmp.eq.s32.totalorder %s3908_s12, 0  ;;  %p87_p3 = scmp.ne.s32.totalorder %s3892_s30, %s3888_s29 }
  0x13   : > { %s5149_s14 = smov (%p46_p0, %s44_s14), 0  ;;  %p88_p5 = scmp.eq.s32.totalorder %s4007_s0, 0 }
  0x14   : > { %5115 = sst [smem:[#allocation21_spill]] %s5149_s14  ;;  %p4019_p4 = por %p82_p2, %p81_p1 }
  0x15   : > { %s69_s17 = ssub.s32 %s3904_s11, %s5149_s14  ;;  %p217_p6 = scmp.eq.s32.totalorder %s4007_s0, 1 }
  0x16   : > { %p72_p7 = scmp.eq.s32.totalorder %s69_s17, 0  ;;  %p4027_p8 = por %p88_p5, %p87_p3 }
  0x17   : > { %p4031_p9 = por %p217_p6, %p81_p1  ;;  %p223_p10 = scmp.eq.s32.totalorder %s2762_s13, 1 }
  0x18   : > { %s5117_s18 = scalar_select %p4027_p8, 1, 0 }
  0x19   : > { %s5118_s19 = scalar_select %p4031_p9, 1, 0 }
  0x1a   : > { %s4036_s20 = scalar_select %p72_p7, %s3896_s9, %s74_s15  }
  0x1b   : > { %p4038_p11 = por %p223_p10, %p87_p3  ;;  %p3378_p13 = scmp.lt.s32.totalorder %s3908_s12, 2 }
  0x1c   : > { %5119 = sst [smem:[#allocation22_spill]] %s4036_s20  ;;  %s4045_s22 = sand.u32 1, %s3896_s9  }
  0x1d   : > { %s5120_s21 = scalar_select %p4038_p11, 1, 0 }
  0x1e   : > { %s296_s23 = sand.u32 1, %s3908_s12   ;;  %s5097_s24 = smul.u32 192, %s4045_s22 }
  0x1f   : > { %5121 = sst [smem:[#allocation23_spill]] %s5120_s21  ;;  %p4051_p0 = pnand %p3378_p13, %p4019_p4 }
  0x20   : > { %s5098_s26 = smul.u32 3072, %s3904_s11  ;;  %s300_s27 = scalar_lea.vmem [#allocation9], %s5097_s24 }
  0x21   : > { %s307_s28 = sshll.u32 %s300_s27, 4  ;;  %s5123_s3 = sld [smem:[#allocation25_spill]]  ;;  %s4065_s28 = int_to_ptr.vmem [resolvable:$true] %s307_s28 }
  0x22   : > { %s4067_s16 = scalar_lea.sflag [#allocation10], %s296_s23  ;;  %p4073_p2 = pneg %p4051_p0 }
  0x27   : > { %s4063_s17 = scalar_lea.hbm %s5123_s3, %s5098_s26  ;;  %s3705_s15 = scalar_lea.hbm %s5123_s3, 6144 }
  0x28   : > { %s3700_s14 = scalar_lea.hbm %s4063_s17, 3072  ;;  %p3706_p5 = scmp.lt.u32.totalorder %s4063_s17, %s5123_s3 }
  0x29   : > { %p3701_p1 = scmp.ne.s32.totalorder %s4063_s17, %s3700_s14  ;;  %p3707_p6 = scmp.lt.u32.totalorder %s3705_s15, %s3700_s14 }
  0x2a   : > { %p3709_p10 = scmp.lt.u32.totalorder %s3700_s14, %s4063_s17 }
  0x2b   : > { %p3703_p3 = pnand %p4073_p2, %p3701_p1  ;;  %p3708_p7 = por %p3707_p6, %p3706_p5 }
  0x2d   : > { %p3704_p4 = pneg %p3703_p3  ;;  %p3710_p13 = por %p3709_p10, %p3708_p7 }
  0x2f   : > { %p3711_p12 = pnand %p3710_p13, %p3704_p4 }
  0x31   : > { %3714 = shalt.err (!%p3711_p12)
}
  0x32   : > { %s3715_s23 = scalar_lea.vmem %s4065_s28, 3072  ;;  %s3910_s27 = smov [#allocation9]  }
  0x33   : > { %p3716_p1 = scmp.ne.s32.totalorder %s4065_s28, %s3715_s23  ;;  %s3720_s13 = sshll.u32 %s3910_s27, 4  ;;  %s3721_s13 = int_to_ptr.vmem [resolvable:$false] %s3720_s13 }
  0x34   : > { %s3722_s20 = scalar_lea.vmem %s3721_s13, 6144  ;;  %p3723_p9 = scmp.lt.s32.totalorder %s4065_s28, %s3721_s13 }
  0x35   : > { %p3718_p3 = pnand %p3716_p1, %p4073_p2  ;;  %p3724_p8 = scmp.lt.s32.totalorder %s3722_s20, %s3715_s23 }
  0x37   : > { %p3719_p11 = pneg %p3718_p3  ;;  %p3725_p5 = por %p3724_p8, %p3723_p9 }
  0x39   : > { %p3726_p6 = pnand %p3725_p5, %p3719_p11 }
  0x3b   : > { %3729 = shalt.err (!%p3726_p6)
}
  0x3c   : > { %s5103_s14 = smov 192   ;;  %s5104_s26 = smov 12  }
  0x3d   : > { %3367 = dma.hbm_to_vmem [thread:$0]  (!%p4051_p0), %s4063_s17, 3072, %s4065_s28, %s4067_s16, %s5103_s14, %s5103_s14, %s5104_s26  }
  0x3e   : > { %p2770_p8 = scmp.ge.s32.totalorder %s3908_s12, 1  ;;  %p349_p9 = scmp.lt.s32.totalorder %s3908_s12, 3 }
  0x3f   : > { %s2765_s23 = sshll.u32 %s4045_s22, 6  ;;  %s2935_s27 = sshll.u32 %s3904_s11, 10 }
  0x40   : > { %p4102_p11 = pnand %p2770_p8, %p349_p9  ;;  %s5126_s2 = sld [smem:[#allocation24_spill]] }
  0x41   : > { %s276_s9 = scalar_lea.vmem [#allocation6], %s2765_s23  ;;  %s273_s28 = scalar_lea.sflag [#allocation7], %s4045_s22 }
  0x42   : > { %s5125_s15 = scalar_select %p4102_p11, 1, 0 }
  0x43   : > { %s286_s21 = sshll.u32 %s276_s9, 4  ;;  %s4113_s21 = int_to_ptr.vmem [resolvable:$true] %s286_s21 }
  0x46   : > { %s4111_s3 = scalar_lea.hbm %s5126_s2, %s2935_s27  ;;  %s3735_s13 = scalar_lea.hbm %s5126_s2, 2048 }
  0x47   : > { %s3730_s17 = scalar_lea.hbm %s4111_s3, 1024  ;;  %p3736_p10 = scmp.lt.u32.totalorder %s4111_s3, %s5126_s2 }
  0x48   : > { %p3731_p12 = scmp.ne.s32.totalorder %s4111_s3, %s3730_s17  ;;  %p3737_p13 = scmp.lt.u32.totalorder %s3735_s13, %s3730_s17 }
  0x49   : > { %p3739_p3 = scmp.lt.u32.totalorder %s3730_s17, %s4111_s3 }
  0x4a   : > { %p3733_p4 = pnand %p3731_p12, %p4073_p2  ;;  %p3738_p1 = por %p3737_p13, %p3736_p10 }
  0x4c   : > { %p3734_p7 = pneg %p3733_p4  ;;  %p3740_p5 = por %p3739_p3, %p3738_p1 }
  0x4e   : > { %p3741_p6 = pnand %p3740_p5, %p3734_p7 }
  0x50   : > { %3744 = shalt.err (!%p3741_p6)
}
  0x51   : > { %s3745_s9 = scalar_lea.vmem %s4113_s21, 1024  ;;  %s3913_s14 = smov [#allocation6]  }
  0x52   : > { %p3746_p8 = scmp.ne.s32.totalorder %s4113_s21, %s3745_s9  ;;  %s3750_s26 = sshll.u32 %s3913_s14, 4  ;;  %s3751_s26 = int_to_ptr.vmem [resolvable:$false] %s3750_s26 }
  0x53   : > { %s3752_s23 = scalar_lea.vmem %s3751_s26, 2048  ;;  %p3753_p4 = scmp.lt.s32.totalorder %s4113_s21, %s3751_s26 }
  0x54   : > { %p3748_p9 = pnand %p3746_p8, %p4073_p2  ;;  %p3754_p11 = scmp.lt.s32.totalorder %s3752_s23, %s3745_s9 }
  0x56   : > { %p3749_p12 = pneg %p3748_p9  ;;  %p3755_p10 = por %p3754_p11, %p3753_p4 }
  0x58   : > { %p3756_p13 = pnand %p3755_p10, %p3749_p12 }
  0x5a   : > { %3759 = shalt.err (!%p3756_p13)
}
  0x5b   : > { %s3914_s17 = smov 64   ;;  %s3915_s13 = smov 4  }
  0x5c   : > { %3364 = dma.hbm_to_vmem [thread:$0]  (!%p4051_p0), %s4111_s3, 1024, %s4113_s21, %s273_s28, %s3914_s17, %s3914_s17, %s3915_s13  }
  0x5d   : > { %s5127_s27 = smul.u32 3072, %s3904_s11  ;;  %s3765_s28 = scalar_lea.hbm %s5091_s4, 6144 }
  0x5e   : > { %s5128_s26 = smul.u32 192, %s4045_s22 }
  0x5f   : > { %s4144_s9 = scalar_lea.hbm %s5091_s4, %s5127_s27 }
  0x60   : > { %s321_s23 = scalar_lea.vmem [#allocation11], %s5128_s26  ;;  %s3760_s12 = scalar_lea.hbm %s4144_s9, 3072 }
  0x61   : > { %s328_s2 = sshll.u32 %s321_s23, 4  ;;  %p3761_p11 = scmp.ne.s32.totalorder %s4144_s9, %s3760_s12  ;;  %s4148_s2 = int_to_ptr.vmem [resolvable:$true] %s328_s2 }
  0x62   : > { %p3766_p3 = scmp.lt.u32.totalorder %s4144_s9, %s5091_s4  ;;  %p3767_p5 = scmp.lt.u32.totalorder %s3765_s28, %s3760_s12 }
  0x63   : > { %p3763_p7 = pnand %p3761_p11, %p4073_p2  ;;  %p3769_p8 = scmp.lt.u32.totalorder %s3760_s12, %s4144_s9 }
  0x64   : > { %p3768_p6 = por %p3767_p5, %p3766_p3 }
  0x65   : > { %p3764_p1 = pneg %p3763_p7 }
  0x66   : > { %p3770_p9 = por %p3769_p8, %p3768_p6 }
  0x68   : > { %p3771_p12 = pnand %p3770_p9, %p3764_p1 }
  0x6a   : > { %3774 = shalt.err (!%p3771_p12)
}
  0x6b   : > { %s3775_s22 = scalar_lea.vmem %s4148_s2, 3072  ;;  %s3916_s27 = smov [#allocation11]  }
  0x6c   : > { %p3776_p4 = scmp.ne.s32.totalorder %s4148_s2, %s3775_s22  ;;  %s3780_s20 = sshll.u32 %s3916_s27, 4  ;;  %s3781_s20 = int_to_ptr.vmem [resolvable:$false] %s3780_s20 }
  0x6d   : > { %s3782_s14 = scalar_lea.vmem %s3781_s20, 6144  ;;  %p3783_p11 = scmp.lt.s32.totalorder %s4148_s2, %s3781_s20 }
  0x6e   : > { %p3778_p10 = pnand %p3776_p4, %p4073_p2  ;;  %p3784_p7 = scmp.lt.s32.totalorder %s3782_s14, %s3775_s22 }
  0x70   : > { %p3779_p13 = pneg %p3778_p10  ;;  %p3785_p3 = por %p3784_p7, %p3783_p11 }
  0x72   : > { %p3786_p5 = pnand %p3785_p3, %p3779_p13 }
  0x74   : > { %3789 = shalt.err (!%p3786_p5)
}
  0x75   : > { %s5129_s12 = smov 12   ;;  %s5130_s26 = smov 192  }
  0x76   : > { %3370 = dma.hbm_to_vmem [thread:$0]  (!%p4051_p0), %s4144_s9, 3072, %s4148_s2, %s4067_s16, %s5130_s26, %s5130_s26, %s5129_s12  }
  0x77   : > { %p5131_p2 = scmp.ne.s32.totalorder %s5125_s15, 0 }
  0x78   : > { %s4178_s24 = sand.u32 (!%p5131_p2), 1, %s3892_s30   ;;  %p5132_p1 = scmp.ne.s32.totalorder (!%p5131_p2), %s5117_s18, 0 }
  0x79   : > { %353 = sbr.rel (%p5131_p2) target bundleno = 2417 (0x971), region = 44  ;;  %s2771_s23 = sshll.u32 (!%p5131_p2), %s4178_s24, 6 }
  0x7a   : > { %s356_s3 = scalar_lea.sflag (!%p5131_p2), [#allocation7], %s4178_s24  ;;  %s4184_s25 = scalar_lea.vmem (!%p5131_p2), [#allocation6], %s2771_s23 }
  0x80   : > { %3871 = dma.done.wait (%p5132_p1), %s356_s3, 1024  }
  0x81   : > { %3873 = vsyncadd (%p5132_p1), %s356_s3, 4294966272  ;;  %s364_s2 = sand.u32 1, %s4007_s0   ;;  %s3349_s16 = smul.u32 192, %s4178_s24 }
  0x82   : > { %s365_s15 = scalar_lea.sflag [#allocation10], %s364_s2 }
  0x83   : > { %s4192_s9 = scalar_lea.vmem [#allocation9], %s3349_s16 }
  0x84   : > { %3875 = dma.done.wait (%p5132_p1), %s365_s15, 6144  }
  0x85   : > { %3877 = vsyncadd (%p5132_p1), %s365_s15, 4294961152  ;;  %s446_s21 = sld [smem:[#allocation5]]  ;;  %s2773_s28 = sshll.u32 %s4178_s24, 4  ;;  %v3917_v0 = vmov 0.0   ;;  %v447_v1 = vld [vmem:[%s5088_s1] sm:$0xff]  ;;  %v448_v2 = vld [vmem:[%s5088_s1 + $0x8] sm:$0xff]  ;;  %v451_v3 = vstv %s3900_s10 }
  0x86   : > { %444 = vst [vmem:[#allocation2] sm:$0xff] %v3917_v0  ;;  %445 = vst [vmem:[#allocation2 + $0x8] sm:$0xff] %v3917_v0  ;;  %p431_p0 = scmp.lt.s32.totalorder %s3900_s10, 1  ;;  %v449_v4 = vsub.s32 8, %v447_v1  ;;  %v450_v5 = vsub.s32 8, %v448_v2  ;;  %s4233_s18 = scalar_lea.vmem [#allocation11], %s3349_s16 }
  0x87   : > { %s4239_s20 = scalar_lea.vmem [#allocation13], %s2773_s28 }
  0x88   : > { %s432_s0 = scalar_select %p431_p0, %s3900_s10, 1  ;;  %v4219_v6 = vmul.u32 %v451_v3, %v449_v4  ;;  %v4221_v7 = vmul.u32 %v451_v3, %v450_v5 }
  0x8a   : > { %s3350_s17 = smul.u32 3, %s432_s0  ;;  %s4204_s27 = scalar_lea.vmem %s5093_s6, %s432_s0  ;;  %v4224_v8 = vadd.s32 %v4219_v6, %v447_v1  ;;  %v4227_v9 = vadd.s32 %v4221_v7, %v448_v2 }
  0x8b   : > { %s456_s26 = ssub.s32 8, %s446_s21 }
  0x8c   : > { %s457_s3 = smul.u32 %s3900_s10, %s456_s26  ;;  %s4217_s13 = scalar_lea.vmem %s5092_s5, %s3350_s17 }
  0x8d   : > { %s4237_s17 = scalar_lea.vmem [#allocation12], %s2771_s23 }
  0x8e   : > { %s458_s0 = sadd.s32 %s457_s3, %s446_s21  ;;  %p2774_p6 = scmp.ge.s32.totalorder %s457_s3, 8 }
  0x8f   : > { %p2775_p8 = scmp.le.s32.totalorder %s458_s0, 0 }
  0x91   : > { %p4229_p9 = por %p2775_p8, %p2774_p6 }
  0x92   : > { %v3918_v10 = vmov (%p4229_p9), 0  }
  0x93   : > { %466 = sbr.rel (!%p4229_p9) target bundleno = 155 (0x9b), region = 64  ;;  %467 = vst [vmem:[%s4237_s17] sm:$0xf] (%p4229_p9), %v3918_v10  ;;  %468 = vst [vmem:[%s4237_s17 + $0x4] sm:$0xf] (%p4229_p9), %v3918_v10 }
  0x94   : > { %469 = vst [vmem:[%s4237_s17 + $0x8] sm:$0xf] (%p4229_p9), %v3918_v10  ;;  %470 = vst [vmem:[%s4237_s17 + $0xc] sm:$0xf] (%p4229_p9), %v3918_v10 }
  0x95   : > { %471 = vst [vmem:[%s4237_s17 + $0x10] sm:$0xf] (%p4229_p9), %v3918_v10  ;;  %472 = vst [vmem:[%s4237_s17 + $0x14] sm:$0xf] (%p4229_p9), %v3918_v10 }
  0x96   : > { %473 = vst [vmem:[%s4237_s17 + $0x18] sm:$0xf] (%p4229_p9), %v3918_v10  ;;  %474 = vst [vmem:[%s4237_s17 + $0x1c] sm:$0xf] (%p4229_p9), %v3918_v10 }
  0x97   : > { %475 = vst [vmem:[%s4237_s17 + $0x20] sm:$0xf] (%p4229_p9), %v3918_v10  ;;  %476 = vst [vmem:[%s4237_s17 + $0x24] sm:$0xf] (%p4229_p9), %v3918_v10 }
  0x98   : > { %477 = vst [vmem:[%s4237_s17 + $0x28] sm:$0xf] (%p4229_p9), %v3918_v10  ;;  %478 = vst [vmem:[%s4237_s17 + $0x2c] sm:$0xf] (%p4229_p9), %v3918_v10 }
  0x99   : > { %479 = vst [vmem:[%s4237_s17 + $0x30] sm:$0xf] (%p4229_p9), %v3918_v10  ;;  %480 = vst [vmem:[%s4237_s17 + $0x34] sm:$0xf] (%p4229_p9), %v3918_v10 }
  0x9a   : > { %481 = vst [vmem:[%s4237_s17 + $0x38] sm:$0xf] %v3918_v10  ;;  %482 = vst [vmem:[%s4237_s17 + $0x3c] sm:$0xf] %v3918_v10 }
  0x9b PF: > { %485 = sbr.rel (%p4229_p9) target bundleno = 2366 (0x93e), region = 68  ;;  %v3443_v11 = vld [vmem:[%s4192_s9 + $0x4] ss:$12 sps:$4 sm:$0xff] (!%p4229_p9)   ;;  %v3445_v12 = vld [vmem:[%s4192_s9] ss:$12 sps:$4 sm:$0xff] (!%p4229_p9)   ;;  %v5107_v13 = vmov (!%p4229_p9), 0  }
  0x9c   : > { %798 = vmatprep.mubr.bf16.mxu0 (!%p4229_p9), %v5107_v13  ;;  %3441 = vset.pattern.permute.xlu0 (!%p4229_p9), %v5107_v13  ;;  %v3446_v14 = vld [vmem:[%s4192_s9 + $0x1c] ss:$12 sps:$4 sm:$0xff] (!%p4229_p9)   ;;  %v3448_v15 = vld [vmem:[%s4192_s9 + $0x18] ss:$12 sps:$4 sm:$0xff] (!%p4229_p9)   ;;  %v3449_v16 = vld [vmem:[%s4192_s9 + $0x34] ss:$12 sps:$4 sm:$0xff] (!%p4229_p9)  }
  0x9d   : > { %766 = vmatprep.subr.bf16.mxu0 (!%p4229_p9), %v3443_v11  ;;  %3442 = vset.pattern.permute.xlu1 (!%p4229_p9), %v5107_v13  ;;  %v3451_v17 = vld [vmem:[%s4192_s9 + $0x30] ss:$12 sps:$4 sm:$0xff] (!%p4229_p9)   ;;  %v3452_v18 = vld [vmem:[%s4192_s9 + $0x4c] ss:$12 sps:$4 sm:$0xff] (!%p4229_p9)   ;;  %v3454_v19 = vld [vmem:[%s4192_s9 + $0x48] ss:$12 sps:$4 sm:$0xff] (!%p4229_p9)  }
  0x9e   : > { %767 = vmatpush1.bf16.msra.mxu0 (!%p4229_p9), %v3445_v12  ;;  %v3467_v20 = vld [vmem:[%s4184_s25] sm:$0xff] (!%p4229_p9)   ;;  %v3458_v23 = vld [vmem:[%s4192_s9 + $0x7c] ss:$12 sps:$4 sm:$0xff] (!%p4229_p9)   ;;  %v3464_v30 = vld [vmem:[%s4192_s9 + $0xac] ss:$12 sps:$4 sm:$0xff] (!%p4229_p9)   ;;  %vm2837_vm0 = vcmp.le.s32.totalorder (!%p4229_p9), %v4219_v6, 0 }
  0x9f   : > { %768 = vmatprep.subr.bf16.mxu0 (!%p4229_p9), %v3446_v14  ;;  %v3455_v21 = vld [vmem:[%s4192_s9 + $0x64] ss:$12 sps:$4 sm:$0xff] (!%p4229_p9)   ;;  %3105 = vmatprep.mubr.bf16.mxu1 (!%p4229_p9), %v3467_v20  ;;  %v3457_v22 = vld [vmem:[%s4192_s9 + $0x60] ss:$12 sps:$4 sm:$0xff] (!%p4229_p9)   ;;  %v3480_v25 = vld [vmem:[%s4192_s9 + $0x8] ss:$12 sps:$4 sm:$0xff] (!%p4229_p9)  }
  0xa0   : > { %v3460_v24 = vld [vmem:[%s4192_s9 + $0x78] ss:$12 sps:$4 sm:$0xff] (!%p4229_p9)   ;;  %v3461_v26 = vld [vmem:[%s4192_s9 + $0x94] ss:$12 sps:$4 sm:$0xff] (!%p4229_p9)   ;;  %3089 = vmatprep.subr.bf16.mxu1 (!%p4229_p9), %v3480_v25  ;;  %v3463_v28 = vld [vmem:[%s4192_s9 + $0x90] ss:$12 sps:$4 sm:$0xff] (!%p4229_p9)  }
  0xa1   : > { %v3484_v27 = vld [vmem:[%s4192_s9 + $0x20] ss:$12 sps:$4 sm:$0xff] (!%p4229_p9)   ;;  %3090 = vmatpush3.bf16.msra.mxu1 (!%p4229_p9), %v3480_v25  ;;  %v3486_v29 = vld [vmem:[%s4192_s9 + $0x38] ss:$12 sps:$4 sm:$0xff] (!%p4229_p9)   ;;  %v3466_v31 = vld [vmem:[%s4192_s9 + $0xa8] ss:$12 sps:$4 sm:$0xff] (!%p4229_p9)  }
  0xa2   : > { %769 = vmatpush1.bf16.msra.mxu0 %v3448_v15  ;;  %3091 = vmatprep.subr.bf16.mxu1 %v3484_v27  ;;  %v3490_v32 = vld [vmem:[%s4192_s9 + $0x50] ss:$12 sps:$4 sm:$0xff]   ;;  %v4289_v34 = vld [vmem:[%s4233_s18] ss:$12 sps:$4 sm:$0xff]   ;;  %v3492_v36 = vld [vmem:[%s4192_s9 + $0x68] ss:$12 sps:$4 sm:$0xff]  }
  0xa3   : > { %770 = vmatprep.subr.bf16.mxu0 %v3449_v16  ;;  %v4286_v33 = vld [vmem:[%s4233_s18 + $0x4] ss:$12 sps:$4 sm:$0xff]   ;;  %v4292_v35 = vld [vmem:[%s4233_s18 + $0x1c] ss:$12 sps:$4 sm:$0xff]   ;;  %v3496_v38 = vld [vmem:[%s4192_s9 + $0x80] ss:$12 sps:$4 sm:$0xff]  }
  0xa4   : > { %v4297_v37 = vld [vmem:[%s4233_s18 + $0x18] ss:$12 sps:$4 sm:$0xff]   ;;  %v4304_v39 = vld [vmem:[%s4233_s18 + $0x34] ss:$12 sps:$4 sm:$0xff]   ;;  %v3471_v40 = vld [vmem:[%s4184_s25 + $0x8] sm:$0xff]   ;;  %vm2839_vm1 = vcmp.gt.s32.totalorder %v4224_v8, 0 }
  0xa5   : > { %3092 = vmatpush3.bf16.msra.mxu1 %v3484_v27  ;;  %v4309_v41 = vld [vmem:[%s4233_s18 + $0x30] ss:$12 sps:$4 sm:$0xff]   ;;  %v4312_v42 = vld [vmem:[%s4233_s18 + $0x4c] ss:$12 sps:$4 sm:$0xff]   ;;  %vm2838_vm2 = vcmp.le.s32.totalorder %v4221_v7, 0  ;;  %vm2840_vm3 = vcmp.gt.s32.totalorder %v4227_v9, 0  ;;  %vm1294_vm4 = vmand %vm2837_vm0, %vm2839_vm1 }
  0xa6   : > { %771 = vmatpush1.bf16.msra.mxu0 %v3451_v17  ;;  %3093 = vmatprep.subr.bf16.mxu1 %v3486_v29  ;;  %v3498_v43 = vld [vmem:[%s4192_s9 + $0x98] ss:$12 sps:$4 sm:$0xff]   ;;  %v4321_v44 = vld [vmem:[%s4233_s18 + $0x48] ss:$12 sps:$4 sm:$0xff]   ;;  %v3502_v45 = vld [vmem:[%s4192_s9 + $0xb0] ss:$12 sps:$4 sm:$0xff]  }
  0xa7   : > { %772 = vmatprep.subr.bf16.mxu0 %v3452_v18  ;;  %v4328_v46 = vld [vmem:[%s4233_s18 + $0x64] ss:$12 sps:$4 sm:$0xff]   ;;  %v4337_v48 = vld [vmem:[%s4233_s18 + $0x60] ss:$12 sps:$4 sm:$0xff]   ;;  %v1296_v49 = vsel %vm1294_vm4, 1, %v5107_v13  ;;  %vm1295_vm5 = vmand %vm2838_vm2, %vm2840_vm3  ;;  %vm2859_vm6 = vcmp.le.s32.totalorder %v4219_v6, 2 }
  0xa8   : > { %v3475_v47 = vld [vmem:[%s4184_s25 + $0x10] sm:$0xff]   ;;  %v4346_v50 = vld [vmem:[%s4233_s18 + $0x7c] ss:$12 sps:$4 sm:$0xff]   ;;  %1299 = vperm.xlu0 %3441, %v1296_v49   ;;  %vm2861_vm7 = vcmp.gt.s32.totalorder %v4224_v8, 2  ;;  %v1297_v52 = vsel %vm1295_vm5, 1, %v5107_v13  ;;  %v5109_v55 = vmov 0.0  }
  0xa9   : > { %3094 = vmatpush3.bf16.msra.mxu1 %v3486_v29  ;;  %v4351_v51 = vld [vmem:[%s4233_s18 + $0x8] ss:$12 sps:$4 sm:$0xff]   ;;  %v4357_v53 = vld [vmem:[%s4233_s18 + $0x78] ss:$12 sps:$4 sm:$0xff]   ;;  %vm1639_vm8 = vmand %vm2859_vm6, %vm2861_vm7  ;;  %vm2871_vm9 = vcmp.le.s32.totalorder %v4219_v6, 3  ;;  %vm2873_vm10 = vcmp.gt.s32.totalorder %v4224_v8, 3 }
  0xaa   : > { %773 = vmatpush1.bf16.msra.mxu0 %v3454_v19  ;;  %3095 = vmatprep.subr.bf16.mxu1 %v3490_v32  ;;  %v4361_v54 = vld [vmem:[%s4233_s18 + $0x94] ss:$12 sps:$4 sm:$0xff]   ;;  %v3479_v56 = vld [vmem:[%s4184_s25 + $0x18] sm:$0xff]   ;;  %v1641_v58 = vsel %vm1639_vm8, 1, %v5107_v13  ;;  %vm1812_vm11 = vmand %vm2871_vm9, %vm2873_vm10  ;;  %vm2883_vm12 = vcmp.le.s32.totalorder %v4219_v6, 4  ;;  %vm2885_vm13 = vcmp.gt.s32.totalorder %v4224_v8, 4 }
  0xab   : > { %774 = vmatprep.subr.bf16.mxu0 %v3455_v21  ;;  %v4369_v57 = vld [vmem:[%s4233_s18 + $0x20] ss:$12 sps:$4 sm:$0xff]   ;;  %v4374_v59 = vld [vmem:[%s4233_s18 + $0x90] ss:$12 sps:$4 sm:$0xff]   ;;  %v4385_v61 = vld [vmem:[%s4233_s18 + $0x38] ss:$12 sps:$4 sm:$0xff]  }
  0xac   : > { %1302 = vperm.xlu0 %3441, %v1297_v52   ;;  %v4379_v60 = vld [vmem:[%s4233_s18 + $0xac] ss:$12 sps:$4 sm:$0xff]   ;;  %v1814_v62 = vsel %vm1812_vm11, 1, %v5107_v13  ;;  %v4391_v63 = vld [vmem:[%s4233_s18 + $0xa8] ss:$12 sps:$4 sm:$0xff]   ;;  %vm1985_vm14 = vmand %vm2883_vm12, %vm2885_vm13  ;;  %vm2895_vm15 = vcmp.le.s32.totalorder %v4219_v6, 5 }
  0xad   : > { %3096 = vmatpush3.bf16.msra.mxu1 %v3490_v32  ;;  %v3485_v0 = vld [vmem:[%s4184_s25 + $0x20] sm:$0xff]   ;;  %vm2897_vm0 = vcmp.gt.s32.totalorder %v4224_v8, 5  ;;  %v4400_v1 = vld [vmem:[%s4233_s18 + $0x50] ss:$12 sps:$4 sm:$0xff]   ;;  %v1987_v2 = vsel %vm1985_vm14, 1, %v5107_v13  ;;  %vm2907_vm2 = vcmp.le.s32.totalorder %v4219_v6, 6 }
  0xae   : > { %775 = vmatpush1.bf16.msra.mxu0 %v3457_v22  ;;  %3097 = vmatprep.subr.bf16.mxu1 %v3492_v36  ;;  %vm2158_vm1 = vmand %vm2895_vm15, %vm2897_vm0  ;;  %vm2909_vm3 = vcmp.gt.s32.totalorder %v4224_v8, 6  ;;  %v4410_v3 = vld [vmem:[%s4233_s18 + $0x68] ss:$12 sps:$4 sm:$0xff]   ;;  %vm2919_vm5 = vcmp.le.s32.totalorder %v4219_v6, 7  ;;  %vm2921_vm6 = vcmp.gt.s32.totalorder %v4224_v8, 7  ;;  %v3503_v16 = vld [vmem:[%s4184_s25 + $0x38] sm:$0xff]  }
  0xaf   : > { %776 = vmatprep.subr.bf16.mxu0 %v3458_v23  ;;  %v2160_v4 = vsel %vm2158_vm1, 1, %v5107_v13  ;;  %v3491_v5 = vld [vmem:[%s4184_s25 + $0x28] sm:$0xff]   ;;  %vm2331_vm4 = vmand %vm2907_vm2, %vm2909_vm3  ;;  %v3497_v10 = vld [vmem:[%s4184_s25 + $0x30] sm:$0xff]   ;;  %vm3921_vm8 = vmmov 0   ;;  %vm2847_vm9 = vcmp.le.s32.totalorder %v4219_v6, 1  ;;  %vm2849_vm10 = vcmp.gt.s32.totalorder %v4224_v8, 1 }
  0xb0   : > { %1644 = vperm.xlu0 %3441, %v1641_v58   ;;  %v4421_v11 = vld [vmem:[%s4233_s18 + $0x80] ss:$12 sps:$4 sm:$0xff]   ;;  %v2333_v12 = vsel %vm2331_vm4, 1, %v5107_v13  ;;  %vm2504_vm7 = vmand %vm2919_vm5, %vm2921_vm6  ;;  %v4427_v14 = vld [vmem:[%s4233_s18 + $0x98] ss:$12 sps:$4 sm:$0xff]   ;;  %vm2848_vm11 = vcmp.le.s32.totalorder %v4221_v7, 1  ;;  %v575_v23 = vlaneseq }
  0xb1   : > { %3098 = vmatpush3.bf16.msra.mxu1 %v3492_v36  ;;  %v2506_v15 = vsel %vm2504_vm7, 1, %v5107_v13  ;;  %v4435_v17 = vld [vmem:[%s4233_s18 + $0xb0] ss:$12 sps:$4 sm:$0xff]   ;;  %vm2850_vm12 = vcmp.gt.s32.totalorder %v4227_v9, 1  ;;  %vm1466_vm13 = vmand %vm2847_vm9, %vm2849_vm10  ;;  %vm2860_vm15 = vcmp.le.s32.totalorder %v4221_v7, 2  ;;  %vm2862_vm0 = vcmp.gt.s32.totalorder %v4227_v9, 2 }
  0xb2   : > { %777 = vmatpush1.bf16.msra.mxu0 %v3460_v24  ;;  %3099 = vmatprep.subr.bf16.mxu1 %v3496_v38  ;;  %v4440_v18 = vld [vmem:[#allocation2] sm:$0xff]  ;;  %v4442_v19 = vld [vmem:[#allocation2 + $0x8] sm:$0xff]  ;;  %v1468_v21 = vsel %vm1466_vm13, 1, %v5107_v13  ;;  %vm1467_vm14 = vmand %vm2848_vm11, %vm2850_vm12  ;;  %vm2872_vm2 = vcmp.le.s32.totalorder %v4221_v7, 3  ;;  %vm2874_vm3 = vcmp.gt.s32.totalorder %v4227_v9, 3  ;;  %vm2884_vm5 = vcmp.le.s32.totalorder %v4221_v7, 4 }
  0xb3   : > { %778 = vmatprep.subr.bf16.mxu0 %v3461_v26  ;;  %1471 = vperm.xlu1 %3442, %v1468_v21   ;;  %v1469_v22 = vsel %vm1467_vm14, 1, %v5107_v13  ;;  %vm1640_vm1 = vmand %vm2860_vm15, %vm2862_vm0  ;;  %vm2886_vm6 = vcmp.gt.s32.totalorder %v4227_v9, 4  ;;  %vm2896_vm9 = vcmp.le.s32.totalorder %v4221_v7, 5  ;;  %vm2898_vm10 = vcmp.gt.s32.totalorder %v4227_v9, 5 }
  0xb4   : > { %1817 = vperm.xlu0 %3441, %v1814_v62   ;;  %v1642_v6 = vsel %vm1640_vm1, 1, %v5107_v13  ;;  %vm1813_vm4 = vmand %vm2872_vm2, %vm2874_vm3  ;;  %vm2908_vm12 = vcmp.le.s32.totalorder %v4221_v7, 6  ;;  %vm2910_vm13 = vcmp.gt.s32.totalorder %v4227_v9, 6  ;;  %v576_v25 = vshrl.u32 %v575_v23, 7 }
  0xb5   : > { %3100 = vmatpush3.bf16.msra.mxu1 %v3496_v38  ;;  %v1815_v8 = vsel %vm1813_vm4, 1, %v5107_v13  ;;  %vm1986_vm7 = vmand %vm2884_vm5, %vm2886_vm6  ;;  %vm2920_vm15 = vcmp.le.s32.totalorder %v4221_v7, 7  ;;  %vm2922_vm0 = vcmp.gt.s32.totalorder %v4227_v9, 7 }
  0xb6   : > { %779 = vmatpush1.bf16.msra.mxu0 %v3463_v28  ;;  %3101 = vmatprep.subr.bf16.mxu1 %v3498_v43  ;;  %v1988_v24 = vsel %vm1986_vm7, 1, %v5107_v13  ;;  %vm2159_vm11 = vmand %vm2896_vm9, %vm2898_vm10  ;;  %v585_v27 = vsub.s32 2, %v576_v25  ;;  %v550_v28 = vld [vmem:[%s4217_s13] sm:$0x7] }
  0xb7   : > { %780 = vmatprep.subr.bf16.mxu0 %v3464_v30  ;;  %1474 = vperm.xlu1 %3442, %v1469_v22   ;;  %v2161_v26 = vsel %vm2159_vm11, 1, %v5107_v13  ;;  %vm2332_vm14 = vmand %vm2908_vm12, %vm2910_vm13 }
  0xb8   : > { %1990 = vperm.xlu0 %3441, %v1987_v2   ;;  %v2334_v29 = vsel %vm2332_vm14, 1, %v5107_v13  ;;  %vm2505_vm1 = vmand %vm2920_vm15, %vm2922_vm0  ;;  %v4509_v30 = vrot.slane %v550_v28, %v585_v27 }
  0xb9   : > { %3102 = vmatpush3.bf16.msra.mxu1 %v3498_v43 }
  0xba   : > { %781 = vmatpush1.bf16.msra.mxu0 %v3466_v31  ;;  %3103 = vmatprep.subr.bf16.mxu1 %v3502_v45  ;;  %v2507_v31 = vsel %vm2505_vm1, 1, %v5107_v13 }
  0xbb   : > { %1161 = vmatprep.subr.bf16.mxu0 %v4286_v33  ;;  %1647 = vperm.xlu1 %3442, %v1642_v6  }
  0xbc   : > { %2163 = vperm.xlu0 %3441, %v2160_v4  }
  0xbd   : > { %799 = vmatmul.mubr.bf16.vlgmr.msra.gmra.mrb[0].mxu0 %v3467_v20  ;;  %3104 = vmatpush3.bf16.msra.mxu1 %v3502_v45  ;;  %v1032_v20 = vpack.c.bf16 %v4442_v19, %v4440_v18 }
  0xbe   : > { %1162 = vmatpush1.bf16.msra.mxu0 %v4289_v34  ;;  %808 = vmatprep.mubr.bf16.mxu0 %v5107_v13 }
  0xbf   : > { %1163 = vmatprep.subr.bf16.mxu0 %v4292_v35  ;;  %3121 = vmatprep.subr.bf16.mxu1 %v5109_v55 }
  0xc0   : > { %3106 = vmatmul.mubr.bf16.vlgmr.msra.gmra.mrb[0].mxu1 %v3471_v40  ;;  %2336 = vperm.xlu0 %3441, %v2333_v12  }
  0xc1   : > { %3122 = vmatpush3.bf16.msra.mxu1 %v4351_v51  ;;  %3109 = vmatprep.mubr.bf16.mxu1 %v3475_v47 }
  0xc2   : > { %1164 = vmatpush1.bf16.msra.mxu0 %v4297_v37  ;;  %3123 = vmatprep.subr.bf16.mxu1 %v5109_v55 }
  0xc3   : > { %1165 = vmatprep.subr.bf16.mxu0 %v4304_v39  ;;  %1820 = vperm.xlu1 %3442, %v1815_v8  }
  0xc4   : > { %2509 = vperm.xlu0 %3441, %v2506_v15  }
  0xc5   : > { %809 = vmatmul.mubr.bf16.gmra.mrb[4].mxu0 %v3471_v40  ;;  %3124 = vmatpush3.bf16.msra.mxu1 %v4369_v57 }
  0xc6   : > { %818 = vmatprep.mubr.bf16.mxu0 %v5107_v13  ;;  %1166 = vmatpush1.bf16.msra.mxu0 %v4309_v41 }
  0xc7   : > { %1167 = vmatprep.subr.bf16.mxu0 %v4312_v42  ;;  %3125 = vmatprep.subr.bf16.mxu1 %v5109_v55 }
  0xc8   : > { %3110 = vmatmul.mubr.bf16.gmra.mrb[4].mxu1 %v3479_v56  ;;  %1993 = vperm.xlu1 %3442, %v1988_v24  }
  0xc9   : > { %3126 = vmatpush3.bf16.msra.mxu1 %v4385_v61  ;;  %3113 = vmatprep.mubr.bf16.mxu1 %v3485_v0 }
  0xca   : > { %1168 = vmatpush1.bf16.msra.mxu0 %v4321_v44  ;;  %3127 = vmatprep.subr.bf16.mxu1 %v5109_v55 }
  0xcb   : > { %1169 = vmatprep.subr.bf16.mxu0 %v4328_v46 }
  0xcc   : > { %2166 = vperm.xlu1 %3442, %v2161_v26  }
  0xcd   : > { %819 = vmatmul.mubr.bf16.gmra.mrb[8].mxu0 %v3475_v47  ;;  %3128 = vmatpush3.bf16.msra.mxu1 %v4400_v1 }
  0xce   : > { %828 = vmatprep.mubr.bf16.mxu0 %v5107_v13  ;;  %1170 = vmatpush1.bf16.msra.mxu0 %v4337_v48 }
  0xcf   : > { %1171 = vmatprep.subr.bf16.mxu0 %v4346_v50  ;;  %3129 = vmatprep.subr.bf16.mxu1 %v5109_v55 }
  0xd0   : > { %3114 = vmatmul.mubr.bf16.gmra.mrb[8].mxu1 %v3491_v5  ;;  %2339 = vperm.xlu1 %3442, %v2334_v29  }
  0xd1   : > { %3130 = vmatpush3.bf16.msra.mxu1 %v4410_v3  ;;  %3117 = vmatprep.mubr.bf16.mxu1 %v3497_v10 }
  0xd2   : > { %1172 = vmatpush1.bf16.msra.mxu0 %v4357_v53  ;;  %3131 = vmatprep.subr.bf16.mxu1 %v5109_v55 }
  0xd3   : > { %1173 = vmatprep.subr.bf16.mxu0 %v4361_v54 }
  0xd4   : > { %2512 = vperm.xlu1 %3442, %v2507_v31  }
  0xd5   : > { %829 = vmatmul.mubr.bf16.gmra.mrb[12].mxu0 %v3479_v56  ;;  %3132 = vmatpush3.bf16.msra.mxu1 %v4421_v11 }
  0xd6   : > { %838 = vmatprep.mubr.bf16.mxu0 %v5107_v13  ;;  %1174 = vmatpush1.bf16.msra.mxu0 %v4374_v59 }
  0xd7   : > { %1175 = vmatprep.subr.bf16.mxu0 %v4379_v60  ;;  %3133 = vmatprep.subr.bf16.mxu1 %v5109_v55 }
  0xd8   : > { %3118 = vmatmul.mubr.bf16.gmra.mrb[12].mxu1 %v3503_v16 }
  0xd9   : > { %3134 = vmatpush3.bf16.msra.mxu1 %v4427_v14  ;;  %3137 = vmatprep.mubr.msk.bf16.mxu1 %vm3921_vm8, %v5109_v55 }
  0xda   : > { %1176 = vmatpush1.bf16.msra.mxu0 %v4391_v63  ;;  %3135 = vmatprep.subr.bf16.mxu1 %v5109_v55 }
  0xdb   : > { %1332 = vmatprep.subr.bf16.mxu0 %v4286_v33 }
  0xdd   : > { %839 = vmatmul.mubr.bf16.gmra.mrb[16].mxu0 %v3485_v0  ;;  %3136 = vmatpush3.bf16.msra.mxu1 %v4435_v17 }
  0xde   : > { %848 = vmatprep.mubr.bf16.mxu0 %v5107_v13  ;;  %3141 = vmatprep.subr.bf16.mxu1 %v5109_v55 }
  0xe0   : > { %3138 = vmatmul.mubr.bf16.vlgmr.msra.gmra.mrb[16].mxu1 %v1032_v20 }
  0xe1   : > { %3142 = vmatpush3.bf16.msra.mxu1 %v4351_v51  ;;  %3157 = vmatprep.mubr.msk.bf16.mxu1 %vm3921_vm8, %v5109_v55 }
  0xe2   : > { %3143 = vmatprep.subr.bf16.mxu1 %v5109_v55 }
  0xe5   : > { %849 = vmatmul.mubr.bf16.gmra.mrb[20].mxu0 %v3491_v5  ;;  %3144 = vmatpush3.bf16.msra.mxu1 %v4369_v57 }
  0xe6   : > { %858 = vmatprep.mubr.bf16.mxu0 %v5107_v13  ;;  %3145 = vmatprep.subr.bf16.mxu1 %v5109_v55 }
  0xe9   : > { %3146 = vmatpush3.bf16.msra.mxu1 %v4385_v61 }
  0xea   : > { %3147 = vmatprep.subr.bf16.mxu1 %v5109_v55 }
  0xed   : > { %859 = vmatmul.mubr.bf16.gmra.mrb[24].mxu0 %v3497_v10  ;;  %3148 = vmatpush3.bf16.msra.mxu1 %v4400_v1 }
  0xee   : > { %868 = vmatprep.mubr.bf16.mxu0 %v5107_v13  ;;  %3149 = vmatprep.subr.bf16.mxu1 %v5109_v55 }
  0xf1   : > { %3150 = vmatpush3.bf16.msra.mxu1 %v4410_v3 }
  0xf2   : > { %3151 = vmatprep.subr.bf16.mxu1 %v5109_v55 }
  0xf5   : > { %869 = vmatmul.mubr.bf16.gmra.mrb[28].mxu0 %v3503_v16  ;;  %3152 = vmatpush3.bf16.msra.mxu1 %v4421_v11 }
  0xf6   : > { %1193 = vmatprep.mubr.bf16.mxu0 %v5107_v13  ;;  %3153 = vmatprep.subr.bf16.mxu1 %v5109_v55 }
  0xf9   : > { %3154 = vmatpush3.bf16.msra.mxu1 %v4427_v14 }
  0xfa   : > { %3155 = vmatprep.subr.bf16.mxu1 %v5109_v55 }
  0xfd   : > { %1194 = vmatmul.mubr.bf16.vlgmr.msra.gmra.mrb[0].mxu0 %v1032_v20  ;;  %3156 = vmatpush3.bf16.msra.mxu1 %v4435_v17 }
  0xfe   : > { %1333 = vmatpush1.bf16.msra.mxu0 %v4289_v34  ;;  %1364 = vmatprep.mubr.bf16.mxu0 %v5107_v13 }
  0xff   : > { %1334 = vmatprep.subr.bf16.mxu0 %v4292_v35  ;;  %3161 = vmatprep.subr.bf16.mxu1 %v5109_v55 }
 0x102   : > { %1335 = vmatpush1.bf16.msra.mxu0 %v4297_v37 }
 0x103   : > { %1336 = vmatprep.subr.bf16.mxu0 %v4304_v39 }
 0x106   : > { %1337 = vmatpush1.bf16.msra.mxu0 %v4309_v41 }
 0x107   : > { %1338 = vmatprep.subr.bf16.mxu0 %v4312_v42 }
 0x10a   : > { %1339 = vmatpush1.bf16.msra.mxu0 %v4321_v44 }
 0x10b   : > { %1340 = vmatprep.subr.bf16.mxu0 %v4328_v46 }
 0x10e   : > { %1341 = vmatpush1.bf16.msra.mxu0 %v4337_v48 }
 0x10f   : > { %1342 = vmatprep.subr.bf16.mxu0 %v4346_v50 }
 0x112   : > { %1343 = vmatpush1.bf16.msra.mxu0 %v4357_v53 }
 0x113   : > { %1344 = vmatprep.subr.bf16.mxu0 %v4361_v54 }
 0x116   : > { %1345 = vmatpush1.bf16.msra.mxu0 %v4374_v59 }
 0x117   : > { %1346 = vmatprep.subr.bf16.mxu0 %v4379_v60 }
 0x11a   : > { %1347 = vmatpush1.bf16.msra.mxu0 %v4391_v63 }
 0x11b   : > { %1505 = vmatprep.subr.bf16.mxu0 %v4286_v33 }
 0x193   : > { %v3107_v32 = vpop.f32.mrb[0].mxu1 }
 0x194   : > { %v4513_v36 = vadd.f32 %v3107_v32, %v4509_v30  ;;  %v4515_v38 = vpop.f32.mrb[1].mxu1 }
 0x195   : > { %v3108_v7 = vpop.f32.mrb[2].mxu1 }
 0x196   : > { %v4518_v9 = vadd.f32 %v3108_v7, %v4509_v30  ;;  %v4520_v40 = vpop.f32.mrb[3].mxu1  ;;  %v577_v7 = vsub.s32 0, %v576_v25 }
 0x19b   : > { %v3111_v43 = vpop.f32.mrb[4].mxu1 }
 0x19c   : > { %v4523_v45 = vadd.f32 %v3111_v43, %v4509_v30  ;;  %v929_v47 = vpop.f32.mrb[5].mxu1  ;;  %v581_v43 = vsub.s32 1, %v576_v25 }
 0x19d   : > { %v4526_v49 = vadd.f32 %v929_v47, %v4509_v30  ;;  %v3112_v52 = vpop.f32.mrb[6].mxu1  ;;  %v4558_v47 = vrot.slane %v550_v28, %v577_v7 }
 0x19e   : > { %v4529_v56 = vadd.f32 %v3112_v52, %v4509_v30  ;;  %v932_v58 = vpop.f32.mrb[7].mxu1 }
 0x19f   : > { %v4532_v62 = vadd.f32 %v932_v58, %v4509_v30  ;;  %v4560_v58 = vrot.slane %v550_v28, %v581_v43 }
 0x1a3   : > { %v3115_v0 = vpop.f32.mrb[8].mxu1 }
 0x1a4   : > { %v4535_v2 = vadd.f32 %v3115_v0, %v4509_v30  ;;  %v945_v4 = vpop.f32.mrb[9].mxu1 }
 0x1a5   : > { %v4538_v5 = vadd.f32 %v945_v4, %v4509_v30  ;;  %v3116_v10 = vpop.f32.mrb[10].mxu1 }
 0x1a6   : > { %v4541_v12 = vadd.f32 %v3116_v10, %v4509_v30  ;;  %v948_v15 = vpop.f32.mrb[11].mxu1 }
 0x1a7   : > { %v4544_v16 = vadd.f32 %v948_v15, %v4509_v30 }
 0x1ab   : > { %v3119_v20 = vpop.f32.mrb[12].mxu1 }
 0x1ac   : > { %v4547_v21 = vadd.f32 %v3119_v20, %v4509_v30  ;;  %v961_v22 = vpop.f32.mrb[13].mxu1 }
 0x1ad   : > { %v4550_v6 = vadd.f32 %v961_v22, %v4509_v30  ;;  %v3120_v8 = vpop.f32.mrb[14].mxu1 }
 0x1ae   : > { %v4553_v23 = vadd.f32 %v3120_v8, %v4509_v30  ;;  %v964_v24 = vpop.f32.mrb[15].mxu1 }
 0x1af   : > { %v4556_v26 = vadd.f32 %v964_v24, %v4509_v30 }
 0x1b3   : > { %v1238_v27 = vpop.f32.mrb[16].mxu1 }
 0x1b4   : > { %v3139_v29 = vpop.f32.mrb[17].mxu1 }
 0x1b5   : > { %v1241_v31 = vpop.f32.mrb[18].mxu1 }
 0x1b6   : > { %v3140_v32 = vpop.f32.mrb[19].mxu1 }
 0x1d0   : > { %v1195_v52 = vpop.f32.mrb[0].mxu0 }
 0x1d1   : > { %v3281_v0 = vadd.f32 %v1195_v52, %v4558_v47  ;;  %v1197_v4 = vpop.f32.mrb[1].mxu0 }
 0x1d2   : > { %v1199_v10 = vpop.f32.mrb[2].mxu0  ;;  %v3282_v8 = vadd.f32 %v1197_v4, %v4560_v58 }
 0x1d3   : > { %v2833_v15 = vmul.f32 -1.442695, %v3281_v0  ;;  %v3283_v20 = vadd.f32 %v1199_v10, %v4558_v47  ;;  %v1201_v22 = vpop.f32.mrb[3].mxu0  ;;  %v4567_v10 = vld [vmem:[%s4204_s27] ss:$0 sm:$0xff] }
 0x1d4   : > { %v3284_v25 = vadd.f32 %v1201_v22, %v4560_v58  ;;  %v2834_v29 = vmul.f32 -1.442695, %v3282_v8  ;;  %v914_v8 = vadd.f32 %v4515_v38, %v4509_v30 }
 0x1d5   : > { %3515 = vpow2.f32 %v2833_v15  ;;  %v2835_v24 = vmul.f32 -1.442695, %v3283_v20  ;;  %v1273_v15 = vadd.f32 %v4567_v10, %v1238_v27 }
 0x1d6   : > { %v2836_v32 = vmul.f32 -1.442695, %v3284_v25  ;;  %v1274_v25 = vadd.f32 %v4567_v10, %v1241_v31 }
 0x1d7   : > { %3517 = vpow2.f32 %v2835_v24 }
 0x1d8   : > { %3519 = vpow2.f32 %v2834_v29 }
 0x1d9   : > { %3521 = vpow2.f32 %v2836_v32  ;;  %v917_v32 = vadd.f32 %v4520_v40, %v4509_v30 }
 0x1df   : > { %v3516_v28 = vpop.eup %3515 }
 0x1e0   : > { %v1261_v7 = vadd.f32 1.0, %v3516_v28 }
 0x1e1   : > { %v3518_v43 = vpop.eup %3517 }
 0x1e2   : > { %3523 = vrcp.f32 %v1261_v7  ;;  %v1263_v52 = vadd.f32 1.0, %v3518_v43  ;;  %v3520_v0 = vpop.eup %3519 }
 0x1e3   : > { %v3522_v4 = vpop.eup %3521  ;;  %v1262_v13 = vadd.f32 1.0, %v3520_v0 }
 0x1e4   : > { %3525 = vrcp.f32 %v1263_v52  ;;  %v1264_v20 = vadd.f32 1.0, %v3522_v4  ;;  %v1300_v4 = vpop.permute.xlu0 %1299 }
 0x1e5   : > { %3527 = vrcp.f32 %v1262_v13  ;;  %vm1304_vm2 = vcmp.eq.s32.totalorder %v1300_v4, 1 }
 0x1e6   : > { %3529 = vrcp.f32 %v1264_v20 }
 0x1e8   : > { %v1303_v20 = vpop.permute.xlu0 %1302 }
 0x1e9   : > { %vm1305_vm3 = vcmp.eq.s32.totalorder %v1303_v20, 1 }
 0x1ec   : > { %v3524_v22 = vpop.eup %3523 }
 0x1ed   : > { %v1275_v24 = vmul.f32 %v3524_v22, %v1273_v15 }
 0x1ee   : > { %v3526_v29 = vpop.eup %3525 }
 0x1ef   : > { %v1277_v28 = vadd.f32 %v1275_v24, %v914_v8  ;;  %v1276_v7 = vmul.f32 %v3526_v29, %v1274_v25  ;;  %v3528_v27 = vpop.eup %3527 }
 0x1f0   : > { %v3530_v52 = vpop.eup %3529  ;;  %v1281_v0 = vsub.f32 1.0, %v3528_v27  ;;  %v1285_v13 = vmul.f32 %v3528_v27, %v4440_v18 }
 0x1f1   : > { %3531 = vtanh.f32 %v1277_v28  ;;  %v1278_v43 = vadd.f32 %v1276_v7, %v917_v32  ;;  %v1282_v38 = vsub.f32 1.0, %v3530_v52  ;;  %v1286_v22 = vmul.f32 %v3530_v52, %v4442_v19 }
 0x1f2   : > { %v5135_v7 = vmov 0  }
 0x1f3   : > { %3533 = vtanh.f32 %v1278_v43 }
 0x1fb   : > { %v3532_v55 = vpop.eup %3531 }
 0x1fc   : > { %v1283_v31 = vmul.f32 %v3532_v55, %v1281_v0 }
 0x1fd   : > { %v3534_v15 = vpop.eup %3533 }
 0x1fe   : > { %v1287_v30 = vadd.f32 %v1285_v13, %v1283_v31  ;;  %v1284_v40 = vmul.f32 %v3534_v15, %v1282_v38 }
 0x200   : > { %v1288_v8 = vadd.f32 %v1286_v22, %v1284_v40  ;;  %v4578_v24 = vsel %vm1304_vm2, %v1287_v30, %v4440_v18  ;;  %v1310_v25 = vsel %vm1304_vm2, %v1287_v30, 0.0  ;;  %v5134_v18 = vmov 0.0  }
 0x202   : > { %v4581_v29 = vsel %vm1305_vm3, %v1288_v8, %v4442_v19  ;;  %v1311_v32 = vsel %vm1305_vm3, %v1288_v8, 0.0 }
 0x203   : > { %v2957_v28 = vpack.c.bf16 %v1311_v32, %v1310_v25  ;;  %v1331_v55 = vpack.c.bf16 %v4581_v29, %v4578_v24 }
 0x205   : > { %2958 = vst [vmem:[%s4237_s17] sm:$0xff] %v2957_v28   ;;  %1365 = vmatmul.mubr.bf16.vlgmr.msra.gmra.mrb[4].mxu0 %v1331_v55  ;;  %3158 = vmatmul.mubr.bf16.vlgmr.msra.gmra.mrb[20].mxu1 %v1331_v55 }
 0x206   : > { %1506 = vmatpush1.bf16.msra.mxu0 %v4289_v34  ;;  %3162 = vmatpush3.bf16.msra.mxu1 %v4351_v51 }
 0x207   : > { %1507 = vmatprep.subr.bf16.mxu0 %v4292_v35  ;;  %3163 = vmatprep.subr.bf16.mxu1 %v5134_v18 }
 0x208   : > { %1537 = vmatprep.mubr.bf16.mxu0 %v5135_v7  ;;  %3177 = vmatprep.mubr.msk.bf16.mxu1 %vm3921_vm8, %v5134_v18 }
 0x20a   : > { %1508 = vmatpush1.bf16.msra.mxu0 %v4297_v37  ;;  %3164 = vmatpush3.bf16.msra.mxu1 %v4369_v57 }
 0x20b   : > { %1509 = vmatprep.subr.bf16.mxu0 %v4304_v39  ;;  %3165 = vmatprep.subr.bf16.mxu1 %v5134_v18 }
 0x20e   : > { %1510 = vmatpush1.bf16.msra.mxu0 %v4309_v41  ;;  %3166 = vmatpush3.bf16.msra.mxu1 %v4385_v61 }
 0x20f   : > { %1511 = vmatprep.subr.bf16.mxu0 %v4312_v42  ;;  %3167 = vmatprep.subr.bf16.mxu1 %v5134_v18 }
 0x212   : > { %1512 = vmatpush1.bf16.msra.mxu0 %v4321_v44  ;;  %3168 = vmatpush3.bf16.msra.mxu1 %v4400_v1 }
 0x213   : > { %1513 = vmatprep.subr.bf16.mxu0 %v4328_v46  ;;  %3169 = vmatprep.subr.bf16.mxu1 %v5134_v18 }
 0x216   : > { %1514 = vmatpush1.bf16.msra.mxu0 %v4337_v48  ;;  %3170 = vmatpush3.bf16.msra.mxu1 %v4410_v3 }
 0x217   : > { %1515 = vmatprep.subr.bf16.mxu0 %v4346_v50  ;;  %3171 = vmatprep.subr.bf16.mxu1 %v5134_v18 }
 0x21a   : > { %1516 = vmatpush1.bf16.msra.mxu0 %v4357_v53  ;;  %3172 = vmatpush3.bf16.msra.mxu1 %v4421_v11 }
 0x21b   : > { %1517 = vmatprep.subr.bf16.mxu0 %v4361_v54  ;;  %3173 = vmatprep.subr.bf16.mxu1 %v5134_v18 }
 0x21e   : > { %1518 = vmatpush1.bf16.msra.mxu0 %v4374_v59  ;;  %3174 = vmatpush3.bf16.msra.mxu1 %v4427_v14 }
 0x21f   : > { %1519 = vmatprep.subr.bf16.mxu0 %v4379_v60  ;;  %3175 = vmatprep.subr.bf16.mxu1 %v5134_v18 }
 0x222   : > { %1520 = vmatpush1.bf16.msra.mxu0 %v4391_v63  ;;  %3176 = vmatpush3.bf16.msra.mxu1 %v4435_v17 }
 0x223   : > { %1678 = vmatprep.subr.bf16.mxu0 %v4286_v33  ;;  %3181 = vmatprep.subr.bf16.mxu1 %v5134_v18 }
 0x2d8   : > { %v1366_v19 = vpop.f32.mrb[4].mxu0  ;;  %v1409_v43 = vpop.f32.mrb[20].mxu1 }
 0x2d9   : > { %v3285_v27 = vadd.f32 %v1366_v19, %v4558_v47  ;;  %v1368_v52 = vpop.f32.mrb[5].mxu0  ;;  %v3159_v0 = vpop.f32.mrb[21].mxu1 }
 0x2da   : > { %v1370_v4 = vpop.f32.mrb[6].mxu0  ;;  %v1412_v13 = vpop.f32.mrb[22].mxu1  ;;  %v3286_v30 = vadd.f32 %v1368_v52, %v4560_v58  ;;  %v1444_v52 = vadd.f32 %v4567_v10, %v1409_v43 }
 0x2db   : > { %v2843_v38 = vmul.f32 -1.442695, %v3285_v27  ;;  %v3287_v31 = vadd.f32 %v1370_v4, %v4558_v47  ;;  %v1372_v15 = vpop.f32.mrb[7].mxu0  ;;  %v3160_v22 = vpop.f32.mrb[23].mxu1 }
 0x2dc   : > { %v3288_v20 = vadd.f32 %v1372_v15, %v4560_v58  ;;  %v2844_v8 = vmul.f32 -1.442695, %v3286_v30  ;;  %v1445_v15 = vadd.f32 %v4567_v10, %v1412_v13 }
 0x2dd   : > { %3535 = vpow2.f32 %v2843_v38  ;;  %v2845_v40 = vmul.f32 -1.442695, %v3287_v31 }
 0x2de   : > { %v2846_v25 = vmul.f32 -1.442695, %v3288_v20 }
 0x2df   : > { %3537 = vpow2.f32 %v2845_v40 }
 0x2e0   : > { %3539 = vpow2.f32 %v2844_v8 }
 0x2e1   : > { %3541 = vpow2.f32 %v2846_v25 }
 0x2e7   : > { %v3536_v32 = vpop.eup %3535 }
 0x2e8   : > { %v1432_v28 = vadd.f32 1.0, %v3536_v32 }
 0x2e9   : > { %v3538_v55 = vpop.eup %3537 }
 0x2ea   : > { %3543 = vrcp.f32 %v1432_v28  ;;  %v1434_v19 = vadd.f32 1.0, %v3538_v55  ;;  %v3540_v27 = vpop.eup %3539  ;;  %v1472_v28 = vpop.permute.xlu1 %1471 }
 0x2eb   : > { %v3542_v0 = vpop.eup %3541  ;;  %v1433_v4 = vadd.f32 1.0, %v3540_v27  ;;  %vm1476_vm4 = vcmp.eq.s32.totalorder %v1472_v28, 1 }
 0x2ec   : > { %3545 = vrcp.f32 %v1434_v19  ;;  %v1435_v38 = vadd.f32 1.0, %v3542_v0 }
 0x2ed   : > { %3547 = vrcp.f32 %v1433_v4 }
 0x2ee   : > { %3549 = vrcp.f32 %v1435_v38  ;;  %v1475_v38 = vpop.permute.xlu1 %1474 }
 0x2ef   : > { %vm1477_vm5 = vcmp.eq.s32.totalorder %v1475_v38, 1 }
 0x2f4   : > { %v3544_v31 = vpop.eup %3543 }
 0x2f5   : > { %v1446_v22 = vmul.f32 %v3544_v31, %v1444_v52 }
 0x2f6   : > { %v3546_v30 = vpop.eup %3545 }
 0x2f7   : > { %v1448_v40 = vadd.f32 %v1446_v22, %v4513_v36  ;;  %v1447_v20 = vmul.f32 %v3546_v30, %v1445_v15  ;;  %v3548_v25 = vpop.eup %3547 }
 0x2f8   : > { %v3550_v32 = vpop.eup %3549  ;;  %v1452_v55 = vsub.f32 1.0, %v3548_v25  ;;  %v1456_v27 = vmul.f32 %v3548_v25, %v4578_v24 }
 0x2f9   : > { %3551 = vtanh.f32 %v1448_v40  ;;  %v1449_v8 = vadd.f32 %v1447_v20, %v4518_v9  ;;  %v1453_v0 = vsub.f32 1.0, %v3550_v32  ;;  %v1457_v36 = vmul.f32 %v3550_v32, %v4581_v29 }
 0x2fb   : > { %3553 = vtanh.f32 %v1449_v8 }
 0x303   : > { %v3552_v43 = vpop.eup %3551 }
 0x304   : > { %v1454_v19 = vmul.f32 %v3552_v43, %v1452_v55 }
 0x305   : > { %v3554_v13 = vpop.eup %3553 }
 0x306   : > { %v1458_v4 = vadd.f32 %v1456_v27, %v1454_v19  ;;  %v1455_v52 = vmul.f32 %v3554_v13, %v1453_v0 }
 0x308   : > { %v1459_v31 = vadd.f32 %v1457_v36, %v1455_v52  ;;  %v4632_v9 = vsel %vm1476_vm4, %v1458_v4, %v4578_v24  ;;  %v1482_v22 = vsel %vm1476_vm4, %v1458_v4, 0.0 }
 0x30a   : > { %v4635_v15 = vsel %vm1477_vm5, %v1459_v31, %v4581_v29  ;;  %v1483_v30 = vsel %vm1477_vm5, %v1459_v31, 0.0 }
 0x30b   : > { %v2962_v40 = vpack.c.bf16 %v1483_v30, %v1482_v22  ;;  %v1504_v20 = vpack.c.bf16 %v4635_v15, %v4632_v9 }
 0x30d   : > { %2994 = vst [vmem:[%s4237_s17 + $0x8] sm:$0xff] %v2962_v40   ;;  %1538 = vmatmul.mubr.bf16.vlgmr.msra.gmra.mrb[8].mxu0 %v1504_v20  ;;  %3178 = vmatmul.mubr.bf16.vlgmr.msra.gmra.mrb[24].mxu1 %v1504_v20 }
 0x30e   : > { %1679 = vmatpush1.bf16.msra.mxu0 %v4289_v34  ;;  %3182 = vmatpush3.bf16.msra.mxu1 %v4351_v51 }
 0x30f   : > { %1680 = vmatprep.subr.bf16.mxu0 %v4292_v35  ;;  %3183 = vmatprep.subr.bf16.mxu1 %v5134_v18 }
 0x310   : > { %1710 = vmatprep.mubr.bf16.mxu0 %v5135_v7  ;;  %3197 = vmatprep.mubr.msk.bf16.mxu1 %vm3921_vm8, %v5134_v18 }
 0x312   : > { %1681 = vmatpush1.bf16.msra.mxu0 %v4297_v37  ;;  %3184 = vmatpush3.bf16.msra.mxu1 %v4369_v57 }
 0x313   : > { %1682 = vmatprep.subr.bf16.mxu0 %v4304_v39  ;;  %3185 = vmatprep.subr.bf16.mxu1 %v5134_v18 }
 0x316   : > { %1683 = vmatpush1.bf16.msra.mxu0 %v4309_v41  ;;  %3186 = vmatpush3.bf16.msra.mxu1 %v4385_v61 }
 0x317   : > { %1684 = vmatprep.subr.bf16.mxu0 %v4312_v42  ;;  %3187 = vmatprep.subr.bf16.mxu1 %v5134_v18 }
 0x31a   : > { %1685 = vmatpush1.bf16.msra.mxu0 %v4321_v44  ;;  %3188 = vmatpush3.bf16.msra.mxu1 %v4400_v1 }
 0x31b   : > { %1686 = vmatprep.subr.bf16.mxu0 %v4328_v46  ;;  %3189 = vmatprep.subr.bf16.mxu1 %v5134_v18 }
 0x31e   : > { %1687 = vmatpush1.bf16.msra.mxu0 %v4337_v48  ;;  %3190 = vmatpush3.bf16.msra.mxu1 %v4410_v3 }
 0x31f   : > { %1688 = vmatprep.subr.bf16.mxu0 %v4346_v50  ;;  %3191 = vmatprep.subr.bf16.mxu1 %v5134_v18 }
 0x322   : > { %1689 = vmatpush1.bf16.msra.mxu0 %v4357_v53  ;;  %3192 = vmatpush3.bf16.msra.mxu1 %v4421_v11 }
 0x323   : > { %1690 = vmatprep.subr.bf16.mxu0 %v4361_v54  ;;  %3193 = vmatprep.subr.bf16.mxu1 %v5134_v18 }
 0x326   : > { %1691 = vmatpush1.bf16.msra.mxu0 %v4374_v59  ;;  %3194 = vmatpush3.bf16.msra.mxu1 %v4427_v14 }
 0x327   : > { %1692 = vmatprep.subr.bf16.mxu0 %v4379_v60  ;;  %3195 = vmatprep.subr.bf16.mxu1 %v5134_v18 }
 0x32a   : > { %1693 = vmatpush1.bf16.msra.mxu0 %v4391_v63  ;;  %3196 = vmatpush3.bf16.msra.mxu1 %v4435_v17 }
 0x32b   : > { %1851 = vmatprep.subr.bf16.mxu0 %v4286_v33  ;;  %3201 = vmatprep.subr.bf16.mxu1 %v5134_v18 }
 0x3e0   : > { %v1539_v34 = vpop.f32.mrb[8].mxu0  ;;  %v1582_v35 = vpop.f32.mrb[24].mxu1 }
 0x3e1   : > { %v3289_v37 = vadd.f32 %v1539_v34, %v4558_v47  ;;  %v1541_v39 = vpop.f32.mrb[9].mxu0  ;;  %v3179_v41 = vpop.f32.mrb[25].mxu1  ;;  %v1617_v52 = vadd.f32 %v4567_v10, %v1582_v35 }
 0x3e2   : > { %v1543_v42 = vpop.f32.mrb[10].mxu0  ;;  %v1585_v44 = vpop.f32.mrb[26].mxu1  ;;  %v3290_v8 = vadd.f32 %v1541_v39, %v4560_v58 }
 0x3e3   : > { %v2855_v46 = vmul.f32 -1.442695, %v3289_v37  ;;  %v3291_v48 = vadd.f32 %v1543_v42, %v4558_v47  ;;  %v1545_v24 = vpop.f32.mrb[11].mxu0  ;;  %v3180_v29 = vpop.f32.mrb[27].mxu1  ;;  %v1618_v22 = vadd.f32 %v4567_v10, %v1585_v44 }
 0x3e4   : > { %v3292_v33 = vadd.f32 %v1545_v24, %v4560_v58  ;;  %v2856_v32 = vmul.f32 -1.442695, %v3290_v8  ;;  %v1645_v8 = vpop.permute.xlu0 %1644 }
 0x3e5   : > { %3555 = vpow2.f32 %v2855_v46  ;;  %v2857_v25 = vmul.f32 -1.442695, %v3291_v48  ;;  %vm1649_vm6 = vcmp.eq.s32.totalorder %v1645_v8, 1 }
 0x3e6   : > { %v2858_v28 = vmul.f32 -1.442695, %v3292_v33 }
 0x3e7   : > { %3557 = vpow2.f32 %v2857_v25  ;;  %v1648_v25 = vpop.permute.xlu1 %1647 }
 0x3e8   : > { %3559 = vpow2.f32 %v2856_v32  ;;  %vm1650_vm7 = vcmp.eq.s32.totalorder %v1648_v25, 1 }
 0x3e9   : > { %3561 = vpow2.f32 %v2858_v28 }
 0x3ef   : > { %v3556_v55 = vpop.eup %3555 }
 0x3f0   : > { %v1605_v43 = vadd.f32 1.0, %v3556_v55 }
 0x3f1   : > { %v3558_v19 = vpop.eup %3557 }
 0x3f2   : > { %3563 = vrcp.f32 %v1605_v43  ;;  %v1607_v27 = vadd.f32 1.0, %v3558_v19  ;;  %v3560_v0 = vpop.eup %3559 }
 0x3f3   : > { %v3562_v13 = vpop.eup %3561  ;;  %v1606_v4 = vadd.f32 1.0, %v3560_v0  ;;  %v4718_v0 = vld [vmem:[%s4233_s18 + $0x30] ss:$12 sps:$4 sm:$0xff]  }
 0x3f4   : > { %3565 = vrcp.f32 %v1607_v27  ;;  %v1608_v36 = vadd.f32 1.0, %v3562_v13  ;;  %v4695_v27 = vld [vmem:[%s4233_s18] ss:$12 sps:$4 sm:$0xff]  }
 0x3f5   : > { %3567 = vrcp.f32 %v1606_v4  ;;  %v4723_v13 = vld [vmem:[%s4233_s18 + $0x4c] ss:$12 sps:$4 sm:$0xff]   ;;  %v4733_v4 = vld [vmem:[%s4233_s18 + $0x64] ss:$12 sps:$4 sm:$0xff]  }
 0x3f6   : > { %3569 = vrcp.f32 %v1608_v36 }
 0x3fc   : > { %v3564_v38 = vpop.eup %3563 }
 0x3fd   : > { %v1619_v31 = vmul.f32 %v3564_v38, %v1617_v52 }
 0x3fe   : > { %v3566_v30 = vpop.eup %3565 }
 0x3ff   : > { %v1621_v40 = vadd.f32 %v1619_v31, %v4526_v49  ;;  %v1620_v20 = vmul.f32 %v3566_v30, %v1618_v22  ;;  %v3568_v37 = vpop.eup %3567 }
 0x400   : > { %v3570_v39 = vpop.eup %3569  ;;  %v1625_v41 = vsub.f32 1.0, %v3568_v37  ;;  %v1629_v46 = vmul.f32 %v3568_v37, %v4632_v9 }
 0x401   : > { %3571 = vtanh.f32 %v1621_v40  ;;  %v1622_v34 = vadd.f32 %v1620_v20, %v4532_v62  ;;  %v1626_v48 = vsub.f32 1.0, %v3570_v39  ;;  %v1630_v49 = vmul.f32 %v3570_v39, %v4635_v15 }
 0x403   : > { %3573 = vtanh.f32 %v1622_v34 }
 0x40b   : > { %v3572_v42 = vpop.eup %3571 }
 0x40c   : > { %v1627_v35 = vmul.f32 %v3572_v42, %v1625_v41 }
 0x40d   : > { %v3574_v24 = vpop.eup %3573 }
 0x40e   : > { %v1631_v44 = vadd.f32 %v1629_v46, %v1627_v35  ;;  %v1628_v29 = vmul.f32 %v3574_v24, %v1626_v48 }
 0x410   : > { %v1632_v62 = vadd.f32 %v1630_v49, %v1628_v29  ;;  %v4686_v33 = vsel %vm1649_vm6, %v1631_v44, %v4632_v9  ;;  %v1655_v32 = vsel %vm1649_vm6, %v1631_v44, 0.0  ;;  %v4700_v9 = vld [vmem:[%s4233_s18 + $0x1c] ss:$12 sps:$4 sm:$0xff]  }
 0x412   : > { %v4689_v28 = vsel %vm1650_vm7, %v1632_v62, %v4635_v15  ;;  %v1656_v55 = vsel %vm1650_vm7, %v1632_v62, 0.0  ;;  %v4708_v15 = vld [vmem:[%s4233_s18 + $0x18] ss:$12 sps:$4 sm:$0xff]  }
 0x413   : > { %v2967_v43 = vpack.c.bf16 %v1656_v55, %v1655_v32  ;;  %v1677_v19 = vpack.c.bf16 %v4689_v28, %v4686_v33 }
 0x415   : > { %2995 = vst [vmem:[%s4237_s17 + $0x10] sm:$0xff] %v2967_v43   ;;  %1711 = vmatmul.mubr.bf16.vlgmr.msra.gmra.mrb[12].mxu0 %v1677_v19  ;;  %3198 = vmatmul.mubr.bf16.vlgmr.msra.gmra.mrb[28].mxu1 %v1677_v19 }
 0x416   : > { %1852 = vmatpush1.bf16.msra.mxu0 %v4695_v27  ;;  %3202 = vmatpush3.bf16.msra.mxu1 %v4351_v51  ;;  %v4713_v51 = vld [vmem:[%s4233_s18 + $0x34] ss:$12 sps:$4 sm:$0xff]  }
 0x417   : > { %1853 = vmatprep.subr.bf16.mxu0 %v4700_v9  ;;  %3203 = vmatprep.subr.bf16.mxu1 %v5134_v18 }
 0x418   : > { %1883 = vmatprep.mubr.bf16.mxu0 %v5135_v7  ;;  %3217 = vmatprep.mubr.msk.bf16.mxu1 %vm3921_vm8, %v5134_v18 }
 0x41a   : > { %1854 = vmatpush1.bf16.msra.mxu0 %v4708_v15  ;;  %3204 = vmatpush3.bf16.msra.mxu1 %v4369_v57  ;;  %v4728_v57 = vld [vmem:[%s4233_s18 + $0x48] ss:$12 sps:$4 sm:$0xff]  }
 0x41b   : > { %1855 = vmatprep.subr.bf16.mxu0 %v4713_v51  ;;  %3205 = vmatprep.subr.bf16.mxu1 %v5134_v18 }
 0x41e   : > { %1856 = vmatpush1.bf16.msra.mxu0 %v4718_v0  ;;  %3206 = vmatpush3.bf16.msra.mxu1 %v4385_v61  ;;  %v4738_v61 = vld [vmem:[%s4233_s18 + $0x60] ss:$12 sps:$4 sm:$0xff]  }
 0x41f   : > { %1857 = vmatprep.subr.bf16.mxu0 %v4723_v13  ;;  %3207 = vmatprep.subr.bf16.mxu1 %v5134_v18 }
 0x422   : > { %1858 = vmatpush1.bf16.msra.mxu0 %v4728_v57  ;;  %3208 = vmatpush3.bf16.msra.mxu1 %v4400_v1 }
 0x423   : > { %1859 = vmatprep.subr.bf16.mxu0 %v4733_v4  ;;  %3209 = vmatprep.subr.bf16.mxu1 %v5134_v18 }
 0x426   : > { %1860 = vmatpush1.bf16.msra.mxu0 %v4738_v61  ;;  %3210 = vmatpush3.bf16.msra.mxu1 %v4410_v3 }
 0x427   : > { %1861 = vmatprep.subr.bf16.mxu0 %v4346_v50  ;;  %3211 = vmatprep.subr.bf16.mxu1 %v5134_v18  ;;  %v4755_v50 = vld [vmem:[%s4233_s18 + $0x4] ss:$12 sps:$4 sm:$0xff]  }
 0x42a   : > { %1862 = vmatpush1.bf16.msra.mxu0 %v4357_v53  ;;  %3212 = vmatpush3.bf16.msra.mxu1 %v4421_v11 }
 0x42b   : > { %1863 = vmatprep.subr.bf16.mxu0 %v4361_v54  ;;  %3213 = vmatprep.subr.bf16.mxu1 %v5134_v18 }
 0x42e   : > { %1864 = vmatpush1.bf16.msra.mxu0 %v4374_v59  ;;  %3214 = vmatpush3.bf16.msra.mxu1 %v4427_v14 }
 0x42f   : > { %1865 = vmatprep.subr.bf16.mxu0 %v4379_v60  ;;  %3215 = vmatprep.subr.bf16.mxu1 %v5134_v18 }
 0x432   : > { %1866 = vmatpush1.bf16.msra.mxu0 %v4391_v63  ;;  %3216 = vmatpush3.bf16.msra.mxu1 %v4435_v17 }
 0x433   : > { %2024 = vmatprep.subr.bf16.mxu0 %v4755_v50  ;;  %3221 = vmatprep.subr.bf16.mxu1 %v5134_v18 }
 0x4e8   : > { %v1712_v53 = vpop.f32.mrb[12].mxu0  ;;  %v1755_v54 = vpop.f32.mrb[28].mxu1 }
 0x4e9   : > { %v3293_v59 = vadd.f32 %v1712_v53, %v4558_v47  ;;  %v1714_v1 = vpop.f32.mrb[13].mxu0  ;;  %v3199_v3 = vpop.f32.mrb[29].mxu1  ;;  %v1790_v35 = vadd.f32 %v4567_v10, %v1755_v54 }
 0x4ea   : > { %v1716_v11 = vpop.f32.mrb[14].mxu0  ;;  %v1758_v60 = vpop.f32.mrb[30].mxu1  ;;  %v3294_v17 = vadd.f32 %v1714_v1, %v4560_v58 }
 0x4eb   : > { %v2867_v14 = vmul.f32 -1.442695, %v3293_v59  ;;  %v3295_v52 = vadd.f32 %v1716_v11, %v4558_v47  ;;  %v1718_v63 = vpop.f32.mrb[15].mxu0  ;;  %v3200_v36 = vpop.f32.mrb[31].mxu1  ;;  %v1791_v44 = vadd.f32 %v4567_v10, %v1758_v60 }
 0x4ec   : > { %v3296_v31 = vadd.f32 %v1718_v63, %v4560_v58  ;;  %v2868_v22 = vmul.f32 -1.442695, %v3294_v17  ;;  %v1818_v11 = vpop.permute.xlu0 %1817  ;;  %v1821_v60 = vpop.permute.xlu1 %1820 }
 0x4ed   : > { %3575 = vpow2.f32 %v2867_v14  ;;  %v2869_v38 = vmul.f32 -1.442695, %v3295_v52  ;;  %vm1822_vm9 = vcmp.eq.s32.totalorder %v1818_v11, 1  ;;  %vm1823_vm10 = vcmp.eq.s32.totalorder %v1821_v60, 1 }
 0x4ee   : > { %v2870_v30 = vmul.f32 -1.442695, %v3296_v31  ;;  %v4780_v31 = vld [vmem:[%s4233_s18 + $0x8] ss:$12 sps:$4 sm:$0xff]  }
 0x4ef   : > { %3577 = vpow2.f32 %v2869_v38 }
 0x4f0   : > { %3579 = vpow2.f32 %v2868_v22  ;;  %v4804_v22 = vld [vmem:[%s4233_s18 + $0x50] ss:$12 sps:$4 sm:$0xff]  }
 0x4f1   : > { %3581 = vpow2.f32 %v2870_v30  ;;  %v4811_v30 = vld [vmem:[%s4233_s18 + $0x68] ss:$12 sps:$4 sm:$0xff]  }
 0x4f7   : > { %v3576_v40 = vpop.eup %3575 }
 0x4f8   : > { %v1778_v20 = vadd.f32 1.0, %v3576_v40  ;;  %v4815_v40 = vld [vmem:[%s4233_s18 + $0x7c] ss:$12 sps:$4 sm:$0xff]  }
 0x4f9   : > { %v3578_v34 = vpop.eup %3577 }
 0x4fa   : > { %3583 = vrcp.f32 %v1778_v20  ;;  %v1780_v37 = vadd.f32 1.0, %v3578_v34  ;;  %v3580_v39 = vpop.eup %3579  ;;  %v4820_v20 = vld [vmem:[%s4233_s18 + $0x78] ss:$12 sps:$4 sm:$0xff]   ;;  %v4824_v34 = vld [vmem:[%s4233_s18 + $0x80] ss:$12 sps:$4 sm:$0xff]  }
 0x4fb   : > { %v3582_v41 = vpop.eup %3581  ;;  %v1779_v42 = vadd.f32 1.0, %v3580_v39  ;;  %v4833_v39 = vld [vmem:[%s4233_s18 + $0x90] ss:$12 sps:$4 sm:$0xff]  }
 0x4fc   : > { %3585 = vrcp.f32 %v1780_v37  ;;  %v1781_v46 = vadd.f32 1.0, %v3582_v41  ;;  %v4828_v37 = vld [vmem:[%s4233_s18 + $0x94] ss:$12 sps:$4 sm:$0xff]   ;;  %v4837_v41 = vld [vmem:[%s4233_s18 + $0x98] ss:$12 sps:$4 sm:$0xff]  }
 0x4fd   : > { %3587 = vrcp.f32 %v1779_v42  ;;  %v4841_v42 = vld [vmem:[%s4233_s18 + $0xac] ss:$12 sps:$4 sm:$0xff]  }
 0x4fe   : > { %3589 = vrcp.f32 %v1781_v46  ;;  %v4850_v46 = vld [vmem:[%s4233_s18 + $0xb0] ss:$12 sps:$4 sm:$0xff]  }
 0x504   : > { %v3584_v48 = vpop.eup %3583 }
 0x505   : > { %v1792_v24 = vmul.f32 %v3584_v48, %v1790_v35  ;;  %v4846_v35 = vld [vmem:[%s4233_s18 + $0xa8] ss:$12 sps:$4 sm:$0xff]  }
 0x506   : > { %v3586_v29 = vpop.eup %3585 }
 0x507   : > { %v1794_v49 = vadd.f32 %v1792_v24, %v4523_v45  ;;  %v1793_v8 = vmul.f32 %v3586_v29, %v1791_v44  ;;  %v3588_v62 = vpop.eup %3587 }
 0x508   : > { %v3590_v32 = vpop.eup %3589  ;;  %v1798_v55 = vsub.f32 1.0, %v3588_v62  ;;  %v1802_v53 = vmul.f32 %v3588_v62, %v4686_v33 }
 0x509   : > { %3591 = vtanh.f32 %v1794_v49  ;;  %v1795_v25 = vadd.f32 %v1793_v8, %v4529_v56  ;;  %v1799_v54 = vsub.f32 1.0, %v3590_v32  ;;  %v1803_v45 = vmul.f32 %v3590_v32, %v4689_v28 }
 0x50b   : > { %3593 = vtanh.f32 %v1795_v25 }
 0x513   : > { %v3592_v43 = vpop.eup %3591 }
 0x514   : > { %v1800_v19 = vmul.f32 %v3592_v43, %v1798_v55 }
 0x515   : > { %v3594_v59 = vpop.eup %3593 }
 0x516   : > { %v1804_v1 = vadd.f32 %v1802_v53, %v1800_v19  ;;  %v1801_v3 = vmul.f32 %v3594_v59, %v1799_v54 }
 0x518   : > { %v1805_v14 = vadd.f32 %v1803_v45, %v1801_v3  ;;  %v4770_v56 = vsel %vm1822_vm9, %v1804_v1, %v4686_v33  ;;  %v1828_v52 = vsel %vm1822_vm9, %v1804_v1, 0.0  ;;  %v4790_v33 = vld [vmem:[%s4233_s18 + $0x20] ss:$12 sps:$4 sm:$0xff]  }
 0x51a   : > { %v4773_v63 = vsel %vm1823_vm10, %v1805_v14, %v4689_v28  ;;  %v1829_v36 = vsel %vm1823_vm10, %v1805_v14, 0.0  ;;  %v4797_v28 = vld [vmem:[%s4233_s18 + $0x38] ss:$12 sps:$4 sm:$0xff]  }
 0x51b   : > { %v2972_v17 = vpack.c.bf16 %v1829_v36, %v1828_v52  ;;  %v1850_v38 = vpack.c.bf16 %v4773_v63, %v4770_v56 }
 0x51d   : > { %2996 = vst [vmem:[%s4237_s17 + $0x18] sm:$0xff] %v2972_v17   ;;  %1884 = vmatmul.mubr.bf16.vlgmr.msra.gmra.mrb[16].mxu0 %v1850_v38  ;;  %3218 = vmatmul.mubr.bf16.vlgmr.msra.gmra.mrb[32].mxu1 %v1850_v38 }
 0x51e   : > { %2025 = vmatpush1.bf16.msra.mxu0 %v4695_v27  ;;  %3222 = vmatpush3.bf16.msra.mxu1 %v4780_v31 }
 0x51f   : > { %2026 = vmatprep.subr.bf16.mxu0 %v4700_v9  ;;  %3223 = vmatprep.subr.bf16.mxu1 %v5134_v18 }
 0x520   : > { %2056 = vmatprep.mubr.bf16.mxu0 %v5135_v7  ;;  %3237 = vmatprep.mubr.msk.bf16.mxu1 %vm3921_vm8, %v5134_v18 }
 0x522   : > { %2027 = vmatpush1.bf16.msra.mxu0 %v4708_v15  ;;  %3224 = vmatpush3.bf16.msra.mxu1 %v4790_v33 }
 0x523   : > { %2028 = vmatprep.subr.bf16.mxu0 %v4713_v51  ;;  %3225 = vmatprep.subr.bf16.mxu1 %v5134_v18 }
 0x526   : > { %2029 = vmatpush1.bf16.msra.mxu0 %v4718_v0  ;;  %3226 = vmatpush3.bf16.msra.mxu1 %v4797_v28 }
 0x527   : > { %2030 = vmatprep.subr.bf16.mxu0 %v4723_v13  ;;  %3227 = vmatprep.subr.bf16.mxu1 %v5134_v18 }
 0x52a   : > { %2031 = vmatpush1.bf16.msra.mxu0 %v4728_v57  ;;  %3228 = vmatpush3.bf16.msra.mxu1 %v4804_v22 }
 0x52b   : > { %2032 = vmatprep.subr.bf16.mxu0 %v4733_v4  ;;  %3229 = vmatprep.subr.bf16.mxu1 %v5134_v18 }
 0x52e   : > { %2033 = vmatpush1.bf16.msra.mxu0 %v4738_v61  ;;  %3230 = vmatpush3.bf16.msra.mxu1 %v4811_v30 }
 0x52f   : > { %2034 = vmatprep.subr.bf16.mxu0 %v4815_v40  ;;  %3231 = vmatprep.subr.bf16.mxu1 %v5134_v18 }
 0x532   : > { %2035 = vmatpush1.bf16.msra.mxu0 %v4820_v20  ;;  %3232 = vmatpush3.bf16.msra.mxu1 %v4824_v34 }
 0x533   : > { %2036 = vmatprep.subr.bf16.mxu0 %v4828_v37  ;;  %3233 = vmatprep.subr.bf16.mxu1 %v5134_v18 }
 0x536   : > { %2037 = vmatpush1.bf16.msra.mxu0 %v4833_v39  ;;  %3234 = vmatpush3.bf16.msra.mxu1 %v4837_v41 }
 0x537   : > { %2038 = vmatprep.subr.bf16.mxu0 %v4841_v42  ;;  %3235 = vmatprep.subr.bf16.mxu1 %v5134_v18 }
 0x53a   : > { %2039 = vmatpush1.bf16.msra.mxu0 %v4846_v35  ;;  %3236 = vmatpush3.bf16.msra.mxu1 %v4850_v46 }
 0x53b   : > { %2197 = vmatprep.subr.bf16.mxu0 %v4755_v50  ;;  %3241 = vmatprep.subr.bf16.mxu1 %v5134_v18 }
 0x5f0   : > { %v1885_v48 = vpop.f32.mrb[16].mxu0  ;;  %v1928_v24 = vpop.f32.mrb[32].mxu1 }
 0x5f1   : > { %v3297_v44 = vadd.f32 %v1885_v48, %v4558_v47  ;;  %v1887_v29 = vpop.f32.mrb[17].mxu0  ;;  %v3219_v49 = vpop.f32.mrb[33].mxu1  ;;  %v1963_v17 = vadd.f32 %v4567_v10, %v1928_v24 }
 0x5f2   : > { %v1889_v8 = vpop.f32.mrb[18].mxu0  ;;  %v1931_v25 = vpop.f32.mrb[34].mxu1  ;;  %v3298_v19 = vadd.f32 %v1887_v29, %v4560_v58 }
 0x5f3   : > { %v2879_v62 = vmul.f32 -1.442695, %v3297_v44  ;;  %v3299_v32 = vadd.f32 %v1889_v8, %v4558_v47  ;;  %v1891_v55 = vpop.f32.mrb[19].mxu0  ;;  %v3220_v43 = vpop.f32.mrb[35].mxu1  ;;  %v1964_v29 = vadd.f32 %v4567_v10, %v1931_v25 }
 0x5f4   : > { %v3300_v54 = vadd.f32 %v1891_v55, %v4560_v58  ;;  %v2880_v59 = vmul.f32 -1.442695, %v3298_v19 }
 0x5f5   : > { %3595 = vpow2.f32 %v2879_v62  ;;  %v2881_v53 = vmul.f32 -1.442695, %v3299_v32 }
 0x5f6   : > { %v2882_v1 = vmul.f32 -1.442695, %v3300_v54 }
 0x5f7   : > { %3597 = vpow2.f32 %v2881_v53 }
 0x5f8   : > { %3599 = vpow2.f32 %v2880_v59 }
 0x5f9   : > { %3601 = vpow2.f32 %v2882_v1 }
 0x5ff   : > { %v3596_v3 = vpop.eup %3595 }
 0x600   : > { %v1951_v45 = vadd.f32 1.0, %v3596_v3 }
 0x601   : > { %v3598_v11 = vpop.eup %3597 }
 0x602   : > { %3603 = vrcp.f32 %v1951_v45  ;;  %v1953_v60 = vadd.f32 1.0, %v3598_v11  ;;  %v3600_v14 = vpop.eup %3599  ;;  %v1991_v45 = vpop.permute.xlu0 %1990 }
 0x603   : > { %v3602_v52 = vpop.eup %3601  ;;  %v1952_v36 = vadd.f32 1.0, %v3600_v14  ;;  %v1994_v11 = vpop.permute.xlu1 %1993  ;;  %vm1995_vm11 = vcmp.eq.s32.totalorder %v1991_v45, 1 }
 0x604   : > { %3605 = vrcp.f32 %v1953_v60  ;;  %v1954_v38 = vadd.f32 1.0, %v3602_v52  ;;  %vm1996_vm12 = vcmp.eq.s32.totalorder %v1994_v11, 1 }
 0x605   : > { %3607 = vrcp.f32 %v1952_v36 }
 0x606   : > { %3609 = vrcp.f32 %v1954_v38 }
 0x60c   : > { %v3604_v48 = vpop.eup %3603 }
 0x60d   : > { %v1965_v44 = vmul.f32 %v3604_v48, %v1963_v17 }
 0x60e   : > { %v3606_v49 = vpop.eup %3605 }
 0x60f   : > { %v1967_v8 = vadd.f32 %v1965_v44, %v4538_v5  ;;  %v1966_v62 = vmul.f32 %v3606_v49, %v1964_v29  ;;  %v3608_v55 = vpop.eup %3607 }
 0x610   : > { %v3610_v43 = vpop.eup %3609  ;;  %v1971_v19 = vsub.f32 1.0, %v3608_v55  ;;  %v1975_v54 = vmul.f32 %v3608_v55, %v4770_v56 }
 0x611   : > { %3611 = vtanh.f32 %v1967_v8  ;;  %v1968_v32 = vadd.f32 %v1966_v62, %v4544_v16  ;;  %v1972_v59 = vsub.f32 1.0, %v3610_v43  ;;  %v1976_v5 = vmul.f32 %v3610_v43, %v4773_v63 }
 0x613   : > { %3613 = vtanh.f32 %v1968_v32 }
 0x61b   : > { %v3612_v53 = vpop.eup %3611 }
 0x61c   : > { %v1973_v24 = vmul.f32 %v3612_v53, %v1971_v19 }
 0x61d   : > { %v3614_v1 = vpop.eup %3613 }
 0x61e   : > { %v1977_v25 = vadd.f32 %v1975_v54, %v1973_v24  ;;  %v1974_v3 = vmul.f32 %v3614_v1, %v1972_v59 }
 0x620   : > { %v1978_v60 = vadd.f32 %v1976_v5, %v1974_v3  ;;  %v4866_v16 = vsel %vm1995_vm11, %v1977_v25, %v4770_v56  ;;  %v2001_v14 = vsel %vm1995_vm11, %v1977_v25, 0.0 }
 0x622   : > { %v4869_v52 = vsel %vm1996_vm12, %v1978_v60, %v4773_v63  ;;  %v2002_v36 = vsel %vm1996_vm12, %v1978_v60, 0.0 }
 0x623   : > { %v2977_v17 = vpack.c.bf16 %v2002_v36, %v2001_v14  ;;  %v2023_v38 = vpack.c.bf16 %v4869_v52, %v4866_v16 }
 0x625   : > { %2997 = vst [vmem:[%s4237_s17 + $0x20] sm:$0xff] %v2977_v17   ;;  %2057 = vmatmul.mubr.bf16.vlgmr.msra.gmra.mrb[20].mxu0 %v2023_v38  ;;  %3238 = vmatmul.mubr.bf16.vlgmr.msra.gmra.mrb[36].mxu1 %v2023_v38  ;;  %v4915_v38 = vld [vmem:[%s4204_s27] ss:$0 sm:$0xff] }
 0x626   : > { %2198 = vmatpush1.bf16.msra.mxu0 %v4695_v27  ;;  %3242 = vmatpush3.bf16.msra.mxu1 %v4780_v31 }
 0x627   : > { %2199 = vmatprep.subr.bf16.mxu0 %v4700_v9  ;;  %3243 = vmatprep.subr.bf16.mxu1 %v5134_v18 }
 0x628   : > { %2229 = vmatprep.mubr.bf16.mxu0 %v5135_v7  ;;  %3257 = vmatprep.mubr.msk.bf16.mxu1 %vm3921_vm8, %v5134_v18 }
 0x62a   : > { %2200 = vmatpush1.bf16.msra.mxu0 %v4708_v15  ;;  %3244 = vmatpush3.bf16.msra.mxu1 %v4790_v33 }
 0x62b   : > { %2201 = vmatprep.subr.bf16.mxu0 %v4713_v51  ;;  %3245 = vmatprep.subr.bf16.mxu1 %v5134_v18 }
 0x62e   : > { %2202 = vmatpush1.bf16.msra.mxu0 %v4718_v0  ;;  %3246 = vmatpush3.bf16.msra.mxu1 %v4797_v28 }
 0x62f   : > { %2203 = vmatprep.subr.bf16.mxu0 %v4723_v13  ;;  %3247 = vmatprep.subr.bf16.mxu1 %v5134_v18 }
 0x632   : > { %2204 = vmatpush1.bf16.msra.mxu0 %v4728_v57  ;;  %3248 = vmatpush3.bf16.msra.mxu1 %v4804_v22 }
 0x633   : > { %2205 = vmatprep.subr.bf16.mxu0 %v4733_v4  ;;  %3249 = vmatprep.subr.bf16.mxu1 %v5134_v18 }
 0x636   : > { %2206 = vmatpush1.bf16.msra.mxu0 %v4738_v61  ;;  %3250 = vmatpush3.bf16.msra.mxu1 %v4811_v30 }
 0x637   : > { %2207 = vmatprep.subr.bf16.mxu0 %v4815_v40  ;;  %3251 = vmatprep.subr.bf16.mxu1 %v5134_v18 }
 0x63a   : > { %2208 = vmatpush1.bf16.msra.mxu0 %v4820_v20  ;;  %3252 = vmatpush3.bf16.msra.mxu1 %v4824_v34 }
 0x63b   : > { %2209 = vmatprep.subr.bf16.mxu0 %v4828_v37  ;;  %3253 = vmatprep.subr.bf16.mxu1 %v5134_v18 }
 0x63e   : > { %2210 = vmatpush1.bf16.msra.mxu0 %v4833_v39  ;;  %3254 = vmatpush3.bf16.msra.mxu1 %v4837_v41 }
 0x63f   : > { %2211 = vmatprep.subr.bf16.mxu0 %v4841_v42  ;;  %3255 = vmatprep.subr.bf16.mxu1 %v5134_v18 }
 0x642   : > { %2212 = vmatpush1.bf16.msra.mxu0 %v4846_v35  ;;  %3256 = vmatpush3.bf16.msra.mxu1 %v4850_v46 }
 0x643   : > { %2370 = vmatprep.subr.bf16.mxu0 %v4755_v50  ;;  %3261 = vmatprep.subr.bf16.mxu1 %v5134_v18 }
 0x6f8   : > { %v2058_v56 = vpop.f32.mrb[20].mxu0  ;;  %v2101_v63 = vpop.f32.mrb[36].mxu1 }
 0x6f9   : > { %v3301_v48 = vadd.f32 %v2058_v56, %v4558_v47  ;;  %v2060_v44 = vpop.f32.mrb[21].mxu0  ;;  %v3239_v29 = vpop.f32.mrb[37].mxu1  ;;  %v2136_v60 = vadd.f32 %v4567_v10, %v2101_v63 }
 0x6fa   : > { %v2062_v49 = vpop.f32.mrb[22].mxu0  ;;  %v2104_v8 = vpop.f32.mrb[38].mxu1  ;;  %v3302_v19 = vadd.f32 %v2060_v44, %v4560_v58 }
 0x6fb   : > { %v2891_v62 = vmul.f32 -1.442695, %v3301_v48  ;;  %v3303_v32 = vadd.f32 %v2062_v49, %v4558_v47  ;;  %v2064_v55 = vpop.f32.mrb[23].mxu0  ;;  %v3240_v43 = vpop.f32.mrb[39].mxu1  ;;  %v2137_v56 = vadd.f32 %v4915_v38, %v2104_v8 }
 0x6fc   : > { %v3304_v50 = vadd.f32 %v2064_v55, %v4560_v58  ;;  %v2892_v24 = vmul.f32 -1.442695, %v3302_v19 }
 0x6fd   : > { %3615 = vpow2.f32 %v2891_v62  ;;  %v2893_v53 = vmul.f32 -1.442695, %v3303_v32 }
 0x6fe   : > { %v2894_v54 = vmul.f32 -1.442695, %v3304_v50 }
 0x6ff   : > { %3617 = vpow2.f32 %v2893_v53 }
 0x700   : > { %3619 = vpow2.f32 %v2892_v24  ;;  %v2164_v24 = vpop.permute.xlu0 %2163 }
 0x701   : > { %3621 = vpow2.f32 %v2894_v54  ;;  %v2167_v54 = vpop.permute.xlu1 %2166  ;;  %vm2168_vm13 = vcmp.eq.s32.totalorder %v2164_v24, 1 }
 0x702   : > { %vm2169_vm14 = vcmp.eq.s32.totalorder %v2167_v54, 1 }
 0x707   : > { %v3616_v59 = vpop.eup %3615 }
 0x708   : > { %v2124_v1 = vadd.f32 1.0, %v3616_v59 }
 0x709   : > { %v3618_v25 = vpop.eup %3617 }
 0x70a   : > { %3623 = vrcp.f32 %v2124_v1  ;;  %v2126_v3 = vadd.f32 1.0, %v3618_v25  ;;  %v3620_v5 = vpop.eup %3619 }
 0x70b   : > { %v3622_v45 = vpop.eup %3621  ;;  %v2125_v11 = vadd.f32 1.0, %v3620_v5 }
 0x70c   : > { %3625 = vrcp.f32 %v2126_v3  ;;  %v2127_v14 = vadd.f32 1.0, %v3622_v45 }
 0x70d   : > { %3627 = vrcp.f32 %v2125_v11 }
 0x70e   : > { %3629 = vrcp.f32 %v2127_v14 }
 0x714   : > { %v3624_v36 = vpop.eup %3623 }
 0x715   : > { %v2138_v17 = vmul.f32 %v3624_v36, %v2136_v60 }
 0x716   : > { %v3626_v48 = vpop.eup %3625 }
 0x717   : > { %v2140_v44 = vadd.f32 %v2138_v17, %v4535_v2  ;;  %v2139_v29 = vmul.f32 %v3626_v48, %v2137_v56  ;;  %v3628_v62 = vpop.eup %3627 }
 0x718   : > { %v3630_v32 = vpop.eup %3629  ;;  %v2144_v10 = vsub.f32 1.0, %v3628_v62  ;;  %v2148_v43 = vmul.f32 %v3628_v62, %v4866_v16 }
 0x719   : > { %3631 = vtanh.f32 %v2140_v44  ;;  %v2141_v49 = vadd.f32 %v2139_v29, %v4541_v12  ;;  %v2145_v19 = vsub.f32 1.0, %v3630_v32  ;;  %v2149_v2 = vmul.f32 %v3630_v32, %v4869_v52 }
 0x71b   : > { %3633 = vtanh.f32 %v2141_v49 }
 0x723   : > { %v3632_v63 = vpop.eup %3631 }
 0x724   : > { %v2146_v55 = vmul.f32 %v3632_v63, %v2144_v10 }
 0x725   : > { %v3634_v53 = vpop.eup %3633 }
 0x726   : > { %v2150_v8 = vadd.f32 %v2148_v43, %v2146_v55  ;;  %v2147_v50 = vmul.f32 %v3634_v53, %v2145_v19  ;;  %v2337_v43 = vpop.permute.xlu0 %2336  ;;  %v2340_v19 = vpop.permute.xlu1 %2339 }
 0x727   : > { %vm2342_vm15 = vcmp.eq.s32.totalorder %v2340_v19, 1 }
 0x728   : > { %v2151_v59 = vadd.f32 %v2149_v2, %v2147_v50  ;;  %v4923_v12 = vsel %vm2168_vm13, %v2150_v8, %v4866_v16  ;;  %v2174_v1 = vsel %vm2168_vm13, %v2150_v8, 0.0 }
 0x72a   : > { %v4926_v25 = vsel %vm2169_vm14, %v2151_v59, %v4869_v52  ;;  %v2175_v3 = vsel %vm2169_vm14, %v2151_v59, 0.0 }
 0x72b   : > { %v2982_v5 = vpack.c.bf16 %v2175_v3, %v2174_v1  ;;  %v2196_v45 = vpack.c.bf16 %v4926_v25, %v4923_v12 }
 0x72d   : > { %2998 = vst [vmem:[%s4237_s17 + $0x28] sm:$0xff] %v2982_v5   ;;  %2230 = vmatmul.mubr.bf16.vlgmr.msra.gmra.mrb[24].mxu0 %v2196_v45  ;;  %3258 = vmatmul.mubr.bf16.vlgmr.msra.gmra.mrb[40].mxu1 %v2196_v45 }
 0x72e   : > { %2371 = vmatpush1.bf16.msra.mxu0 %v4695_v27  ;;  %3262 = vmatpush3.bf16.msra.mxu1 %v4780_v31 }
 0x72f   : > { %2372 = vmatprep.subr.bf16.mxu0 %v4700_v9  ;;  %3263 = vmatprep.subr.bf16.mxu1 %v5134_v18 }
 0x730   : > { %2402 = vmatprep.mubr.bf16.mxu0 %v5135_v7  ;;  %3277 = vmatprep.mubr.msk.bf16.mxu1 %vm3921_vm8, %v5134_v18  ;;  %vm2341_vm8 = vcmp.eq.s32.totalorder %v2337_v43, 1 }
 0x732   : > { %2373 = vmatpush1.bf16.msra.mxu0 %v4708_v15  ;;  %3264 = vmatpush3.bf16.msra.mxu1 %v4790_v33 }
 0x733   : > { %2374 = vmatprep.subr.bf16.mxu0 %v4713_v51  ;;  %3265 = vmatprep.subr.bf16.mxu1 %v5134_v18 }
 0x736   : > { %2375 = vmatpush1.bf16.msra.mxu0 %v4718_v0  ;;  %3266 = vmatpush3.bf16.msra.mxu1 %v4797_v28 }
 0x737   : > { %2376 = vmatprep.subr.bf16.mxu0 %v4723_v13  ;;  %3267 = vmatprep.subr.bf16.mxu1 %v5134_v18 }
 0x73a   : > { %2377 = vmatpush1.bf16.msra.mxu0 %v4728_v57  ;;  %3268 = vmatpush3.bf16.msra.mxu1 %v4804_v22 }
 0x73b   : > { %2378 = vmatprep.subr.bf16.mxu0 %v4733_v4  ;;  %3269 = vmatprep.subr.bf16.mxu1 %v5134_v18 }
 0x73e   : > { %2379 = vmatpush1.bf16.msra.mxu0 %v4738_v61  ;;  %3270 = vmatpush3.bf16.msra.mxu1 %v4811_v30 }
 0x73f   : > { %2380 = vmatprep.subr.bf16.mxu0 %v4815_v40  ;;  %3271 = vmatprep.subr.bf16.mxu1 %v5134_v18 }
 0x742   : > { %2381 = vmatpush1.bf16.msra.mxu0 %v4820_v20  ;;  %3272 = vmatpush3.bf16.msra.mxu1 %v4824_v34 }
 0x743   : > { %2382 = vmatprep.subr.bf16.mxu0 %v4828_v37  ;;  %3273 = vmatprep.subr.bf16.mxu1 %v5134_v18 }
 0x746   : > { %2383 = vmatpush1.bf16.msra.mxu0 %v4833_v39  ;;  %3274 = vmatpush3.bf16.msra.mxu1 %v4837_v41 }
 0x747   : > { %2384 = vmatprep.subr.bf16.mxu0 %v4841_v42  ;;  %3275 = vmatprep.subr.bf16.mxu1 %v5134_v18 }
 0x74a   : > { %2385 = vmatpush1.bf16.msra.mxu0 %v4846_v35  ;;  %3276 = vmatpush3.bf16.msra.mxu1 %v4850_v46 }
 0x800   : > { %v2231_v7 = vpop.f32.mrb[24].mxu0  ;;  %v2274_v27 = vpop.f32.mrb[40].mxu1 }
 0x801   : > { %v3305_v9 = vadd.f32 %v2231_v7, %v4558_v47  ;;  %v2233_v15 = vpop.f32.mrb[25].mxu0  ;;  %v3259_v51 = vpop.f32.mrb[41].mxu1  ;;  %v2309_v35 = vadd.f32 %v4915_v38, %v2274_v27 }
 0x802   : > { %v2235_v0 = vpop.f32.mrb[26].mxu0  ;;  %v2277_v13 = vpop.f32.mrb[42].mxu1  ;;  %v3306_v33 = vadd.f32 %v2233_v15, %v4560_v58 }
 0x803   : > { %v2903_v57 = vmul.f32 -1.442695, %v3305_v9  ;;  %v3307_v4 = vadd.f32 %v2235_v0, %v4558_v47  ;;  %v2237_v61 = vpop.f32.mrb[27].mxu0  ;;  %v3260_v31 = vpop.f32.mrb[43].mxu1  ;;  %v2310_v11 = vadd.f32 %v4915_v38, %v2277_v13 }
 0x804   : > { %v3308_v28 = vadd.f32 %v2237_v61, %v4560_v58  ;;  %v2904_v22 = vmul.f32 -1.442695, %v3306_v33 }
 0x805   : > { %3635 = vpow2.f32 %v2903_v57  ;;  %v2905_v18 = vmul.f32 -1.442695, %v3307_v4 }
 0x806   : > { %v2906_v30 = vmul.f32 -1.442695, %v3308_v28 }
 0x807   : > { %3637 = vpow2.f32 %v2905_v18 }
 0x808   : > { %3639 = vpow2.f32 %v2904_v22 }
 0x809   : > { %3641 = vpow2.f32 %v2906_v30 }
 0x80f   : > { %v3636_v40 = vpop.eup %3635 }
 0x810   : > { %v2297_v20 = vadd.f32 1.0, %v3636_v40 }
 0x811   : > { %v3638_v34 = vpop.eup %3637 }
 0x812   : > { %3643 = vrcp.f32 %v2297_v20  ;;  %v2299_v37 = vadd.f32 1.0, %v3638_v34  ;;  %v3640_v39 = vpop.eup %3639 }
 0x813   : > { %v3642_v41 = vpop.eup %3641  ;;  %v2298_v42 = vadd.f32 1.0, %v3640_v39 }
 0x814   : > { %3645 = vrcp.f32 %v2299_v37  ;;  %v2300_v46 = vadd.f32 1.0, %v3642_v41 }
 0x815   : > { %3647 = vrcp.f32 %v2298_v42 }
 0x816   : > { %3649 = vrcp.f32 %v2300_v46 }
 0x81c   : > { %v3644_v16 = vpop.eup %3643 }
 0x81d   : > { %v2311_v52 = vmul.f32 %v3644_v16, %v2309_v35 }
 0x81e   : > { %v3646_v60 = vpop.eup %3645 }
 0x81f   : > { %v2313_v14 = vadd.f32 %v2311_v52, %v4550_v6  ;;  %v2312_v36 = vmul.f32 %v3646_v60, %v2310_v11  ;;  %v3648_v56 = vpop.eup %3647  ;;  %v2510_v11 = vpop.permute.xlu0 %2509 }
 0x820   : > { %v3650_v48 = vpop.eup %3649  ;;  %v2317_v44 = vsub.f32 1.0, %v3648_v56  ;;  %v2321_v62 = vmul.f32 %v3648_v56, %v4923_v12  ;;  %vm2514_vm0 = vcmp.eq.s32.totalorder %v2510_v11, 1 }
 0x821   : > { %3651 = vtanh.f32 %v2313_v14  ;;  %v2314_v17 = vadd.f32 %v2312_v36, %v4556_v26  ;;  %v2318_v32 = vsub.f32 1.0, %v3650_v48  ;;  %v2322_v6 = vmul.f32 %v3650_v48, %v4926_v25 }
 0x823   : > { %3653 = vtanh.f32 %v2314_v17  ;;  %v2513_v17 = vpop.permute.xlu1 %2512 }
 0x824   : > { %vm2515_vm1 = vcmp.eq.s32.totalorder %v2513_v17, 1 }
 0x82b   : > { %v3652_v29 = vpop.eup %3651 }
 0x82c   : > { %v2319_v49 = vmul.f32 %v3652_v29, %v2317_v44 }
 0x82d   : > { %v3654_v10 = vpop.eup %3653 }
 0x82e   : > { %v2323_v63 = vadd.f32 %v2321_v62, %v2319_v49  ;;  %v2320_v55 = vmul.f32 %v3654_v10, %v2318_v32 }
 0x830   : > { %v2324_v53 = vadd.f32 %v2322_v6, %v2320_v55  ;;  %v4975_v26 = vsel %vm2341_vm8, %v2323_v63, %v4923_v12  ;;  %v2347_v8 = vsel %vm2341_vm8, %v2323_v63, 0.0 }
 0x832   : > { %v4978_v50 = vsel %vm2342_vm15, %v2324_v53, %v4926_v25  ;;  %v2348_v2 = vsel %vm2342_vm15, %v2324_v53, 0.0 }
 0x833   : > { %v2987_v24 = vpack.c.bf16 %v2348_v2, %v2347_v8  ;;  %v2369_v54 = vpack.c.bf16 %v4978_v50, %v4975_v26 }
 0x835   : > { %2999 = vst [vmem:[%s4237_s17 + $0x30] sm:$0xff] %v2987_v24   ;;  %2403 = vmatmul.mubr.bf16.vlgmr.msra.gmra.mrb[28].mxu0 %v2369_v54  ;;  %3278 = vmatmul.mubr.bf16.vlgmr.msra.gmra.mrb[44].mxu1 %v2369_v54 }
 0x908   : > { %v2404_v59 = vpop.f32.mrb[28].mxu0  ;;  %v2447_v1 = vpop.f32.mrb[44].mxu1 }
 0x909   : > { %v3309_v3 = vadd.f32 %v2404_v59, %v4558_v47  ;;  %v2406_v5 = vpop.f32.mrb[29].mxu0  ;;  %v3279_v45 = vpop.f32.mrb[45].mxu1  ;;  %v2482_v30 = vadd.f32 %v4915_v38, %v2447_v1 }
 0x90a   : > { %v2408_v12 = vpop.f32.mrb[30].mxu0  ;;  %v2450_v7 = vpop.f32.mrb[46].mxu1  ;;  %v3310_v51 = vadd.f32 %v2406_v5, %v4560_v58 }
 0x90b   : > { %v2915_v27 = vmul.f32 -1.442695, %v3309_v3  ;;  %v3311_v25 = vadd.f32 %v2408_v12, %v4558_v47  ;;  %v2410_v9 = vpop.f32.mrb[31].mxu0  ;;  %v3280_v15 = vpop.f32.mrb[47].mxu1 }
 0x90c   : > { %v3312_v13 = vadd.f32 %v2410_v9, %v4560_v58  ;;  %v2916_v57 = vmul.f32 -1.442695, %v3310_v51  ;;  %v2483_v58 = vadd.f32 %v4915_v38, %v2450_v7 }
 0x90d   : > { %3655 = vpow2.f32 %v2915_v27  ;;  %v2917_v0 = vmul.f32 -1.442695, %v3311_v25 }
 0x90e   : > { %v2918_v4 = vmul.f32 -1.442695, %v3312_v13 }
 0x90f   : > { %3657 = vpow2.f32 %v2917_v0 }
 0x910   : > { %3659 = vpow2.f32 %v2916_v57 }
 0x911   : > { %3661 = vpow2.f32 %v2918_v4 }
 0x917   : > { %v3656_v61 = vpop.eup %3655 }
 0x918   : > { %v2470_v31 = vadd.f32 1.0, %v3656_v61 }
 0x919   : > { %v3658_v33 = vpop.eup %3657 }
 0x91a   : > { %3663 = vrcp.f32 %v2470_v31  ;;  %v2472_v18 = vadd.f32 1.0, %v3658_v33  ;;  %v3660_v47 = vpop.eup %3659 }
 0x91b   : > { %v3662_v28 = vpop.eup %3661  ;;  %v2471_v22 = vadd.f32 1.0, %v3660_v47 }
 0x91c   : > { %3665 = vrcp.f32 %v2472_v18  ;;  %v2473_v40 = vadd.f32 1.0, %v3662_v28 }
 0x91d   : > { %3667 = vrcp.f32 %v2471_v22 }
 0x91e   : > { %3669 = vrcp.f32 %v2473_v40 }
 0x924   : > { %v3664_v20 = vpop.eup %3663 }
 0x925   : > { %v2484_v34 = vmul.f32 %v3664_v20, %v2482_v30 }
 0x926   : > { %v3666_v37 = vpop.eup %3665 }
 0x927   : > { %v2486_v39 = vadd.f32 %v2484_v34, %v4547_v21  ;;  %v2485_v41 = vmul.f32 %v3666_v37, %v2483_v58  ;;  %v3668_v35 = vpop.eup %3667 }
 0x928   : > { %v3670_v46 = vpop.eup %3669  ;;  %v2490_v16 = vsub.f32 1.0, %v3668_v35  ;;  %v2494_v14 = vmul.f32 %v3668_v35, %v4975_v26 }
 0x929   : > { %3671 = vtanh.f32 %v2486_v39  ;;  %v2487_v42 = vadd.f32 %v2485_v41, %v4553_v23  ;;  %v2491_v36 = vsub.f32 1.0, %v3670_v46  ;;  %v2495_v48 = vmul.f32 %v3670_v46, %v4978_v50 }
 0x92b   : > { %3673 = vtanh.f32 %v2487_v42 }
 0x933   : > { %v3672_v52 = vpop.eup %3671 }
 0x934   : > { %v2492_v60 = vmul.f32 %v3672_v52, %v2490_v16 }
 0x935   : > { %v3674_v38 = vpop.eup %3673 }
 0x936   : > { %v2496_v56 = vadd.f32 %v2494_v14, %v2492_v60  ;;  %v2493_v21 = vmul.f32 %v3674_v38, %v2491_v36 }
 0x938   : > { %v2516_v23 = vsel %vm2514_vm0, %v2496_v56, %v4975_v26  ;;  %v2497_v44 = vadd.f32 %v2495_v48, %v2493_v21  ;;  %v2520_v29 = vsel %vm2514_vm0, %v2496_v56, 0.0 }
 0x939   : > { %2518 = vst [vmem:[#allocation2] sm:$0xff] %v2516_v23 }
 0x93a   : > { %v2517_v49 = vsel %vm2515_vm1, %v2497_v44, %v4978_v50  ;;  %v2521_v62 = vsel %vm2515_vm1, %v2497_v44, 0.0 }
 0x93b   : > { %2519 = vst [vmem:[#allocation2 + $0x8] sm:$0xff] %v2517_v49  ;;  %v2992_v32 = vpack.c.bf16 %v2521_v62, %v2520_v29 }
 0x93d   : > { %3000 = vst [vmem:[%s4237_s17 + $0x38] sm:$0xff] %v2992_v32  }
 0x93e PF: > { %s2952_s23 = sshll.u32 %s3900_s10, 10  ;;  %s2562_s21 = sshll.u32 %s4237_s17, 4  ;;  %s5005_s21 = int_to_ptr.vmem [resolvable:$true] %s2562_s21 }
 0x93f   : > { %s5002_s9 = scalar_lea.hbm %s5094_s7, %s2952_s23  ;;  %s2541_s28 = scalar_lea.sflag [#allocation8], %s4178_s24 }
 0x940   : > { %v2536_v10 = vld [vmem:[#allocation2] sm:$0xff]  ;;  %s3790_s27 = scalar_lea.vmem %s5005_s21, 1024  ;;  %p5136_p4 = scmp.ne.s32.totalorder %s5118_s19, 0 }
 0x941   : > { %2538 = vst [vmem:[%s4239_s20] sm:$0xff] %v2536_v10  ;;  %p3791_p12 = scmp.ne.s32.totalorder %s5005_s21, %s3790_s27  ;;  %s3922_s14 = smov [#allocation12]  }
 0x942   : > { %v2537_v63 = vld [vmem:[#allocation2 + $0x8] sm:$0xff]  ;;  %s3794_s12 = sshll.u32 %s3922_s14, 4  ;;  %s3795_s12 = int_to_ptr.vmem [resolvable:$false] %s3794_s12 }
 0x943   : > { %2539 = vst [vmem:[%s4239_s20 + $0x8] sm:$0xff] %v2537_v63  ;;  %p3792_p10 = pnand %p3791_p12, %p5136_p4  ;;  %s3796_s26 = scalar_lea.vmem %s3795_s12, 2048 }
 0x944   : > { %p3797_p11 = scmp.lt.s32.totalorder %s5005_s21, %s3795_s12  ;;  %p3798_p7 = scmp.lt.s32.totalorder %s3796_s26, %s3790_s27 }
 0x945   : > { %p3793_p13 = pneg %p3792_p10 }
 0x946   : > { %p3799_p3 = por %p3798_p7, %p3797_p11 }
 0x948   : > { %p3800_p5 = pnand %p3799_p3, %p3793_p13 }
 0x94a   : > { %3803 = shalt.err (!%p3800_p5)
}
 0x94b   : > { %s3804_s3 = scalar_lea.hbm %s5002_s9, 1024  ;;  %s3808_s13 = scalar_lea.hbm %s5094_s7, 2048 }
 0x94c   : > { %p3805_p2 = scmp.ne.s32.totalorder %s5002_s9, %s3804_s3  ;;  %p3809_p6 = scmp.lt.u32.totalorder %s5002_s9, %s5094_s7 }
 0x94d   : > { %p3810_p8 = scmp.lt.u32.totalorder %s3808_s13, %s3804_s3  ;;  %p3812_p12 = scmp.lt.u32.totalorder %s3804_s3, %s5002_s9 }
 0x94e   : > { %p3806_p1 = pnand %p3805_p2, %p5136_p4 }
 0x94f   : > { %p3811_p9 = por %p3810_p8, %p3809_p6 }
 0x950   : > { %p3807_p0 = pneg %p3806_p1 }
 0x951   : > { %p3813_p10 = por %p3812_p12, %p3811_p9 }
 0x953   : > { %p3814_p13 = pnand %p3813_p10, %p3807_p0 }
 0x955   : > { %3817 = shalt.err (!%p3814_p13)
}
 0x956   : > { %s3923_s18 = smov 64   ;;  %s3924_s17 = smov 4  }
 0x957   : > { %3357 = dma.vmem_to_hbm [thread:$0]  (%p5136_p4), %s5005_s21, 1024, %s5002_s9, %s2541_s28, %s3923_s18, %s3923_s18, %s3924_s17  }
 0x958   : > { %s2953_s23 = sshll.u32 %s3900_s10, 8  ;;  %s2578_s25 = sshll.u32 %s4239_s20, 4  ;;  %s5038_s25 = int_to_ptr.vmem [resolvable:$true] %s2578_s25 }
 0x959   : > { %s5036_s14 = scalar_lea.hbm %s5095_s8, %s2953_s23  ;;  %s2546_s12 = scalar_lea.sflag [#allocation14], %s4178_s24 }
 0x95a   : > { %s3818_s26 = scalar_lea.vmem %s5038_s25, 256  ;;  %s3925_s3 = smov [#allocation13]  }
 0x95b   : > { %p3819_p11 = scmp.ne.s32.totalorder %s5038_s25, %s3818_s26  ;;  %s3822_s9 = sshll.u32 %s3925_s3, 4  ;;  %s3823_s9 = int_to_ptr.vmem [resolvable:$false] %s3822_s9 }
 0x95c   : > { %s3824_s10 = scalar_lea.vmem %s3823_s9, 512  ;;  %p3825_p5 = scmp.lt.s32.totalorder %s5038_s25, %s3823_s9 }
 0x95d   : > { %p3820_p7 = pnand %p3819_p11, %p5136_p4  ;;  %p3826_p2 = scmp.lt.s32.totalorder %s3824_s10, %s3818_s26 }
 0x95f   : > { %p3821_p3 = pneg %p3820_p7  ;;  %p3827_p1 = por %p3826_p2, %p3825_p5 }
 0x961   : > { %p3828_p0 = pnand %p3827_p1, %p3821_p3 }
 0x963   : > { %3831 = shalt.err (!%p3828_p0)
}
 0x964   : > { %s3832_s20 = scalar_lea.hbm %s5036_s14, 256  ;;  %s3836_s2 = scalar_lea.hbm %s5095_s8, 512 }
 0x965   : > { %p3833_p6 = scmp.ne.s32.totalorder %s5036_s14, %s3832_s20  ;;  %p3837_p12 = scmp.lt.u32.totalorder %s5036_s14, %s5095_s8 }
 0x966   : > { %p3838_p10 = scmp.lt.u32.totalorder %s3836_s2, %s3832_s20  ;;  %p3840_p11 = scmp.lt.u32.totalorder %s3832_s20, %s5036_s14 }
 0x967   : > { %p3834_p8 = pnand %p3833_p6, %p5136_p4 }
 0x968   : > { %p3839_p13 = por %p3838_p10, %p3837_p12 }
 0x969   : > { %p3835_p9 = pneg %p3834_p8 }
 0x96a   : > { %p3841_p7 = por %p3840_p11, %p3839_p13 }
 0x96c   : > { %p3842_p3 = pnand %p3841_p7, %p3835_p9 }
 0x96e   : > { %3845 = shalt.err (!%p3842_p3)
}
 0x96f   : > { %s3926_s0 = smov 128   ;;  %s3927_s22 = smov 8  }
 0x970   : > { %3358 = dma.vmem_to_hbm [thread:$0]  (%p5136_p4), %s5038_s25, 256, %s5036_s14, %s2546_s12, %s3926_s0, %s3926_s0, %s3927_s22  }
 0x971 PF: > { %s5137_s18 = sld [smem:[#allocation23_spill]]  ;;  %s5138_s17 = sld [smem:[#allocation20_spill]] }
 0x972   : > { %s2593_s23 = sand.u32 1, %s3888_s29  }
 0x973   : > { %s2594_s16 = scalar_lea.sflag [#allocation8], %s2593_s23 }
 0x977   : > { %p5139_p5 = scmp.ne.s32.totalorder %s5137_s18, 0  ;;  %p5140_p2 = scmp.ge.s32.totalorder %s5138_s17, 2 }
 0x979   : > { %p3372_p1 = pnand %p5140_p2, %p5139_p5 }
 0x97b   : > { %3879 = dma.done.wait (!%p3372_p1), %s2594_s16, 1024  }
 0x97c   : > { %3881 = vsyncadd (!%p3372_p1), %s2594_s16, 4294966272  ;;  %s2603_s27 = scalar_lea.sflag [#allocation14], %s2593_s23 }
 0x97d   : > { %3883 = dma.done.wait (!%p3372_p1), %s2603_s27, 256  }
 0x97e   : > { %3885 = vsyncadd (!%p3372_p1), %s2603_s27, 4294967040  ;;  %s32_s12 = sadd.s32 1, %s5138_s17   ;;  %s5141_s19 = sld [smem:[#allocation19_spill]] }
 0x97f   : > { %p29_p0 = scmp.ge.s32.totalorder %s32_s12, 4   ;;  %s5142_s9 = sld [smem:[#allocation22_spill]] }
 0x980   : > { %s5143_s24 = sld [smem:[#allocation21_spill]]  ;;  %s5144_s29 = smov %s3892_s30 }
 0x981   : > { %s5146_s10 = smov %s3904_s11  ;;  %31 = sbr.rel (!%p29_p0) target bundleno = 14 (0xe), region = 166 }
 0x984   : > { %s5145_s30 = smov %s5141_s19 }
 0x986   : > { %s5147_s11 = smov %s5143_s24 }
 0x988   :  { %2608 = vsyncpa [#allocation7], 1 }
 0x989   :  { %2610 = vsyncpa [#allocation7 + $0x1], 1 }
 0x98a   :  { %2611 = vsyncpa [#allocation10], 1 }
 0x98b   :  { %2613 = vsyncpa [#allocation10 + $0x1], 1 }
 0x98c   :  { %2614 = vsyncpa [#allocation8], 1 }
 0x98d   :  { %2616 = vsyncpa [#allocation8 + $0x1], 1 }
 0x98e   :  { %2617 = vsyncpa [#allocation14], 1 }
 0x98f   :  { %2619 = vsyncpa [#allocation14 + $0x1], 1 }

</bundles_post_ra>
